<compile_context>
chip_gen: v6e
topology: v6e:2x2x1
jax: 0.10.0
libtpu: 0.0.40
codegen_flags: <defaults>
</compile_context>

<pallas_src>
import numpy as np
import jax
import jax.numpy as jnp
from jax.experimental import pallas as pl
from jax.experimental.pallas import tpu as pltpu

BN_EPS = 1e-5


# ----------------------------------------------------------------------------
# Pallas kernel (built per parameter-layout so all slab offsets are static).
# Column-oriented: channels / per-anchor channels on the sublane axis,
# proposals on the lane axis.
# ----------------------------------------------------------------------------
def _make_kernel(n_slabs, w_layout, bias_layout, A, C):
    QS = A * 8            # rows of the hoisted spatial projection q1
    QF = A * (C // 2)     # rows of the hoisted feature projection qf

    def kernel(*refs):
        loc_ref, feat_ref, qcol_ref, afeat_ref = refs[:4]
        slab_refs = refs[4:4 + n_slabs]
        bias_ref = refs[4 + n_slabs]
        out_ref = refs[4 + n_slabs + 1]

        def dot(a, b):
            return jnp.dot(a, b, preferred_element_type=jnp.float32)

        def W(name):
            si, off, r, c = w_layout[name]
            return slab_refs[si][off:off + r, 0:c]

        def bias(name):
            j, r = bias_layout[name]
            return bias_ref[0:r, j:j + 1]          # (r, 1) column

        loc = loc_ref[0]          # (3, TN)   proposal locations (transposed)
        feat = feat_ref[0]        # (C, TN)   proposal features (native layout)
        qcol = qcol_ref[0]        # (A*8 + A*C/2, 1) hoisted anchor projections
        afeat = afeat_ref[0]      # (C, A)    anchor features (native layout)

        q1 = qcol[0:QS, :]        # (A*8, 1)    ws1^T@aloc_a - bs1
        qf = qcol[QS:QS + QF, :]  # (A*C/2, 1)  wf1^T@afeat_a - bf1

        # --- spatial displacement MLP (layer-1 factored, conv3 folded away) ----
        s = jnp.tanh(dot(W("ws1rep"), loc) - q1)        # (A*8,  TN)
        s = jnp.tanh(dot(W("ws2"), s) + bias("bs2"))    # (A*16, TN)

        # --- feature displacement MLP (layer-1 factored, conv2 folded away) ----
        f = jnp.tanh(dot(W("wf1rep"), feat) - qf)       # (A*C/2, TN)

        # --- aggregation MLP on [spatial, feature] -> per-anchor logit ---------
        g = jnp.tanh(dot(W("wsa"), s) + dot(W("wfa"), f) + bias("ba1"))  # (A*32, TN)
        logits = dot(W("wa2"), g) + bias("ba2")         # (A, TN)

        # --- softmax(tanh(.)) over anchors + min/max normalization -------------
        t = jnp.tanh(logits)
        t = t - jnp.max(t, axis=0, keepdims=True)
        e = jnp.exp(t)
        w = e * pl.reciprocal(jnp.sum(e, axis=0, keepdims=True), approx=True)
        wmin = jnp.min(w, axis=0, keepdims=True)
        wmax = jnp.max(w, axis=0, keepdims=True)
        wn = (w - wmin) * ((1.0 + 1e-6)
                           * pl.reciprocal(wmax - wmin + 1e-6, approx=True))

        # --- weighted sum over anchors of cat([proposal_feat, anchor_feat]) ----
        part_p = feat * jnp.sum(wn, axis=0, keepdims=True)   # (C, TN)
        part_a = dot(afeat, wn)                               # (C, TN)
        pa = jnp.concatenate([part_p, part_a], axis=0)        # (2C, TN)

        # --- relation fusion MLP: (2C->2C)+BN+ReLU, (2C->C)+BN+ReLU,
        #     (C->C)+BN+ReLU, (C->C); lane-dense (C, TN) store ------------------
        h = jnp.maximum(dot(W("wr1"), pa) + bias("br1"), 0.0)
        h = jnp.maximum(dot(W("wr2"), h) + bias("br2"), 0.0)
        h = jnp.maximum(dot(W("wr3"), h) + bias("br3"), 0.0)
        out_ref[0] = dot(W("wr4"), h) + bias("br4")           # (C, TN)

    return kernel


def disarm_relation(loc_t, feat, qcol, afeat_t, packed, *, tile_n):
    """loc_t (B,3,N), feat (B,C,N), qcol (B,A*8+A*C/2,1), afeat_t (B,C,A)
    -> relation (B,C,N)."""
    B, C, N = feat.shape
    A = afeat_t.shape[2]
    assert N % tile_n == 0 and (tile_n == N or tile_n % 128 == 0)
    grid = (B, N // tile_n)

    slabs = packed["slabs"]
    kernel = _make_kernel(len(slabs), packed["w_layout"], packed["bias_layout"],
                          A, C)

    QR = qcol.shape[1]
    in_specs = [
        pl.BlockSpec((1, 3, tile_n), lambda b, n: (b, 0, n)),
        pl.BlockSpec((1, C, tile_n), lambda b, n: (b, 0, n)),
        pl.BlockSpec((1, QR, 1), lambda b, n: (b, 0, 0)),
        pl.BlockSpec((1, C, A), lambda b, n: (b, 0, 0)),
    ]
    for s in slabs:
        in_specs.append(pl.BlockSpec(s.shape, lambda b, n: (0, 0)))
    in_specs.append(pl.BlockSpec(packed["bias"].shape, lambda b, n: (0, 0)))
    out_spec = pl.BlockSpec((1, C, tile_n), lambda b, n: (b, 0, n))

    return pl.pallas_call(
        kernel,
        out_shape=jax.ShapeDtypeStruct((B, C, N), jnp.float32),
        grid_spec=pltpu.PrefetchScalarGridSpec(
            num_scalar_prefetch=0,
            grid=grid,
            in_specs=in_specs,
            out_specs=out_spec,
        ),
        compiler_params=pltpu.CompilerParams(
            dimension_semantics=("parallel", "parallel"),
            vmem_limit_bytes=32 * 1024 * 1024),
    )(loc_t, feat, qcol, afeat_t, *slabs, packed["bias"])


# ----------------------------------------------------------------------------
# Deterministic parameter construction (eval-mode BN folded into 1x1 convs).
# Logical weights are (cin, cout) row-orientation; biases are (1, cout) rows.
# ----------------------------------------------------------------------------
def _init_conv(key, cin, cout):
    kw, kb = jax.random.split(key)
    w = jax.random.normal(kw, (cin, cout), jnp.float32) / np.sqrt(cin)
    b = 0.1 * jax.random.normal(kb, (cout,), jnp.float32)
    return w, b


def _init_bn(key, c):
    k1, k2, k3, k4 = jax.random.split(key, 4)
    gamma = 1.0 + 0.1 * jax.random.normal(k1, (c,), jnp.float32)
    beta = 0.1 * jax.random.normal(k2, (c,), jnp.float32)
    mean = 0.1 * jax.random.normal(k3, (c,), jnp.float32)
    var = jax.random.uniform(k4, (c,), jnp.float32, minval=0.5, maxval=1.5)
    return gamma, beta, mean, var


def _fold_bn(w, b, bn):
    gamma, beta, mean, var = bn
    s = gamma / jnp.sqrt(var + BN_EPS)
    return w * s[None, :], (b - mean) * s + beta


def make_params(key, C):
    assert C % 4 == 0
    keys = iter(jax.random.split(key, 32))

    # feature displacement branch: Conv(C,C/2)+BN+Tanh, Conv(C/2,C/4)
    wf1, bf1 = _init_conv(next(keys), C, C // 2)
    wf1, bf1 = _fold_bn(wf1, bf1, _init_bn(next(keys), C // 2))
    wf2, bf2 = _init_conv(next(keys), C // 2, C // 4)
    # spatial displacement branch: Conv(3,8)+BN+Tanh, Conv(8,16)+BN+Tanh, Conv(16,32)
    ws1, bs1 = _init_conv(next(keys), 3, 8)
    ws1, bs1 = _fold_bn(ws1, bs1, _init_bn(next(keys), 8))
    ws2, bs2 = _init_conv(next(keys), 8, 16)
    ws2, bs2 = _fold_bn(ws2, bs2, _init_bn(next(keys), 16))
    ws3, bs3 = _init_conv(next(keys), 16, 32)
    # aggregation MLP: Conv(32+C/4,32)+BN+Tanh, Conv(32,1)
    wa1, ba1 = _init_conv(next(keys), 32 + C // 4, 32)
    wa1, ba1 = _fold_bn(wa1, ba1, _init_bn(next(keys), 32))
    wa1s, wa1f = wa1[:32], wa1[32:]            # cat order: [spatial, feature]
    wa2, ba2 = _init_conv(next(keys), 32, 1)
    # relation fusion MLP (in=2C): (2C->2C)+BN+ReLU, (2C->C)+BN+ReLU, (C->C)+BN+ReLU, (C->C)
    wr1, br1 = _init_conv(next(keys), 2 * C, 2 * C)
    wr1, br1 = _fold_bn(wr1, br1, _init_bn(next(keys), 2 * C))
    wr1p, wr1a = wr1[:C], wr1[C:]              # cat order: [proposal_feat, anchor_feat]
    wr2, br2 = _init_conv(next(keys), 2 * C, C)
    wr2, br2 = _fold_bn(wr2, br2, _init_bn(next(keys), C))
    wr3, br3 = _init_conv(next(keys), C, C)
    wr3, br3 = _fold_bn(wr3, br3, _init_bn(next(keys), C))
    wr4, br4 = _init_conv(next(keys), C, C)

    def Brow(b):   # biases as (1, out) rows
        return b.reshape(1, -1)

    return [ws1, Brow(bs1), ws2, Brow(bs2), ws3, Brow(bs3),
            wf1, Brow(bf1), wf2, Brow(bf2),
            wa1s, wa1f, Brow(ba1), wa2, Brow(ba2),
            wr1p, wr1a, Brow(br1), wr2, Brow(br2), wr3, Brow(br3), wr4, Brow(br4)]


# ----------------------------------------------------------------------------
# Pack the logical parameters into kernel-ready slabs.
#   Host-side (f32) linear folds:   wsa = ws3 @ wa1s,  wfa = wf2 @ wa1f,
#   ba1' = ba1 + bs3@wa1s + bf2@wa1f,  wr1 kept un-split.
#   Proposal-side layer-1 weights replicated per anchor (A*out, in); the
#   per-anchor middle layers as block-diagonal (A*out, A*in) (kron with eye);
#   fusion weights transposed.  Slabs are grouped by lane-padded width so
#   narrow blocks are not padded to the widest block; biases are zero-padded
#   columns of one (max_rows, n_bias) slab.
# ----------------------------------------------------------------------------
def pack_params(flat_params, A, C):
    (ws1, bs1, ws2, bs2, ws3, bs3,
     wf1, bf1, wf2, bf2,
     wa1s, wa1f, ba1, wa2, ba2,
     wr1p, wr1a, br1, wr2, br2, wr3, br3, wr4, br4) = flat_params

    eye = jnp.eye(A, dtype=jnp.float32)

    # linear-linear folds (no activation between those layers) ---------------
    wsa = ws3 @ wa1s                              # (16, 32)
    wfa = wf2 @ wa1f                              # (C/2, 32)
    ba1p = ba1 + bs3 @ wa1s + bf2 @ wa1f          # (1, 32)
    wr1 = jnp.concatenate([wr1p, wr1a], axis=0)   # (2C, 2C)

    def rep(w):                     # (A*out, in)  -- per-anchor replicated
        return jnp.tile(jnp.transpose(w), (A, 1))

    def bd(w):                      # (A*out, A*in) -- per-anchor block diagonal
        return jnp.kron(eye, jnp.transpose(w))

    def col(b, per_anchor=False):   # bias column; optionally replicated per anchor
        c = jnp.reshape(b, (-1, 1))
        return jnp.tile(c, (A, 1)) if per_anchor else c

    mats = {
        "ws1rep": rep(ws1), "ws2": bd(ws2),
        "wf1rep": rep(wf1),
        "wsa": bd(wsa), "wfa": bd(wfa), "wa2": bd(wa2),
        "wr1": jnp.transpose(wr1), "wr2": jnp.transpose(wr2),
        "wr3": jnp.transpose(wr3), "wr4": jnp.transpose(wr4),
    }
    biases = {
        "bs2": col(bs2, True),
        "ba1": col(ba1p, True), "ba2": col(ba2, True),
        "br1": col(br1), "br2": col(br2), "br3": col(br3), "br4": col(br4),
    }

    # group weight matrices by lane-padded width (multiples of 128) ----------
    def lane_bucket(c):
        return max(128, ((c + 127) // 128) * 128)

    buckets = {}
    for name, m in mats.items():
        buckets.setdefault(lane_bucket(int(m.shape[1])), []).append(name)

    slabs, w_layout = [], {}
    for si, width in enumerate(sorted(buckets)):
        parts, off = [], 0
        for name in buckets[width]:
            m = mats[name]
            r, c = int(m.shape[0]), int(m.shape[1])
            rpad = (-r) % 8                       # keep row offsets sublane-aligned
            parts.append(jnp.pad(m, ((0, rpad), (0, width - c))))
            w_layout[name] = (si, off, r, c)
            off += r + rpad
        slabs.append(jnp.concatenate(parts, axis=0))

    bias_names = list(biases)
    brows = max(int(biases[n].shape[0]) for n in bias_names)
    bias_slab = jnp.concatenate(
        [jnp.pad(biases[n], ((0, brows - int(biases[n].shape[0])), (0, 0)))
         for n in bias_names], axis=1)
    bias_layout = {n: (j, int(biases[n].shape[0])) for j, n in enumerate(bias_names)}

    return dict(slabs=slabs, bias=bias_slab,
                w_layout=w_layout, bias_layout=bias_layout)


# ----------------------------------------------------------------------------
# DisARM forward wrapper (PyTorch-compatible shapes).
# ----------------------------------------------------------------------------
def disarm_forward(proposal_locations, proposal_features, flat_params, num_anchors,
                   tile_n=None):
    """proposal_locations (B,N,3), proposal_features (B,C,N) -> dict with 'relation' (B,C,N)."""
    B, C, N = proposal_features.shape
    A = num_anchors

    if tile_n is None:
        tile_n = N
        # cap tile size (VMEM on v7x) — only halve while staying a multiple of 128
        while tile_n > 1024 and (tile_n // 2) % 128 == 0:
            tile_n //= 2
        # ensure >= ~4 grid steps so both TensorCores get work and the weight-slab
        # DMA / output writeback can be hidden by the software pipeline
        while B * (N // tile_n) < 4 and tile_n % 256 == 0:
            tile_n //= 2

    ws1, bs1 = flat_params[0], flat_params[1]
    wf1, bf1 = flat_params[6], flat_params[7]

    loc_t = jnp.transpose(proposal_locations, (0, 2, 1))          # (B, 3, N)  (tiny)
    # RelationAnchor(approach='random'): first `num_anchors` proposals.
    anchor_locations = proposal_locations[:, :A, :]               # (B, A, 3)
    anchor_features = proposal_features[:, :, :A]                 # (B, C, A)

    # Hoisted per-batch anchor-side layer-1 projections (independent of the N tile):
    #   q1_a = ws1^T @ aloc_a - bs1 ,  qf_a = wf1^T @ afeat_a - bf1
    q1 = anchor_locations @ ws1 - bs1                             # (B, A, 8)
    afeat_nc = jnp.transpose(anchor_features, (0, 2, 1))          # (B, A, C)
    qf = afeat_nc @ wf1 - bf1                                     # (B, A, C/2)
    qcol = jnp.concatenate(
        [q1.reshape(B, A * 8), qf.reshape(B, A * (C // 2))], axis=1)[..., None]

    packed = pack_params(flat_params, A, C)

    relation = disarm_relation(loc_t, proposal_features, qcol, anchor_features,
                               packed, tile_n=tile_n)             # (B, C, N)

    return {
        "relation": relation,                                     # (B, C, N)
        "anchor_locations": anchor_locations,                     # (B, A, 3)
        "anchor_features": anchor_features,                       # (B, C, A)
        # TODO(synk): original RelationAnchor('random') never defines anchor_indices
        # (UnboundLocalError in the reference code); emit arange indices instead.
        "anchor_indices": jnp.broadcast_to(jnp.arange(A, dtype=jnp.int32), (B, A)),
    }


# ----------------------------------------------------------------------------
# Plain-JAX reference of the same eval-mode math (for a sanity check).
# ----------------------------------------------------------------------------
def reference_relation(loc, feat_nc, aloc, afeat_nc, flat):
    (ws1, bs1, ws2, bs2, ws3, bs3, wf1, bf1, wf2, bf2,
     wa1s, wa1f, ba1, wa2, ba2,
     wr1p, wr1a, br1, wr2, br2, wr3, br3, wr4, br4) = flat
    sd = loc[:, :, None, :] - aloc[:, None, :, :]                  # (B,N,A,3)
    fd = feat_nc[:, :, None, :] - afeat_nc[:, None, :, :]          # (B,N,A,C)
    s = jnp.tanh(sd @ ws1 + bs1)
    s = jnp.tanh(s @ ws2 + bs2)
    s = s @ ws3 + bs3
    f = jnp.tanh(fd @ wf1 + bf1)
    f = f @ wf2 + bf2
    g = jnp.tanh(s @ wa1s + f @ wa1f + ba1)
    logits = (g @ wa2 + ba2)[..., 0]                               # (B,N,A)
    w = jax.nn.softmax(jnp.tanh(logits), axis=-1)
    wmin = w.min(-1, keepdims=True)
    wmax = w.max(-1, keepdims=True)
    wn = (1.0 + 1e-6) / (wmax - wmin + 1e-6) * (w - wmin)
    part_p = feat_nc * wn.sum(-1, keepdims=True)
    part_a = jnp.einsum("bna,bac->bnc", wn, afeat_nc)
    h = jax.nn.relu(part_p @ wr1p + part_a @ wr1a + br1)
    h = jax.nn.relu(h @ wr2 + br2)
    h = jax.nn.relu(h @ wr3 + br3)
    return h @ wr4 + br4                                           # (B,N,C)


if __name__ == "__main__":
    B, C, N, A = 2, 16, 256, 16          # batch, in_channels, num_proposals, num_anchors

    key = jax.random.PRNGKey(0)
    k_loc, k_feat, k_par = jax.random.split(key, 3)
    proposal_locations = jax.random.normal(k_loc, (B, N, 3), jnp.float32)
    proposal_features = jax.random.normal(k_feat, (B, C, N), jnp.float32)
    flat_params = make_params(k_par, C)

    results = disarm_forward(proposal_locations, proposal_features, flat_params,
                             num_anchors=A)
    relation = jax.block_until_ready(results["relation"])
    assert relation.shape == (B, C, N)

    # sanity-check the kernel against the plain-JAX reference
    feat_nc = jnp.transpose(proposal_features, (0, 2, 1))
    ref = reference_relation(proposal_locations, feat_nc,
                             proposal_locations[:, :A, :], feat_nc[:, :A, :],
                             flat_params)
    ref_t = jnp.transpose(ref, (0, 2, 1))                          # (B, C, N)
    scale = max(1.0, float(jnp.max(jnp.abs(ref_t))))
    err = float(jnp.max(jnp.abs(relation - ref_t)))
    assert err / scale < 3e-2, f"relative mismatch vs reference: {err / scale}"

    print("KERNEL_OK")
</pallas_src>

<mosaic_0001>
module attributes {stable_mosaic.version = 11 : i64} {
  func.func @kernel(%arg0: i32, %arg1: i32, %arg2: memref<1x3x128xf32, #tpu.memory_space<vmem>>, %arg3: memref<1x16x128xf32, #tpu.memory_space<vmem>>, %arg4: memref<1x256x1xf32, #tpu.memory_space<vmem>>, %arg5: memref<1x16x16xf32, #tpu.memory_space<vmem>>, %arg6: memref<1104x128xf32, #tpu.memory_space<vmem>>, %arg7: memref<512x256xf32, #tpu.memory_space<vmem>>, %arg8: memref<16x512xf32, #tpu.memory_space<vmem>>, %arg9: memref<512x7xf32, #tpu.memory_space<vmem>>, %arg10: memref<1x16x128xf32, #tpu.memory_space<vmem>>) attributes {dimension_semantics = [#tpu.dimension_semantics<parallel>, #tpu.dimension_semantics<parallel>], iteration_bounds = array<i64: 2, 2>, scalar_prefetch = 0 : i64, scratch_operands = 0 : i64, tpu.core_type = #tpu.core_type<tc>, window_params = [{transform_indices = @transform_0, window_bounds = array<i64: 1, 3, 128>}, {transform_indices = @transform_1, window_bounds = array<i64: 1, 16, 128>}, {transform_indices = @transform_2, window_bounds = array<i64: 1, 256, 1>}, {transform_indices = @transform_3, window_bounds = array<i64: 1, 16, 16>}, {pipeline_mode = #tpu.pipeline_mode<synchronous>, transform_indices = @transform_4, window_bounds = array<i64: 1104, 128>}, {pipeline_mode = #tpu.pipeline_mode<synchronous>, transform_indices = @transform_5, window_bounds = array<i64: 512, 256>}, {pipeline_mode = #tpu.pipeline_mode<synchronous>, transform_indices = @transform_6, window_bounds = array<i64: 16, 512>}, {pipeline_mode = #tpu.pipeline_mode<synchronous>, transform_indices = @transform_7, window_bounds = array<i64: 512, 7>}, {transform_indices = @transform_8, window_bounds = array<i64: 1, 16, 128>}]} {
    %c0 = arith.constant 0 : index
    %c0_0 = arith.constant 0 : index
    %c0_1 = arith.constant 0 : index
    %0 = vector.load %arg2[%c0, %c0_0, %c0_1] : memref<1x3x128xf32, #tpu.memory_space<vmem>>, vector<1x3x128xf32>
    %1 = vector.shape_cast %0 : vector<1x3x128xf32> to vector<3x128xf32>
    %c0_2 = arith.constant 0 : index
    %c0_3 = arith.constant 0 : index
    %c0_4 = arith.constant 0 : index
    %2 = vector.load %arg3[%c0_2, %c0_3, %c0_4] : memref<1x16x128xf32, #tpu.memory_space<vmem>>, vector<1x16x128xf32>
    %3 = vector.shape_cast %2 : vector<1x16x128xf32> to vector<16x128xf32>
    %c0_5 = arith.constant 0 : index
    %c0_6 = arith.constant 0 : index
    %c0_7 = arith.constant 0 : index
    %4 = vector.load %arg4[%c0_5, %c0_6, %c0_7] : memref<1x256x1xf32, #tpu.memory_space<vmem>>, vector<1x256x1xf32>
    %5 = vector.shape_cast %4 : vector<1x256x1xf32> to vector<256x1xf32>
    %c0_8 = arith.constant 0 : index
    %c0_9 = arith.constant 0 : index
    %c0_10 = arith.constant 0 : index
    %6 = vector.load %arg5[%c0_8, %c0_9, %c0_10] : memref<1x16x16xf32, #tpu.memory_space<vmem>>, vector<1x16x16xf32>
    %7 = vector.shape_cast %6 : vector<1x16x16xf32> to vector<16x16xf32>
    %8 = vector.extract_strided_slice %5 {offsets = [0, 0], sizes = [128, 1], strides = [1, 1]} : vector<256x1xf32> to vector<128x1xf32>
    %9 = vector.extract_strided_slice %5 {offsets = [128, 0], sizes = [128, 1], strides = [1, 1]} : vector<256x1xf32> to vector<128x1xf32>
    %c0_11 = arith.constant 0 : index
    %c0_12 = arith.constant 0 : index
    %10 = vector.load %arg6[%c0_11, %c0_12] : memref<1104x128xf32, #tpu.memory_space<vmem>>, vector<128x3xf32>
    %cst = arith.constant dense<0.000000e+00> : vector<128x128xf32>
    %11 = tpu.matmul %10, %1, %cst {dimension_numbers = #tpu.dot_dimension_numbers<[1], [0], [0], [1], [0, 0, 1, 1], [], []>} : vector<128x3xf32>, vector<3x128xf32>, vector<128x128xf32> -> vector<128x128xf32>
    %12 = vector.broadcast %8 : vector<128x1xf32> to vector<128x128xf32>
    %13 = arith.subf %11, %12 : vector<128x128xf32>
    %14 = math.tanh %13 : vector<128x128xf32>
    %c128 = arith.constant 128 : index
    %c0_13 = arith.constant 0 : index
    %15 = vector.load %arg6[%c128, %c0_13] : memref<1104x128xf32, #tpu.memory_space<vmem>>, vector<256x128xf32>
    %cst_14 = arith.constant dense<0.000000e+00> : vector<256x128xf32>
    %16 = tpu.matmul %15, %14, %cst_14 {dimension_numbers = #tpu.dot_dimension_numbers<[1], [0], [0], [1], [0, 0, 1, 1], [], []>} : vector<256x128xf32>, vector<128x128xf32>, vector<256x128xf32> -> vector<256x128xf32>
    %c0_15 = arith.constant 0 : index
    %c0_16 = arith.constant 0 : index
    %17 = vector.load %arg9[%c0_15, %c0_16] : memref<512x7xf32, #tpu.memory_space<vmem>>, vector<256x1xf32>
    %18 = vector.broadcast %17 : vector<256x1xf32> to vector<256x128xf32>
    %19 = arith.addf %16, %18 : vector<256x128xf32>
    %20 = math.tanh %19 : vector<256x128xf32>
    %c384 = arith.constant 384 : index
    %c0_17 = arith.constant 0 : index
    %21 = vector.load %arg6[%c384, %c0_17] : memref<1104x128xf32, #tpu.memory_space<vmem>>, vector<128x16xf32>
    %cst_18 = arith.constant dense<0.000000e+00> : vector<128x128xf32>
    %22 = tpu.matmul %21, %3, %cst_18 {dimension_numbers = #tpu.dot_dimension_numbers<[1], [0], [0], [1], [0, 0, 1, 1], [], []>} : vector<128x16xf32>, vector<16x128xf32>, vector<128x128xf32> -> vector<128x128xf32>
    %23 = vector.broadcast %9 : vector<128x1xf32> to vector<128x128xf32>
    %24 = arith.subf %22, %23 : vector<128x128xf32>
    %25 = math.tanh %24 : vector<128x128xf32>
    %c0_19 = arith.constant 0 : index
    %c0_20 = arith.constant 0 : index
    %26 = vector.load %arg7[%c0_19, %c0_20] : memref<512x256xf32, #tpu.memory_space<vmem>>, vector<512x256xf32>
    %cst_21 = arith.constant dense<0.000000e+00> : vector<512x128xf32>
    %27 = tpu.matmul %26, %20, %cst_21 {dimension_numbers = #tpu.dot_dimension_numbers<[1], [0], [0], [1], [0, 0, 1, 1], [], []>} : vector<512x256xf32>, vector<256x128xf32>, vector<512x128xf32> -> vector<512x128xf32>
    %c512 = arith.constant 512 : index
    %c0_22 = arith.constant 0 : index
    %28 = vector.load %arg6[%c512, %c0_22] : memref<1104x128xf32, #tpu.memory_space<vmem>>, vector<512x128xf32>
    %cst_23 = arith.constant dense<0.000000e+00> : vector<512x128xf32>
    %29 = tpu.matmul %28, %25, %cst_23 {dimension_numbers = #tpu.dot_dimension_numbers<[1], [0], [0], [1], [0, 0, 1, 1], [], []>} : vector<512x128xf32>, vector<128x128xf32>, vector<512x128xf32> -> vector<512x128xf32>
    %30 = arith.addf %27, %29 : vector<512x128xf32>
    %c0_24 = arith.constant 0 : index
    %c1 = arith.constant 1 : index
    %31 = vector.load %arg9[%c0_24, %c1] : memref<512x7xf32, #tpu.memory_space<vmem>>, vector<512x1xf32>
    %32 = vector.broadcast %31 : vector<512x1xf32> to vector<512x128xf32>
    %33 = arith.addf %30, %32 : vector<512x128xf32>
    %34 = math.tanh %33 : vector<512x128xf32>
    %c0_25 = arith.constant 0 : index
    %c0_26 = arith.constant 0 : index
    %35 = vector.load %arg8[%c0_25, %c0_26] : memref<16x512xf32, #tpu.memory_space<vmem>>, vector<16x512xf32>
    %cst_27 = arith.constant dense<0.000000e+00> : vector<16x128xf32>
    %36 = tpu.matmul %35, %34, %cst_27 {dimension_numbers = #tpu.dot_dimension_numbers<[1], [0], [0], [1], [0, 0, 1, 1], [], []>} : vector<16x512xf32>, vector<512x128xf32>, vector<16x128xf32> -> vector<16x128xf32>
    %c0_28 = arith.constant 0 : index
    %c2 = arith.constant 2 : index
    %37 = vector.load %arg9[%c0_28, %c2] : memref<512x7xf32, #tpu.memory_space<vmem>>, vector<16x1xf32>
    %38 = vector.broadcast %37 : vector<16x1xf32> to vector<16x128xf32>
    %39 = arith.addf %36, %38 : vector<16x128xf32>
    %40 = math.tanh %39 : vector<16x128xf32>
    %cst_29 = arith.constant dense<0xFF800000> : vector<128xf32>
    %41 = vector.multi_reduction <maximumf>, %40, %cst_29 [0] : vector<16x128xf32> to vector<128xf32>
    %42 = vector.shape_cast %41 : vector<128xf32> to vector<1x128xf32>
    %43 = vector.broadcast %42 : vector<1x128xf32> to vector<16x128xf32>
    %44 = arith.subf %40, %43 : vector<16x128xf32>
    %45 = math.exp %44 : vector<16x128xf32>
    %cst_30 = arith.constant dense<0.000000e+00> : vector<128xf32>
    %46 = vector.multi_reduction <add>, %45, %cst_30 [0] : vector<16x128xf32> to vector<128xf32>
    %47 = vector.shape_cast %46 : vector<128xf32> to vector<1x128xf32>
    %48 = tpu.reciprocal %47 {approx = true} : vector<1x128xf32> -> vector<1x128xf32>
    %49 = vector.broadcast %48 : vector<1x128xf32> to vector<16x128xf32>
    %50 = arith.mulf %45, %49 : vector<16x128xf32>
    %cst_31 = arith.constant dense<0x7F800000> : vector<128xf32>
    %51 = vector.multi_reduction <minimumf>, %50, %cst_31 [0] : vector<16x128xf32> to vector<128xf32>
    %52 = vector.shape_cast %51 : vector<128xf32> to vector<1x128xf32>
    %cst_32 = arith.constant dense<0xFF800000> : vector<128xf32>
    %53 = vector.multi_reduction <maximumf>, %50, %cst_32 [0] : vector<16x128xf32> to vector<128xf32>
    %54 = vector.shape_cast %53 : vector<128xf32> to vector<1x128xf32>
    %55 = vector.broadcast %52 : vector<1x128xf32> to vector<16x128xf32>
    %56 = arith.subf %50, %55 : vector<16x128xf32>
    %57 = arith.subf %54, %52 : vector<1x128xf32>
    %cst_33 = arith.constant 9.99999997E-7 : f32
    %58 = vector.broadcast %cst_33 : f32 to vector<1x128xf32>
    %59 = arith.addf %57, %58 : vector<1x128xf32>
    %60 = tpu.reciprocal %59 {approx = true} : vector<1x128xf32> -> vector<1x128xf32>
    %cst_34 = arith.constant 1.00000095 : f32
    %61 = vector.broadcast %cst_34 : f32 to vector<1x128xf32>
    %62 = arith.mulf %61, %60 : vector<1x128xf32>
    %63 = vector.broadcast %62 : vector<1x128xf32> to vector<16x128xf32>
    %64 = arith.mulf %56, %63 : vector<16x128xf32>
    %cst_35 = arith.constant dense<0.000000e+00> : vector<128xf32>
    %65 = vector.multi_reduction <add>, %64, %cst_35 [0] : vector<16x128xf32> to vector<128xf32>
    %66 = vector.shape_cast %65 : vector<128xf32> to vector<1x128xf32>
    %67 = vector.broadcast %66 : vector<1x128xf32> to vector<16x128xf32>
    %68 = arith.mulf %3, %67 : vector<16x128xf32>
    %cst_36 = arith.constant dense<0.000000e+00> : vector<16x128xf32>
    %69 = tpu.matmul %7, %64, %cst_36 {dimension_numbers = #tpu.dot_dimension_numbers<[1], [0], [0], [1], [0, 0, 1, 1], [], []>} : vector<16x16xf32>, vector<16x128xf32>, vector<16x128xf32> -> vector<16x128xf32>
    %70 = tpu.concatenate %68, %69 in 0 : vector<16x128xf32>, vector<16x128xf32> -> vector<32x128xf32>
    %c1024 = arith.constant 1024 : index
    %c0_37 = arith.constant 0 : index
    %71 = vector.load %arg6[%c1024, %c0_37] : memref<1104x128xf32, #tpu.memory_space<vmem>>, vector<32x32xf32>
    %cst_38 = arith.constant dense<0.000000e+00> : vector<32x128xf32>
    %72 = tpu.matmul %71, %70, %cst_38 {dimension_numbers = #tpu.dot_dimension_numbers<[1], [0], [0], [1], [0, 0, 1, 1], [], []>} : vector<32x32xf32>, vector<32x128xf32>, vector<32x128xf32> -> vector<32x128xf32>
    %c0_39 = arith.constant 0 : index
    %c3 = arith.constant 3 : index
    %73 = vector.load %arg9[%c0_39, %c3] : memref<512x7xf32, #tpu.memory_space<vmem>>, vector<32x1xf32>
    %74 = vector.broadcast %73 : vector<32x1xf32> to vector<32x128xf32>
    %75 = arith.addf %72, %74 : vector<32x128xf32>
    %cst_40 = arith.constant 0.000000e+00 : f32
    %76 = vector.broadcast %cst_40 : f32 to vector<32x128xf32>
    %77 = arith.maximumf %75, %76 : vector<32x128xf32>
    %c1056 = arith.constant 1056 : index
    %c0_41 = arith.constant 0 : index
    %78 = vector.load %arg6[%c1056, %c0_41] : memref<1104x128xf32, #tpu.memory_space<vmem>>, vector<16x32xf32>
    %cst_42 = arith.constant dense<0.000000e+00> : vector<16x128xf32>
    %79 = tpu.matmul %78, %77, %cst_42 {dimension_numbers = #tpu.dot_dimension_numbers<[1], [0], [0], [1], [0, 0, 1, 1], [], []>} : vector<16x32xf32>, vector<32x128xf32>, vector<16x128xf32> -> vector<16x128xf32>
    %c0_43 = arith.constant 0 : index
    %c4 = arith.constant 4 : index
    %80 = vector.load %arg9[%c0_43, %c4] : memref<512x7xf32, #tpu.memory_space<vmem>>, vector<16x1xf32>
    %81 = vector.broadcast %80 : vector<16x1xf32> to vector<16x128xf32>
    %82 = arith.addf %79, %81 : vector<16x128xf32>
    %cst_44 = arith.constant 0.000000e+00 : f32
    %83 = vector.broadcast %cst_44 : f32 to vector<16x128xf32>
    %84 = arith.maximumf %82, %83 : vector<16x128xf32>
    %c1072 = arith.constant 1072 : index
    %c0_45 = arith.constant 0 : index
    %85 = vector.load %arg6[%c1072, %c0_45] : memref<1104x128xf32, #tpu.memory_space<vmem>>, vector<16x16xf32>
    %cst_46 = arith.constant dense<0.000000e+00> : vector<16x128xf32>
    %86 = tpu.matmul %85, %84, %cst_46 {dimension_numbers = #tpu.dot_dimension_numbers<[1], [0], [0], [1], [0, 0, 1, 1], [], []>} : vector<16x16xf32>, vector<16x128xf32>, vector<16x128xf32> -> vector<16x128xf32>
    %c0_47 = arith.constant 0 : index
    %c5 = arith.constant 5 : index
    %87 = vector.load %arg9[%c0_47, %c5] : memref<512x7xf32, #tpu.memory_space<vmem>>, vector<16x1xf32>
    %88 = vector.broadcast %87 : vector<16x1xf32> to vector<16x128xf32>
    %89 = arith.addf %86, %88 : vector<16x128xf32>
    %cst_48 = arith.constant 0.000000e+00 : f32
    %90 = vector.broadcast %cst_48 : f32 to vector<16x128xf32>
    %91 = arith.maximumf %89, %90 : vector<16x128xf32>
    %c1088 = arith.constant 1088 : index
    %c0_49 = arith.constant 0 : index
    %92 = vector.load %arg6[%c1088, %c0_49] : memref<1104x128xf32, #tpu.memory_space<vmem>>, vector<16x16xf32>
    %cst_50 = arith.constant dense<0.000000e+00> : vector<16x128xf32>
    %93 = tpu.matmul %92, %91, %cst_50 {dimension_numbers = #tpu.dot_dimension_numbers<[1], [0], [0], [1], [0, 0, 1, 1], [], []>} : vector<16x16xf32>, vector<16x128xf32>, vector<16x128xf32> -> vector<16x128xf32>
    %c0_51 = arith.constant 0 : index
    %c6 = arith.constant 6 : index
    %94 = vector.load %arg9[%c0_51, %c6] : memref<512x7xf32, #tpu.memory_space<vmem>>, vector<16x1xf32>
    %95 = vector.broadcast %94 : vector<16x1xf32> to vector<16x128xf32>
    %96 = arith.addf %93, %95 : vector<16x128xf32>
    %c0_52 = arith.constant 0 : index
    %c0_53 = arith.constant 0 : index
    %c0_54 = arith.constant 0 : index
    %97 = vector.load %arg10[%c0_52, %c0_53, %c0_54] : memref<1x16x128xf32, #tpu.memory_space<vmem>>, vector<1x16x128xf32>
    %98 = vector.shape_cast %97 : vector<1x16x128xf32> to vector<16x128xf32>
    %99 = vector.shape_cast %96 : vector<16x128xf32> to vector<1x16x128xf32>
    tpu.vector_store %arg10[%c0_52, %c0_53, %c0_54], %99 {strides = array<i32>} : memref<1x16x128xf32, #tpu.memory_space<vmem>>, vector<1x16x128xf32>,
    return
  }
  func.func @transform_0(%arg0: i32, %arg1: i32) -> (i32, i32, i32) {
    %c0_i32 = arith.constant 0 : i32
    %c0_i32_0 = arith.constant 0 : i32
    return %arg0, %c0_i32, %arg1 : i32, i32, i32
  }
  func.func @transform_1(%arg0: i32, %arg1: i32) -> (i32, i32, i32) {
    %c0_i32 = arith.constant 0 : i32
    %c0_i32_0 = arith.constant 0 : i32
    return %arg0, %c0_i32, %arg1 : i32, i32, i32
  }
  func.func @transform_2(%arg0: i32, %arg1: i32) -> (i32, i32, i32) {
    %c0_i32 = arith.constant 0 : i32
    %c0_i32_0 = arith.constant 0 : i32
    %c0_i32_1 = arith.constant 0 : i32
    return %arg0, %c0_i32, %c0_i32_0 : i32, i32, i32
  }
  func.func @transform_3(%arg0: i32, %arg1: i32) -> (i32, i32, i32) {
    %c0_i32 = arith.constant 0 : i32
    %c0_i32_0 = arith.constant 0 : i32
    %c0_i32_1 = arith.constant 0 : i32
    return %arg0, %c0_i32, %c0_i32_0 : i32, i32, i32
  }
  func.func @transform_4(%arg0: i32, %arg1: i32) -> (i32, i32) {
    %c0_i32 = arith.constant 0 : i32
    %c0_i32_0 = arith.constant 0 : i32
    %c0_i32_1 = arith.constant 0 : i32
    return %c0_i32, %c0_i32_0 : i32, i32
  }
  func.func @transform_5(%arg0: i32, %arg1: i32) -> (i32, i32) {
    %c0_i32 = arith.constant 0 : i32
    %c0_i32_0 = arith.constant 0 : i32
    %c0_i32_1 = arith.constant 0 : i32
    return %c0_i32, %c0_i32_0 : i32, i32
  }
  func.func @transform_6(%arg0: i32, %arg1: i32) -> (i32, i32) {
    %c0_i32 = arith.constant 0 : i32
    %c0_i32_0 = arith.constant 0 : i32
    %c0_i32_1 = arith.constant 0 : i32
    return %c0_i32, %c0_i32_0 : i32, i32
  }
  func.func @transform_7(%arg0: i32, %arg1: i32) -> (i32, i32) {
    %c0_i32 = arith.constant 0 : i32
    %c0_i32_0 = arith.constant 0 : i32
    %c0_i32_1 = arith.constant 0 : i32
    return %c0_i32, %c0_i32_0 : i32, i32
  }
  func.func @transform_8(%arg0: i32, %arg1: i32) -> (i32, i32, i32) {
    %c0_i32 = arith.constant 0 : i32
    %c0_i32_0 = arith.constant 0 : i32
    return %arg0, %c0_i32, %arg1 : i32, i32, i32
  }
}

</mosaic_0001>

<bundles_post_ra>
// kernel: tpu_custom_call.1
= control target key start
LH: loop header
LB: loop body
LE: loop exit
PB: predicated region body
PF: predicated region fallthrough
CT: control target
= control target key end

     0   :  { %s7242_s0 = inlined_call_operand.vmem [shape: f32[2,3,256], index: 0, kind: input, shape index: {}]   ;;  %s7243_s1 = inlined_call_operand.vmem [shape: f32[2,16,256], index: 1, kind: input, shape index: {}]   ;;  %s7244_s2 = inlined_call_operand.vmem [shape: f32[2,256,1], index: 2, kind: input, shape index: {}]   ;;  %s7245_s3 = inlined_call_operand.hbm [shape: f32[2,16,16], index: 3, kind: input, shape index: {}]   ;;  %s7246_s4 = inlined_call_operand.hbm [shape: f32[1104,128], index: 4, kind: input, shape index: {}]   ;;  %s7247_s5 = inlined_call_operand.vmem [shape: f32[512,256], index: 5, kind: input, shape index: {}]   ;;  %s7248_s6 = inlined_call_operand.hbm [shape: f32[16,512], index: 6, kind: input, shape index: {}]   ;;  %s7249_s7 = inlined_call_operand.vmem [shape: f32[512,7], index: 7, kind: input, shape index: {}]   ;;  %s7250_s8 = inlined_call_operand.hbm [shape: f32[2,16,256], index: 8, kind: output, shape index: {}]  }
   0x1   :  { %7269 = sst [smem:[#allocation86_spill]] %s7242_s0 }
   0x2   :  { %7270 = sst [smem:[#allocation87_spill]] %s7246_s4 }
   0x3   :  { %7271 = sst [smem:[#allocation88_spill]] %s7247_s5 }
   0x4   :  { %7272 = sst [smem:[#allocation89_spill]] %s7249_s7 }
   0x5   :  { %7273 = sst [smem:[#allocation90_spill]] %s7250_s8 }
   0x6   :  { %13 = vsyncpa [#allocation4], 0 }
   0x7   :  { %15 = vsyncpa [#allocation4 + $0x1], 0 }
   0x8   :  { %16 = vsyncpa [#allocation7], 0 }
   0x9   :  { %17 = vsyncpa [#allocation5], 0 }
   0xa   :  { %19 = vsyncpa [#allocation5 + $0x1], 0  ;;  %s5406_s27 = smov 0   ;;  %s5408_s28 = smov 0  }
   0xb   :  { %s5410_s29 = smov 0   ;;  %s5412_s30 = smov 0  }
   0xc   :  { %s5414_s9 = smov 0   ;;  %s5416_s10 = smov 0  }
   0xd   :  { %s5418_s11 = smov 0   ;;  %s5420_s12 = smov 0  }
   0xe   :  { %s5422_s13 = smov 0   ;;  %s5424_s14 = smov 0  }
   0xf   :  { %s5426_s15 = smov 0  }
  0x10 LB: > { %7274 = sst [smem:[#allocation13_spill]] %s5298_s27  ;;  %s4007_s16 = sadd.s32 4294967295, %s5338_s15   ;;  %s5338_s15 = sphi %s5426_s15, %s25_s15   ;;  %s5334_s14 = sphi %s5424_s14, %s7471_s14   ;;  %s5330_s13 = sphi %s5422_s13, %s7470_s13   ;;  %s5326_s12 = sphi %s5420_s12, %s7469_s12   ;;  %s5322_s11 = sphi %s5418_s11, %s7468_s11   ;;  %s5318_s10 = sphi %s5416_s10, %s7467_s10   ;;  %s5314_s9 = sphi %s5414_s9, %s7466_s9   ;;  %s5310_s30 = sphi %s5412_s30, %s7465_s30   ;;  %s5306_s29 = sphi %s5410_s29, %s7464_s29   ;;  %s5302_s28 = sphi %s5408_s28, %s7463_s28   ;;  %s5298_s27 = sphi %s5406_s27, %s7462_s27  }
  0x11   : > { %s4008_s17 = sadd.s32 4294967294, %s5338_s15   ;;  %s34_s18 = sadd.s32 1, %s5330_s13 }
  0x12   : > { %s37_s19 = sadd.s32 1, %s5334_s14  ;;  %p35_p0 = scmp.ge.s32.totalorder %s34_s18, 2 }
  0x13   : > { %s74_s20 = sadd.s32 1, %s5318_s10  ;;  %p81_p1 = scmp.ne.s32.totalorder %s5318_s10, %s5314_s9 }
  0x14   : > { %p82_p2 = scmp.eq.s32.totalorder %s5338_s15, 0  ;;  %s7473_s18 = smov (%p35_p0, %s34_s18), 0 }
  0x15   : > { %7275 = sst [smem:[#allocation14_spill]] %s7473_s18  ;;  %s7475_s19 = smov (!%p35_p0, %s37_s19), %s5334_s14 }
  0x16   : > { %s70_s21 = ssub.s32 %s5330_s13, %s7473_s18  ;;  %p5477_p3 = por %p82_p2, %p81_p1 }
  0x17   : > { %p39_p4 = scmp.ge.s32.totalorder %s7475_s19, 2  ;;  %s126_s23 = sadd.s32 1, %s5310_s30 }
  0x18   : > { %p133_p5 = scmp.ne.s32.totalorder %s5310_s30, %s5306_s29  ;;  %p139_p6 = scmp.ne.s32.totalorder %s5306_s29, %s5302_s28 }
  0x19   : > { %s7477_s19 = smov (%p39_p4, %s7475_s19), 0  ;;  %p5492_p8 = scmp.eq.s32.totalorder %s4007_s16, 0 }
  0x1a   : > { %7277 = sst [smem:[#allocation15_spill]] %s7477_s19  ;;  %p5488_p7 = por %p133_p5, %p82_p2 }
  0x1b   : > { %s7279_s25 = scalar_select %p5492_p8, 1, 0 }
  0x1c   : > { %s7278_s24 = scalar_select %p5488_p7, 1, 0 }
  0x1d   : > { %s69_s26 = ssub.s32 %s5334_s14, %s7477_s19  ;;  %p249_p9 = scmp.eq.s32.totalorder %s4007_s16, 3 }
  0x1e   : > { %s71_s18 = sor.u32 %s70_s21, %s69_s26  ;;  %p124_p10 = scmp.eq.s32.totalorder %s69_s26, 0 }
  0x1f   : > { %p72_p11 = scmp.eq.s32.totalorder %s71_s18, 0  ;;  %p5500_p12 = por %p5492_p8, %p139_p6 }
  0x20   : > { %s5505_s8 = scalar_select %p124_p10, %s5310_s30, %s126_s23  }
  0x21   : > { %s7280_s28 = scalar_select %p5500_p12, 1, 0 }
  0x22   : > { %7281 = sst [smem:[#allocation16_spill]] %s5505_s8  ;;  %p5513_p13 = por %p249_p9, %p81_p1 }
  0x23   : > { %s5508_s5 = scalar_select %p72_p11, %s5318_s10, %s74_s20  }
  0x24   : > { %s7283_s7 = scalar_select %p5513_p13, 1, 0 }
  0x25   : > { %7282 = sst [smem:[#allocation17_spill]] %s5508_s5  ;;  %p254_p0 = scmp.ne.s32.totalorder %s5314_s9, %s5298_s27 }
  0x26   : > { %7284 = sst [smem:[#allocation18_spill]] %s7283_s7  ;;  %p255_p2 = scmp.eq.s32.totalorder %s4008_s17, 3 }
  0x27   : > { %p4009_p4 = scmp.ge.s32.totalorder %s5338_s15, 1  ;;  %p262_p5 = scmp.lt.s32.totalorder %s5338_s15, 5 }
  0x28   : > { %p5521_p7 = por %p255_p2, %p254_p0  ;;  %s5340_s20 = smov [#allocation6]  }
  0x29   : > { %p5525_p6 = pnand %p4009_p4, %p262_p5  ;;  %s274_s21 = sshll.u32 %s5340_s20, 4  ;;  %s275_s21 = int_to_ptr.vmem [resolvable:$true] %s274_s21 }
  0x2a   : > { %s7285_s16 = scalar_select %p5521_p7, 1, 0 }
  0x2b   : > { %p4730_p1 = pneg %p5525_p6  ;;  %s5341_s17 = smov [#allocation8]  }
  0x2c   : > { %7286 = sst [smem:[#allocation19_spill]] %s7285_s16  ;;  %s290_s26 = sshll.u32 %s5341_s17, 4  ;;  %s291_s26 = int_to_ptr.vmem [resolvable:$true] %s290_s26 }
  0x2d   : > { %p5533_p9 = pnand %p4730_p1, %p5492_p8  ;;  %s5147_s19 = scalar_lea.vmem %s275_s21, 17664 }
  0x2e   : > { %p5148_p11 = scmp.ne.s32.totalorder %s275_s21, %s5147_s19  ;;  %p5155_p4 = scmp.lt.s32.totalorder %s275_s21, %s275_s21 }
  0x2f   : > { %p5138_p10 = pneg %p5533_p9  ;;  %p5156_p5 = scmp.lt.s32.totalorder %s5147_s19, %s5147_s19 }
  0x31   : > { %p5150_p0 = pnand %p5148_p11, %p5138_p10  ;;  %p5157_p7 = por %p5156_p5, %p5155_p4 }
  0x33   : > { %p5151_p2 = pneg %p5150_p0 }
  0x35   : > { %p5158_p1 = pnand %p5157_p7, %p5151_p2 }
  0x37   : > { %5161 = shalt.err (!%p5158_p1)
}
  0x38   : > { %s5342_s20 = smov 128   ;;  %s5343_s5 = smov 8  }
  0x39   : > { %s7289_s4 = sld [smem:[#allocation87_spill]]  ;;  %s5173_s16 = scalar_lea.vmem %s291_s26, 1024 }
  0x3a   : > { %p5174_p13 = scmp.ne.s32.totalorder %s291_s26, %s5173_s16  ;;  %p5181_p8 = scmp.lt.s32.totalorder %s291_s26, %s291_s26 }
  0x3b   : > { %p5182_p12 = scmp.lt.s32.totalorder %s5173_s16, %s5173_s16 }
  0x3c   : > { %p5176_p11 = pnand %p5174_p13, %p5138_p10 }
  0x3d   : > { %p5183_p4 = por %p5182_p12, %p5181_p8 }
  0x3e   : > { %p5177_p0 = pneg %p5176_p11 }
  0x3f   : > { %4733 = dma.hbm_to_vmem [thread:$0]  (!%p5533_p9), %s7289_s4, 17664, %s275_s21, [#allocation7], %s5342_s20, %s5342_s20, %s5343_s5  }
  0x40   : > { %p5184_p7 = pnand %p5183_p4, %p5177_p0 }
  0x42   : > { %5187 = shalt.err (!%p5184_p7)
}
  0x43   : > { %s5344_s19 = smov 512   ;;  %s5345_s27 = smov 32  }
  0x44   : > { %4736 = dma.hbm_to_vmem [thread:$0]  (!%p5533_p9), %s7248_s6, 1024, %s291_s26, [#allocation7], %s5344_s19, %s5344_s19, %s5345_s27  }
  0x45   : > { %p4012_p2 = scmp.ge.s32.totalorder %s5338_s15, 4 }
  0x47   : > { %303 = sbr.rel (%p4012_p2) target bundleno = 99 (0x63), region = 32 }
  0x4c   : > { %317 = sbr.rel (!%p5477_p3) target bundleno = 83 (0x53), region = 40  ;;  %s319_s5 = sand.u32 (%p5477_p3), 1, %s5318_s10  }
  0x4d   : > { %s4014_s8 = sshll.u32 (%p5477_p3), %s5334_s14, 2  ;;  %s4013_s16 = sshll.u32 (%p5477_p3), %s319_s5, 4 }
  0x4e   : > { %s323_s21 = sadd.s32 (%p5477_p3), %s5330_s13, %s4014_s8  ;;  %s321_s0 = scalar_lea.vmem (%p5477_p3), [#allocation2], %s4013_s16 }
  0x4f   : > { %s4015_s20 = sshll.u32 (%p5477_p3), %s323_s21, 3 }
  0x50   : > { %s325_s4 = scalar_lea.vmem (%p5477_p3), %s7243_s1, %s4015_s20 }
  0x51   : > { %v356_v0 = vld [vmem:[%s325_s4] sm:$0xff]  ;;  %v358_v1 = vld [vmem:[%s325_s4 + $0x10] sm:$0xff] }
  0x52   : > { %357 = vst [vmem:[%s321_s0] sm:$0xff] %v356_v0  ;;  %359 = vst [vmem:[%s321_s0 + $0x8] sm:$0xff] %v358_v1 }
  0x53 PF: > { %s374_s7 = sand.u32 1, %s5310_s30   ;;  %s4079_s27 = sshll.u32 %s5334_s14, 8 }
  0x54   : > { %s4016_s22 = sshll.u32 %s374_s7, 4  ;;  %s384_s5 = scalar_lea.hbm %s7245_s3, %s4079_s27 }
  0x55   : > { %s378_s8 = scalar_lea.vmem [#allocation3], %s4016_s22  ;;  %s375_s20 = scalar_lea.sflag [#allocation4], %s374_s7 }
  0x56   : > { %s385_s21 = sshll.u32 %s378_s8, 4  ;;  %p7290_p8 = scmp.ne.s32.totalorder %s7278_s24, 0  ;;  %s386_s21 = int_to_ptr.vmem [resolvable:$true] %s385_s21 }
  0x57   : > { %s5200_s17 = scalar_lea.vmem %s386_s21, 256  ;;  %s5346_s4 = smov [#allocation3]  }
  0x58   : > { %p5201_p3 = scmp.ne.s32.totalorder %s386_s21, %s5200_s17  ;;  %s5204_s16 = sshll.u32 %s5346_s4, 4  ;;  %s5205_s16 = int_to_ptr.vmem [resolvable:$false] %s5204_s16 }
  0x59   : > { %s5206_s23 = scalar_lea.vmem %s5205_s16, 512  ;;  %p5207_p9 = scmp.lt.s32.totalorder %s386_s21, %s5205_s16 }
  0x5a   : > { %p5202_p12 = pnand %p5201_p3, %p7290_p8  ;;  %p5208_p10 = scmp.lt.s32.totalorder %s5206_s23, %s5200_s17 }
  0x5c   : > { %p5203_p13 = pneg %p5202_p12  ;;  %p5209_p5 = por %p5208_p10, %p5207_p9 }
  0x5e   : > { %p5210_p1 = pnand %p5209_p5, %p5203_p13 }
  0x60   : > { %5213 = shalt.err (!%p5210_p1)
}
  0x61   : > { %s5347_s0 = smov 128   ;;  %s5348_s27 = smov 8  }
  0x62   : > { %4722 = dma.hbm_to_vmem [thread:$0]  (%p7290_p8), %s384_s5, 256, %s386_s21, %s375_s20, %s5347_s0, %s5347_s0, %s5348_s27  }
  0x63 PF: > { %397 = sbr.rel (%p5525_p6) target bundleno = 2488 (0x9b8), region = 86 }
  0x68   : > { %s400_s7 = sand.u32 1, %s5314_s9   ;;  %s406_s22 = sand.u32 1, %s5306_s29  }
  0x69   : > { %s5579_s26 = sshll.u32 %s400_s7, 4  ;;  %s5581_s19 = sshll.u32 %s406_s22, 4 }
  0x6a   : > { %s5584_s8 = scalar_lea.vmem [#allocation2], %s5579_s26  ;;  %s407_s24 = scalar_lea.sflag [#allocation4], %s406_s22 }
  0x6b   : > { %s410_s5 = scalar_lea.vmem [#allocation3], %s5581_s19  ;;  %p7291_p11 = scmp.ne.s32.totalorder %s7280_s28, 0 }
  0x6d   : > { %5285 = dma.done.wait (%p7291_p11), %s407_s24, 256  }
  0x6e   : > { %5287 = vsyncadd (%p7291_p11), %s407_s24, 4294967040  ;;  %p7292_p6 = scmp.ne.s32.totalorder %s7279_s25, 0 }
  0x70   : > { %5289 = dma.done.wait (%p7292_p6), [#allocation7], 18688  }
  0x71   : > { %5291 = vsyncadd (%p7292_p6), [#allocation7], 4294948608  ;;  %p468_p0 = scmp.lt.s32.totalorder %s5326_s12, 1  ;;  %p470_p4 = scmp.lt.s32.totalorder %s5322_s11, 1  ;;  %v5349_v2 = vmov 0   ;;  %vm583_vm0 = vcmask 1042432  }
  0x72   : > { %4854 = vset.pattern.permute.xlu1 %v5349_v2  ;;  %4853 = vset.pattern.permute.xlu0 %v5349_v2  ;;  %vm534_vm1 = vcmask 23552   ;;  %s7293_s22 = sld [smem:[#allocation86_spill]]  ;;  %v518_v5 = vld [vmem:[#allocation6] sm:$0xff]  ;;  %v519_v7 = vld [vmem:[#allocation6 + $0x8] sm:$0xff]  ;;  %v520_v10 = vld [vmem:[#allocation6 + $0x10] sm:$0xff]  ;;  %vm1341_vm2 = vcmask 130048  }
  0x73   : > { %s469_s18 = scalar_select %p468_p0, %s5326_s12, 1  ;;  %4348 = vmatprep.mubr.msk.f32.mxu0 %vm534_vm1, %v518_v5  ;;  %v521_v11 = vld [vmem:[#allocation6 + $0x18] sm:$0xff]  ;;  %v522_v14 = vld [vmem:[#allocation6 + $0x20] sm:$0xff]  ;;  %v523_v15 = vld [vmem:[#allocation6 + $0x28] sm:$0xff]  ;;  %vm3456_vm3 = vcmask 261120  }
  0x74   : > { %s471_s21 = scalar_select %p470_p4, %s5322_s11, 1  ;;  %v524_v18 = vld [vmem:[#allocation6 + $0x30] sm:$0xff]  ;;  %v483_v19 = vld [vmem:[%s5584_s8 + $0x8] sm:$0xff]  ;;  %v526_v24 = vld [vmem:[#allocation6 + $0x40] sm:$0xff] }
  0x75   : > { %s4080_s20 = sshll.u32 %s469_s18, 8  ;;  %s4025_s28 = sshll.u32 %s469_s18, 1  ;;  %v482_v20 = vld [vmem:[%s5584_s8] sm:$0xff]  ;;  %v525_v21 = vld [vmem:[#allocation6 + $0x38] sm:$0xff]  ;;  %v527_v25 = vld [vmem:[#allocation6 + $0x48] sm:$0xff] }
  0x76   : > { %s5602_s16 = scalar_lea.vmem %s7244_s2, %s4080_s20  ;;  %s473_s25 = sadd.s32 %s4025_s28, %s471_s21  ;;  %v528_v28 = vld [vmem:[#allocation6 + $0x50] sm:$0xff]  ;;  %v529_v29 = vld [vmem:[#allocation6 + $0x58] sm:$0xff]  ;;  %v530_v32 = vld [vmem:[#allocation6 + $0x60] sm:$0xff] }
  0x77   : > { %s4026_s23 = sshll.u32 %s473_s25, 2  ;;  %v499_v3 = vld [vmem:[%s5602_s16 + $0x78] sm:$0xff]  ;;  %v497_v4 = vld [vmem:[%s5602_s16 + $0x68] sm:$0xff]  ;;  %v498_v8 = vld [vmem:[%s5602_s16 + $0x70] sm:$0xff]  ;;  %s7294_s20 = sld [smem:[#allocation89_spill]] }
  0x78   : > { %s475_s24 = scalar_lea.vmem %s7293_s22, %s4026_s23  ;;  %809 = vperm.xlu0 %4853, %v499_v3   ;;  %799 = vperm.xlu1 %4854, %v497_v4   ;;  %v496_v9 = vld [vmem:[%s5602_s16 + $0x60] sm:$0xff]  ;;  %v495_v12 = vld [vmem:[%s5602_s16 + $0x58] sm:$0xff]  ;;  %v494_v13 = vld [vmem:[%s5602_s16 + $0x50] sm:$0xff]  ;;  %s467_s4 = scalar_lea.vmem [#allocation9], %s5579_s26 }
  0x79   : > { %v481_v6 = vld [vmem:[%s475_s24] sm:$0x7]  ;;  %v493_v16 = vld [vmem:[%s5602_s16 + $0x48] sm:$0xff]  ;;  %v491_v22 = vld [vmem:[%s5602_s16 + $0x38] sm:$0xff]  ;;  %s7300_s24 = sld [smem:[#allocation88_spill]]  ;;  %s3852_s23 = sshll.u32 %s467_s4, 4  ;;  %s7173_s23 = int_to_ptr.vmem [resolvable:$true] %s3852_s23 }
  0x7a   : > { %4346 = vmatprep.subr.msk.mxu0 %vm583_vm0, %v481_v6  ;;  %v492_v17 = vld [vmem:[%s5602_s16 + $0x40] sm:$0xff]  ;;  %v490_v23 = vld [vmem:[%s5602_s16 + $0x30] sm:$0xff]  ;;  %v489_v26 = vld [vmem:[%s5602_s16 + $0x28] sm:$0xff]  ;;  %s7452_s25 = sld [smem:[#allocation18_spill]]  ;;  %s5357_s26 = smov [#allocation9]  }
  0x7b   : > { %4347 = vmatpush3.msk.msra.mxu0 %vm583_vm0, %v481_v6  ;;  %v488_v27 = vld [vmem:[%s5602_s16 + $0x20] sm:$0xff]  ;;  %v487_v30 = vld [vmem:[%s5602_s16 + $0x18] sm:$0xff]  ;;  %v486_v31 = vld [vmem:[%s5602_s16 + $0x10] sm:$0xff]  ;;  %s7453_s22 = sld [smem:[#allocation90_spill]]  ;;  %s5218_s21 = sshll.u32 %s5357_s26, 4  ;;  %s5219_s21 = int_to_ptr.vmem [resolvable:$false] %s5218_s21 }
  0x7c   : > { %4349 = vmatmul.mubr.msk.f32.vlgmr.msra.gmra.mxu0 %vm534_vm1, %v519_v7  ;;  %804 = vperm.xlu0 %4853, %v498_v8   ;;  %v531_v33 = vld [vmem:[#allocation6 + $0x68] sm:$0xff]  ;;  %v484_v35 = vld [vmem:[%s5602_s16] sm:$0xff]  ;;  %v532_v36 = vld [vmem:[#allocation6 + $0x70] sm:$0xff]  ;;  %s5220_s28 = scalar_lea.vmem %s5219_s21, 512  ;;  %p5221_p12 = scmp.lt.s32.totalorder %s7173_s23, %s5219_s21 }
  0x7d   : > { %794 = vperm.xlu1 %4854, %v496_v9   ;;  %4351 = vmatprep.mubr.msk.f32.mxu0 %vm534_vm1, %v520_v10  ;;  %v485_v34 = vld [vmem:[%s5602_s16 + $0x8] sm:$0xff]  ;;  %v533_v37 = vld [vmem:[#allocation6 + $0x78] sm:$0xff]  ;;  %v890_v39 = vld [vmem:[%s7294_s20 + $0x70] sm:$0xff] }
  0x7e   : > { %4452 = vmatprep.subr.mxu0 %v483_v19  ;;  %v891_v38 = vld [vmem:[%s7294_s20 + $0x78] sm:$0xff]  ;;  %v1325_v40 = vld [vmem:[#allocation6 + $0x180] sm:$0xff]  ;;  %v1326_v41 = vld [vmem:[#allocation6 + $0x188] sm:$0xff] }
  0x7f   : > { %4453 = vmatpush3.msra.mxu0 %v483_v19  ;;  %v889_v42 = vld [vmem:[%s7294_s20 + $0x68] sm:$0xff]  ;;  %v888_v43 = vld [vmem:[%s7294_s20 + $0x60] sm:$0xff]  ;;  %v1327_v44 = vld [vmem:[#allocation6 + $0x190] sm:$0xff] }
  0x80   : > { %4352 = vmatmul.mubr.msk.f32.gmra.mxu0 %vm534_vm1, %v521_v11  ;;  %789 = vperm.xlu0 %4853, %v495_v12   ;;  %v1328_v45 = vld [vmem:[#allocation6 + $0x198] sm:$0xff]  ;;  %v886_v47 = vld [vmem:[%s7294_s20 + $0x50] sm:$0xff]  ;;  %v1329_v48 = vld [vmem:[#allocation6 + $0x1a0] sm:$0xff]  ;;  %p7454_p2 = scmp.ne.s32.totalorder %s7452_s25, 0 }
  0x81   : > { %784 = vperm.xlu1 %4854, %v494_v13   ;;  %4354 = vmatprep.mubr.msk.f32.mxu0 %vm534_vm1, %v522_v14  ;;  %v887_v46 = vld [vmem:[%s7294_s20 + $0x58] sm:$0xff]  ;;  %v1330_v49 = vld [vmem:[#allocation6 + $0x1a8] sm:$0xff]  ;;  %v884_v51 = vld [vmem:[%s7294_s20 + $0x40] sm:$0xff] }
  0x82   : > { %4454 = vmatprep.subr.mxu0 %v482_v20  ;;  %v885_v50 = vld [vmem:[%s7294_s20 + $0x48] sm:$0xff]  ;;  %v1331_v52 = vld [vmem:[#allocation6 + $0x1b0] sm:$0xff]  ;;  %v1332_v53 = vld [vmem:[#allocation6 + $0x1b8] sm:$0xff] }
  0x83   : > { %4455 = vmatpush3.msra.mxu0 %v482_v20  ;;  %v883_v54 = vld [vmem:[%s7294_s20 + $0x38] sm:$0xff]  ;;  %v882_v55 = vld [vmem:[%s7294_s20 + $0x30] sm:$0xff]  ;;  %v1333_v56 = vld [vmem:[#allocation6 + $0x1c0] sm:$0xff] }
  0x84   : > { %4355 = vmatmul.mubr.msk.f32.gmra.mxu0 %vm534_vm1, %v523_v15  ;;  %779 = vperm.xlu0 %4853, %v493_v16   ;;  %v1334_v57 = vld [vmem:[#allocation6 + $0x1c8] sm:$0xff]  ;;  %v880_v59 = vld [vmem:[%s7294_s20 + $0x20] sm:$0xff]  ;;  %v1335_v60 = vld [vmem:[#allocation6 + $0x1d0] sm:$0xff] }
  0x85   : > { %774 = vperm.xlu1 %4854, %v492_v17   ;;  %4357 = vmatprep.mubr.msk.f32.mxu0 %vm534_vm1, %v524_v18  ;;  %v881_v58 = vld [vmem:[%s7294_s20 + $0x28] sm:$0xff]  ;;  %v1336_v61 = vld [vmem:[#allocation6 + $0x1d8] sm:$0xff]  ;;  %v878_v63 = vld [vmem:[%s7294_s20 + $0x10] sm:$0xff] }
  0x86   : > { %v879_v62 = vld [vmem:[%s7294_s20 + $0x18] sm:$0xff]  ;;  %v1337_v0 = vld [vmem:[#allocation6 + $0x1e0] sm:$0xff]  ;;  %v1338_v1 = vld [vmem:[#allocation6 + $0x1e8] sm:$0xff] }
  0x87   : > { %v877_v2 = vld [vmem:[%s7294_s20 + $0x8] sm:$0xff]  ;;  %v876_v3 = vld [vmem:[%s7294_s20] sm:$0xff]  ;;  %v1339_v4 = vld [vmem:[#allocation6 + $0x1f0] sm:$0xff] }
  0x88   : > { %4358 = vmatmul.mubr.msk.f32.gmra.mxu0 %vm534_vm1, %v525_v21  ;;  %769 = vperm.xlu0 %4853, %v491_v22   ;;  %v1340_v5 = vld [vmem:[#allocation6 + $0x1f8] sm:$0xff]  ;;  %v906_v7 = vld [vmem:[%s7294_s20 + $0xf0] sm:$0xff]  ;;  %v905_v8 = vld [vmem:[%s7294_s20 + $0xe8] sm:$0xff] }
  0x89   : > { %764 = vperm.xlu1 %4854, %v490_v23   ;;  %4360 = vmatprep.mubr.msk.f32.mxu0 %vm534_vm1, %v526_v24  ;;  %v907_v6 = vld [vmem:[%s7294_s20 + $0xf8] sm:$0xff]  ;;  %v904_v9 = vld [vmem:[%s7294_s20 + $0xe0] sm:$0xff]  ;;  %v902_v11 = vld [vmem:[%s7294_s20 + $0xd0] sm:$0xff] }
  0x8a   : > { %v903_v10 = vld [vmem:[%s7294_s20 + $0xd8] sm:$0xff]  ;;  %v901_v12 = vld [vmem:[%s7294_s20 + $0xc8] sm:$0xff]  ;;  %v900_v13 = vld [vmem:[%s7294_s20 + $0xc0] sm:$0xff] }
  0x8b   : > { %v899_v14 = vld [vmem:[%s7294_s20 + $0xb8] sm:$0xff]  ;;  %v898_v15 = vld [vmem:[%s7294_s20 + $0xb0] sm:$0xff]  ;;  %v897_v17 = vld [vmem:[%s7294_s20 + $0xa8] sm:$0xff] }
  0x8c   : > { %4361 = vmatmul.mubr.msk.f32.gmra.mxu0 %vm534_vm1, %v527_v25  ;;  %759 = vperm.xlu0 %4853, %v489_v26   ;;  %v515_v16 = vld [vmem:[%s5602_s16 + $0xf8] sm:$0xff]  ;;  %v514_v18 = vld [vmem:[%s5602_s16 + $0xf0] sm:$0xff]  ;;  %v896_v19 = vld [vmem:[%s7294_s20 + $0xa0] sm:$0xff] }
  0x8d   : > { %754 = vperm.xlu1 %4854, %v488_v27   ;;  %4363 = vmatprep.mubr.msk.f32.mxu0 %vm534_vm1, %v528_v28  ;;  %v513_v20 = vld [vmem:[%s5602_s16 + $0xe8] sm:$0xff]  ;;  %v895_v21 = vld [vmem:[%s7294_s20 + $0x98] sm:$0xff]  ;;  %v512_v22 = vld [vmem:[%s5602_s16 + $0xe0] sm:$0xff] }
  0x8e   : > { %v894_v23 = vld [vmem:[%s7294_s20 + $0x90] sm:$0xff]  ;;  %v511_v24 = vld [vmem:[%s5602_s16 + $0xd8] sm:$0xff]  ;;  %v893_v25 = vld [vmem:[%s7294_s20 + $0x88] sm:$0xff] }
  0x8f   : > { %v510_v26 = vld [vmem:[%s5602_s16 + $0xd0] sm:$0xff]  ;;  %v892_v27 = vld [vmem:[%s7294_s20 + $0x80] sm:$0xff]  ;;  %v509_v28 = vld [vmem:[%s5602_s16 + $0xc8] sm:$0xff] }
  0x90   : > { %4364 = vmatmul.mubr.msk.f32.gmra.mxu0 %vm534_vm1, %v529_v29  ;;  %749 = vperm.xlu0 %4853, %v487_v30   ;;  %v508_v29 = vld [vmem:[%s5602_s16 + $0xc0] sm:$0xff]  ;;  %v507_v30 = vld [vmem:[%s5602_s16 + $0xb8] sm:$0xff] }
  0x91   : > { %744 = vperm.xlu1 %4854, %v486_v31   ;;  %4366 = vmatprep.mubr.msk.f32.mxu0 %vm534_vm1, %v530_v32  ;;  %v506_v31 = vld [vmem:[%s5602_s16 + $0xb0] sm:$0xff]  ;;  %v505_v32 = vld [vmem:[%s5602_s16 + $0xa8] sm:$0xff] }
  0x94   : > { %4367 = vmatmul.mubr.msk.f32.gmra.mxu0 %vm534_vm1, %v531_v33  ;;  %739 = vperm.xlu0 %4853, %v485_v34   ;;  %v504_v33 = vld [vmem:[%s5602_s16 + $0xa0] sm:$0xff]  ;;  %v503_v34 = vld [vmem:[%s5602_s16 + $0x98] sm:$0xff] }
  0x95   : > { %734 = vperm.xlu1 %4854, %v484_v35   ;;  %4369 = vmatprep.mubr.msk.f32.mxu0 %vm534_vm1, %v532_v36  ;;  %v502_v35 = vld [vmem:[%s5602_s16 + $0x90] sm:$0xff]  ;;  %v501_v36 = vld [vmem:[%s5602_s16 + $0x88] sm:$0xff] }
  0x98   : > { %4370 = vmatmul.mubr.msk.f32.gmra.mxu0 %vm534_vm1, %v533_v37  ;;  %985 = vperm.xlu0 %4853, %v891_v38   ;;  %v500_v37 = vld [vmem:[%s5602_s16 + $0x80] sm:$0xff] }
  0x99   : > { %980 = vperm.xlu1 %4854, %v890_v39   ;;  %4456 = vmatprep.mubr.msk.f32.mxu0 %vm1341_vm2, %v1325_v40 }
  0x9c   : > { %4457 = vmatmul.mubr.msk.f32.vlgmr.msra.gmra.mxu0 %vm1341_vm2, %v1326_v41  ;;  %975 = vperm.xlu0 %4853, %v889_v42  }
  0x9d   : > { %970 = vperm.xlu1 %4854, %v888_v43   ;;  %4459 = vmatprep.mubr.msk.f32.mxu0 %vm1341_vm2, %v1327_v44 }
  0xa0   : > { %4460 = vmatmul.mubr.msk.f32.gmra.mxu0 %vm1341_vm2, %v1328_v45  ;;  %965 = vperm.xlu0 %4853, %v887_v46  }
  0xa1   : > { %960 = vperm.xlu1 %4854, %v886_v47   ;;  %4462 = vmatprep.mubr.msk.f32.mxu0 %vm1341_vm2, %v1329_v48 }
  0xa4   : > { %4463 = vmatmul.mubr.msk.f32.gmra.mxu0 %vm1341_vm2, %v1330_v49  ;;  %955 = vperm.xlu0 %4853, %v885_v50   ;;  %v844_v50 = vld [vmem:[#allocation6 + $0x80] sm:$0xff] }
  0xa5   : > { %950 = vperm.xlu1 %4854, %v884_v51   ;;  %4465 = vmatprep.mubr.msk.f32.mxu0 %vm1341_vm2, %v1331_v52 }
  0xa6   : > { %4404 = vmatprep.mubr.f32.mxu1 %v844_v50 }
  0xa8   : > { %4466 = vmatmul.mubr.msk.f32.gmra.mxu0 %vm1341_vm2, %v1332_v53  ;;  %945 = vperm.xlu0 %4853, %v883_v54  }
  0xa9   : > { %940 = vperm.xlu1 %4854, %v882_v55   ;;  %4468 = vmatprep.mubr.msk.f32.mxu0 %vm1341_vm2, %v1333_v56 }
  0xac   : > { %4469 = vmatmul.mubr.msk.f32.gmra.mxu0 %vm1341_vm2, %v1334_v57  ;;  %935 = vperm.xlu0 %4853, %v881_v58  }
  0xad   : > { %930 = vperm.xlu1 %4854, %v880_v59   ;;  %4471 = vmatprep.mubr.msk.f32.mxu0 %vm1341_vm2, %v1335_v60 }
  0xb0   : > { %4472 = vmatmul.mubr.msk.f32.gmra.mxu0 %vm1341_vm2, %v1336_v61  ;;  %925 = vperm.xlu0 %4853, %v879_v62  }
  0xb1   : > { %920 = vperm.xlu1 %4854, %v878_v63   ;;  %4474 = vmatprep.mubr.msk.f32.mxu0 %vm1341_vm2, %v1337_v0 }
  0xb4   : > { %4475 = vmatmul.mubr.msk.f32.gmra.mxu0 %vm1341_vm2, %v1338_v1  ;;  %915 = vperm.xlu0 %4853, %v877_v2  }
  0xb5   : > { %910 = vperm.xlu1 %4854, %v876_v3   ;;  %4477 = vmatprep.mubr.msk.f32.mxu0 %vm1341_vm2, %v1339_v4 }
  0xb8   : > { %4478 = vmatmul.mubr.msk.f32.gmra.mxu0 %vm1341_vm2, %v1340_v5  ;;  %1065 = vperm.xlu0 %4853, %v907_v6  }
  0xb9   : > { %1060 = vperm.xlu1 %4854, %v906_v7  }
  0xbc   : > { %1055 = vperm.xlu0 %4853, %v905_v8  }
  0xbd   : > { %1050 = vperm.xlu1 %4854, %v904_v9  }
  0xc0   : > { %1045 = vperm.xlu0 %4853, %v903_v10  }
  0xc1   : > { %1040 = vperm.xlu1 %4854, %v902_v11  }
  0xc4   : > { %1035 = vperm.xlu0 %4853, %v901_v12  }
  0xc5   : > { %1030 = vperm.xlu1 %4854, %v900_v13  }
  0xc8   : > { %1025 = vperm.xlu0 %4853, %v899_v14  }
  0xc9   : > { %1020 = vperm.xlu1 %4854, %v898_v15  }
  0xcc   : > { %1612 = vperm.xlu0 %4853, %v515_v16  }
  0xcd   : > { %1015 = vperm.xlu1 %4854, %v897_v17  }
  0xd0   : > { %1607 = vperm.xlu0 %4853, %v514_v18   ;;  %v1775_v18 = vld [vmem:[#allocation6 + $0x200] sm:$0xff] }
  0xd1   : > { %1010 = vperm.xlu1 %4854, %v896_v19   ;;  %4512 = vmatprep.mubr.f32.mxu0 %v1775_v18 }
  0xd4   : > { %1602 = vperm.xlu0 %4853, %v513_v20  }
  0xd5   : > { %1005 = vperm.xlu1 %4854, %v895_v21  }
  0xd8   : > { %1597 = vperm.xlu0 %4853, %v512_v22  }
  0xd9   : > { %1000 = vperm.xlu1 %4854, %v894_v23  }
  0xdc   : > { %1592 = vperm.xlu0 %4853, %v511_v24  }
  0xdd   : > { %995 = vperm.xlu1 %4854, %v893_v25  }
  0xe0   : > { %1587 = vperm.xlu0 %4853, %v510_v26  }
  0xe1   : > { %990 = vperm.xlu1 %4854, %v892_v27  }
  0xe4   : > { %1582 = vperm.xlu0 %4853, %v509_v28  }
  0xe5   : > { %1577 = vperm.xlu1 %4854, %v508_v29  }
  0xe8   : > { %1572 = vperm.xlu0 %4853, %v507_v30  }
  0xe9   : > { %1567 = vperm.xlu1 %4854, %v506_v31  }
  0xec   : > { %1562 = vperm.xlu0 %4853, %v505_v32  }
  0xed   : > { %1557 = vperm.xlu1 %4854, %v504_v33  }
  0xf0   : > { %1552 = vperm.xlu0 %4853, %v503_v34  }
  0xf1   : > { %1547 = vperm.xlu1 %4854, %v502_v35  }
  0xf3   : > { %v5769_v38 = vpop.permute.xlu0 %809  ;;  %v5771_v39 = vpop.permute.xlu1 %799 }
  0xf4   : > { %1542 = vperm.xlu0 %4853, %v501_v36  }
  0xf5   : > { %1537 = vperm.xlu1 %4854, %v500_v37  }
  0xf7   : > { %v5773_v40 = vpop.permute.xlu0 %804 }
  0xf8   : > { %v5775_v41 = vpop.permute.xlu1 %794 }
  0xfb   : > { %v5777_v42 = vpop.permute.xlu0 %789 }
  0xfc   : > { %v5779_v43 = vpop.permute.xlu1 %784 }
  0xff   : > { %v5781_v44 = vpop.permute.xlu0 %779 }
 0x100   : > { %v5783_v45 = vpop.permute.xlu1 %774 }
 0x103   : > { %v5785_v46 = vpop.permute.xlu0 %769 }
 0x104   : > { %v5787_v47 = vpop.permute.xlu1 %764 }
 0x107   : > { %v5789_v48 = vpop.permute.xlu0 %759 }
 0x108   : > { %v5791_v49 = vpop.permute.xlu1 %754 }
 0x10b   : > { %v5793_v51 = vpop.permute.xlu0 %749 }
 0x10c   : > { %v5795_v52 = vpop.permute.xlu1 %744 }
 0x10f   : > { %v5797_v53 = vpop.permute.xlu0 %739 }
 0x110   : > { %v5799_v54 = vpop.permute.xlu1 %734 }
 0x113   : > { %v5801_v55 = vpop.permute.xlu0 %985 }
 0x114   : > { %v5803_v56 = vpop.permute.xlu1 %980 }
 0x117   : > { %v5805_v57 = vpop.permute.xlu0 %975 }
 0x118   : > { %v5807_v58 = vpop.permute.xlu1 %970 }
 0x11b   : > { %v5809_v59 = vpop.permute.xlu0 %965 }
 0x11c   : > { %v5811_v60 = vpop.permute.xlu1 %960 }
 0x11f   : > { %v5813_v61 = vpop.permute.xlu0 %955 }
 0x120   : > { %v5815_v62 = vpop.permute.xlu1 %950 }
 0x123   : > { %v5817_v63 = vpop.permute.xlu0 %945 }
 0x124   : > { %v5819_v0 = vpop.permute.xlu1 %940 }
 0x127   : > { %v5821_v1 = vpop.permute.xlu0 %935 }
 0x128   : > { %v5823_v2 = vpop.permute.xlu1 %930 }
 0x12b   : > { %v5825_v3 = vpop.permute.xlu0 %925 }
 0x12c   : > { %v5827_v4 = vpop.permute.xlu1 %920 }
 0x12f   : > { %v5829_v5 = vpop.permute.xlu0 %915 }
 0x130   : > { %v5831_v6 = vpop.permute.xlu1 %910 }
 0x133   : > { %v5833_v7 = vpop.permute.xlu0 %1065 }
 0x134   : > { %v5835_v8 = vpop.permute.xlu1 %1060 }
 0x137   : > { %v5837_v9 = vpop.permute.xlu0 %1055 }
 0x138   : > { %v5841_v11 = vpop.permute.xlu1 %1050 }
 0x13b   : > { %v5847_v14 = vpop.permute.xlu0 %1045 }
 0x13c   : > { %v5839_v10 = vpop.f32.mrf.mxu0  ;;  %v5851_v16 = vpop.permute.xlu1 %1040 }
 0x13e   : > { %v5843_v12 = vpop.f32.mrf.mxu0 }
 0x13f   : > { %v5857_v20 = vpop.permute.xlu0 %1035 }
 0x140   : > { %v5845_v13 = vpop.f32.mrf.mxu0  ;;  %7295 = vst [vmem:[#allocation20_spill] sm:$0xff] %v5857_v20  ;;  %v5859_v22 = vpop.permute.xlu1 %1030 }
 0x141   : > { %7296 = vst [vmem:[#allocation21_spill] sm:$0xff] %v5859_v22 }
 0x142   : > { %v5849_v15 = vpop.f32.mrf.mxu0 }
 0x143   : > { %v5861_v25 = vpop.permute.xlu0 %1025 }
 0x144   : > { %v5853_v17 = vpop.f32.mrf.mxu0  ;;  %7297 = vst [vmem:[#allocation22_spill] sm:$0xff] %v5861_v25  ;;  %v5863_v27 = vpop.permute.xlu1 %1020 }
 0x145   : > { %7298 = vst [vmem:[#allocation23_spill] sm:$0xff] %v5863_v27 }
 0x146   : > { %v5855_v19 = vpop.f32.mrf.mxu0 }
 0x147   : > { %v5865_v30 = vpop.permute.xlu0 %1612 }
 0x148   : > { %v4359_v21 = vpop.f32.mrf.mxu0  ;;  %v5867_v32 = vpop.permute.xlu1 %1015 }
 0x149   : > { %7299 = vst [vmem:[#allocation24_spill] sm:$0xff] %v5867_v32 }
 0x14a   : > { %v683_v23 = vpop.f32.mrf.mxu0 }
 0x14b   : > { %v5870_v36 = vpop.permute.xlu0 %1607 }
 0x14c   : > { %v4362_v24 = vpop.f32.mrf.mxu0  ;;  %v5874_v27 = vpop.permute.xlu1 %1010 }
 0x14e   : > { %v693_v26 = vpop.f32.mrf.mxu0 }
 0x150   : > { %v4365_v28 = vpop.f32.mrf.mxu0 }
 0x151   : > { %v823_v20 = vsub.f32 %v4365_v28, %v5777_v42 }
 0x152   : > { %v703_v29 = vpop.f32.mrf.mxu0 }
 0x154   : > { %v4368_v31 = vpop.f32.mrf.mxu0 }
 0x155   : > { %v825_v50 = vsub.f32 %v4368_v31, %v5771_v39  ;;  %v822_v39 = vsub.f32 %v703_v29, %v5779_v43 }
 0x156   : > { %v713_v33 = vpop.f32.mrf.mxu0 }
 0x157   : > { %v824_v22 = vsub.f32 %v713_v33, %v5775_v41  ;;  %v820_v33 = vsub.f32 %v693_v26, %v5783_v45 }
 0x158   : > { %v4371_v34 = vpop.f32.mrf.mxu0 }
 0x159   : > { %v827_v35 = vsub.f32 %v4371_v34, %v5769_v38  ;;  %v5882_v38 = vpop.permute.xlu0 %1602 }
 0x15a   : > { %v723_v37 = vpop.f32.mrf.mxu0 }
 0x15b   : > { %4866 = vtanh.f32 %v827_v35  ;;  %v826_v18 = vsub.f32 %v723_v37, %v5773_v40  ;;  %v5887_v40 = vpop.permute.xlu1 %1005  ;;  %v821_v35 = vsub.f32 %v4362_v24, %v5781_v44  ;;  %v819_v37 = vsub.f32 %v4359_v21, %v5785_v46 }
 0x15c   : > { %v5876_v25 = vpop.f32.mrf.mxu0  ;;  %v818_v44 = vsub.f32 %v683_v23, %v5787_v47  ;;  %v817_v24 = vsub.f32 %v5853_v17, %v5789_v48  ;;  %v816_v47 = vsub.f32 %v5855_v19, %v5791_v49  ;;  %v815_v48 = vsub.f32 %v5845_v13, %v5793_v51 }
 0x15d   : > { %4868 = vtanh.f32 %v826_v18  ;;  %v5895_v42 = vpop.permute.xlu0 %1597 }
 0x15e   : > { %v5879_v32 = vpop.f32.mrf.mxu0  ;;  %4870 = vtanh.f32 %v825_v50 }
 0x15f   : > { %4872 = vtanh.f32 %v824_v22  ;;  %v5900_v22 = vpop.permute.xlu1 %1000 }
 0x160   : > { %v5884_v34 = vpop.f32.mrf.mxu0  ;;  %4874 = vtanh.f32 %v823_v20 }
 0x161   : > { %4876 = vtanh.f32 %v822_v39  ;;  %v5909_v21 = vpop.permute.xlu0 %1592 }
 0x162   : > { %v5889_v31 = vpop.f32.mrf.mxu0  ;;  %4878 = vtanh.f32 %v821_v35  ;;  %v814_v35 = vsub.f32 %v5849_v15, %v5795_v52 }
 0x163   : > { %4880 = vtanh.f32 %v820_v33  ;;  %v5915_v50 = vpop.permute.xlu1 %995 }
 0x164   : > { %v5892_v41 = vpop.f32.mrf.mxu0  ;;  %4882 = vtanh.f32 %v819_v37  ;;  %v813_v37 = vsub.f32 %v5839_v10, %v5797_v53 }
 0x165   : > { %4884 = vtanh.f32 %v818_v44  ;;  %v1588_v19 = vpop.permute.xlu0 %1587  ;;  %v812_v44 = vsub.f32 %v5843_v12, %v5799_v54 }
 0x166   : > { %v5897_v28 = vpop.f32.mrf.mxu0  ;;  %4886 = vtanh.f32 %v817_v24 }
 0x167   : > { %4888 = vtanh.f32 %v816_v47  ;;  %v5925_v13 = vpop.permute.xlu1 %990 }
 0x168   : > { %v4867_v43 = vpop.eup %4866  ;;  %v5902_v29 = vpop.f32.mrf.mxu0  ;;  %4890 = vtanh.f32 %v815_v48 }
 0x169   : > { %4372 = vmatprep.subr.mxu1 %v4867_v43  ;;  %4892 = vtanh.f32 %v814_v35  ;;  %v1583_v24 = vpop.permute.xlu0 %1582 }
 0x16a   : > { %v4869_v20 = vpop.eup %4868  ;;  %4373 = vmatpush3.msra.mxu1 %v4867_v43  ;;  %v5905_v45 = vpop.f32.mrf.mxu0  ;;  %4894 = vtanh.f32 %v813_v37 }
 0x16b   : > { %4374 = vmatprep.subr.mxu1 %v4869_v20  ;;  %v4871_v46 = vpop.eup %4870  ;;  %4896 = vtanh.f32 %v812_v44  ;;  %v1578_v47 = vpop.permute.xlu1 %1577 }
 0x16c   : > { %4375 = vmatpush3.msra.mxu1 %v4869_v20  ;;  %v5911_v26 = vpop.f32.mrf.mxu0  ;;  %v4873_v23 = vpop.eup %4872 }
 0x16d   : > { %4376 = vmatprep.subr.mxu1 %v4871_v46  ;;  %v4875_v17 = vpop.eup %4874 }
 0x16e   : > { %4377 = vmatpush3.msra.mxu1 %v4871_v46  ;;  %v5917_v18 = vpop.f32.mrf.mxu0  ;;  %v4877_v49 = vpop.eup %4876 }
 0x16f   : > { %4378 = vmatprep.subr.mxu1 %v4873_v23  ;;  %v4879_v51 = vpop.eup %4878 }
 0x170   : > { %4379 = vmatpush3.msra.mxu1 %v4873_v23  ;;  %v4473_v39 = vpop.f32.mrf.mxu0  ;;  %v4881_v52 = vpop.eup %4880 }
 0x171   : > { %4380 = vmatprep.subr.mxu1 %v4875_v17  ;;  %v4883_v20 = vpop.eup %4882 }
 0x172   : > { %4381 = vmatpush3.msra.mxu1 %v4875_v17  ;;  %v1506_v33 = vpop.f32.mrf.mxu0  ;;  %v4885_v46 = vpop.eup %4884 }
 0x173   : > { %4382 = vmatprep.subr.mxu1 %v4877_v49  ;;  %v4887_v48 = vpop.eup %4886 }
 0x174   : > { %4383 = vmatpush3.msra.mxu1 %v4877_v49  ;;  %v4476_v43 = vpop.f32.mrf.mxu0  ;;  %v4889_v35 = vpop.eup %4888 }
 0x175   : > { %4384 = vmatprep.subr.mxu1 %v4879_v51  ;;  %v1628_v54 = vsub.f32 %v4476_v43, %v5882_v38  ;;  %v1573_v49 = vpop.permute.xlu0 %1572  ;;  %v4891_v37 = vpop.eup %4890  ;;  %v1625_v38 = vsub.f32 %v1506_v33, %v1588_v19  ;;  %v1624_v43 = vsub.f32 %v5911_v26, %v1583_v24  ;;  %v846_v33 = vld [vmem:[#allocation6 + $0x90] sm:$0xff] }
 0x176   : > { %4385 = vmatpush3.msra.mxu1 %v4879_v51  ;;  %v1516_v15 = vpop.f32.mrf.mxu0  ;;  %v1568_v51 = vpop.permute.xlu1 %1567  ;;  %v1622_v19 = vsub.f32 %v5902_v29, %v1573_v49  ;;  %v848_v29 = vld [vmem:[#allocation6 + $0xa0] sm:$0xff] }
 0x177   : > { %4386 = vmatprep.subr.mxu1 %v4881_v52  ;;  %v1627_v17 = vsub.f32 %v1516_v15, %v5895_v42  ;;  %v845_v15 = vld [vmem:[#allocation6 + $0x88] sm:$0xff]  ;;  %v1621_v26 = vsub.f32 %v5905_v45, %v1568_v51 }
 0x178   : > { %4387 = vmatpush3.msra.mxu1 %v4881_v52  ;;  %v4479_v53 = vpop.f32.mrf.mxu0  ;;  %v1623_v52 = vsub.f32 %v5917_v18, %v1578_v47 }
 0x179   : > { %v1630_v10 = vsub.f32 %v4479_v53, %v5865_v30  ;;  %4388 = vmatprep.subr.mxu1 %v4883_v20  ;;  %v1626_v30 = vsub.f32 %v4473_v39, %v5909_v21  ;;  %v1563_v44 = vpop.permute.xlu0 %1562  ;;  %v847_v53 = vld [vmem:[#allocation6 + $0x98] sm:$0xff] }
 0x17a   : > { %4389 = vmatpush3.msra.mxu1 %v4883_v20  ;;  %v1526_v23 = vpop.f32.mrf.mxu0  ;;  %v1558_v39 = vpop.permute.xlu1 %1557 }
 0x17b   : > { %4898 = vtanh.f32 %v1630_v10  ;;  %v1629_v12 = vsub.f32 %v1526_v23, %v5870_v36  ;;  %4390 = vmatprep.subr.mxu1 %v4885_v46  ;;  %v4893_v36 = vpop.eup %4892  ;;  %v1620_v10 = vsub.f32 %v5892_v41, %v1563_v44  ;;  %v1619_v23 = vsub.f32 %v5897_v28, %v1558_v39  ;;  %v850_v41 = vld [vmem:[#allocation6 + $0xb0] sm:$0xff]  ;;  %v855_v44 = vld [vmem:[#allocation6 + $0xd8] sm:$0xff]  ;;  %v857_v39 = vld [vmem:[#allocation6 + $0xe8] sm:$0xff] }
 0x17c   : > { %4391 = vmatpush3.msra.mxu1 %v4885_v46  ;;  %v4895_v42 = vpop.eup %4894 }
 0x17d   : > { %4900 = vtanh.f32 %v1629_v12  ;;  %4392 = vmatprep.subr.mxu1 %v4887_v48  ;;  %v4897_v21 = vpop.eup %4896  ;;  %v1553_v18 = vpop.permute.xlu0 %1552 }
 0x17e   : > { %4393 = vmatpush3.msra.mxu1 %v4887_v48  ;;  %4902 = vtanh.f32 %v1628_v54  ;;  %v1548_v47 = vpop.permute.xlu1 %1547  ;;  %v849_v54 = vld [vmem:[#allocation6 + $0xa8] sm:$0xff]  ;;  %v1618_v12 = vsub.f32 %v5884_v34, %v1553_v18  ;;  %v852_v34 = vld [vmem:[#allocation6 + $0xc0] sm:$0xff] }
 0x17f   : > { %4394 = vmatprep.subr.mxu1 %v4889_v35  ;;  %4904 = vtanh.f32 %v1627_v17 }
 0x180   : > { %4395 = vmatpush3.msra.mxu1 %v4889_v35  ;;  %4906 = vtanh.f32 %v1626_v30  ;;  %v1617_v35 = vsub.f32 %v5889_v31, %v1548_v47  ;;  %v851_v30 = vld [vmem:[#allocation6 + $0xb8] sm:$0xff] }
 0x181   : > { %4396 = vmatprep.subr.mxu1 %v4891_v37  ;;  %4908 = vtanh.f32 %v1625_v38  ;;  %v1543_v17 = vpop.permute.xlu0 %1542  ;;  %v863_v47 = vld [vmem:[#allocation6 + $0x118] sm:$0xff] }
 0x182   : > { %4397 = vmatpush3.msra.mxu1 %v4891_v37  ;;  %4910 = vtanh.f32 %v1624_v43  ;;  %v1538_v49 = vpop.permute.xlu1 %1537  ;;  %v1616_v37 = vsub.f32 %v5876_v25, %v1543_v17  ;;  %v854_v43 = vld [vmem:[#allocation6 + $0xd0] sm:$0xff] }
 0x183   : > { %4398 = vmatprep.subr.mxu1 %v4893_v36  ;;  %4912 = vtanh.f32 %v1623_v52  ;;  %v1615_v38 = vsub.f32 %v5879_v32, %v1538_v49  ;;  %v856_v32 = vld [vmem:[#allocation6 + $0xe0] sm:$0xff]  ;;  %v1781_v17 = vld [vmem:[#allocation6 + $0x230] sm:$0xff] }
 0x184   : > { %4399 = vmatpush3.msra.mxu1 %v4893_v36  ;;  %4914 = vtanh.f32 %v1622_v19  ;;  %v853_v36 = vld [vmem:[#allocation6 + $0xc8] sm:$0xff]  ;;  %v868_v49 = vld [vmem:[#allocation6 + $0x140] sm:$0xff] }
 0x185   : > { %4400 = vmatprep.subr.mxu1 %v4895_v42  ;;  %4916 = vtanh.f32 %v1621_v26  ;;  %v860_v26 = vld [vmem:[#allocation6 + $0x100] sm:$0xff] }
 0x186   : > { %4401 = vmatpush3.msra.mxu1 %v4895_v42  ;;  %4918 = vtanh.f32 %v1620_v10  ;;  %v1776_v10 = vld [vmem:[#allocation6 + $0x208] sm:$0xff] }
 0x187   : > { %4402 = vmatprep.subr.mxu1 %v4897_v21  ;;  %4920 = vtanh.f32 %v1619_v23  ;;  %v1778_v23 = vld [vmem:[#allocation6 + $0x218] sm:$0xff] }
 0x188   : > { %v4899_v20 = vpop.eup %4898  ;;  %4403 = vmatpush3.msra.mxu1 %v4897_v21  ;;  %4922 = vtanh.f32 %v1618_v12  ;;  %v865_v12 = vld [vmem:[#allocation6 + $0x128] sm:$0xff] }
 0x189   : > { %4405 = vmatmul.mubr.f32.vlgmr.msra.gmra.mxu1 %v845_v15  ;;  %4480 = vmatprep.subr.mxu0 %v4899_v20  ;;  %4924 = vtanh.f32 %v1617_v35  ;;  %v858_v15 = vld [vmem:[#allocation6 + $0xf0] sm:$0xff]  ;;  %v867_v35 = vld [vmem:[#allocation6 + $0x138] sm:$0xff] }
 0x18a   : > { %v4901_v24 = vpop.eup %4900  ;;  %4481 = vmatpush3.msra.mxu0 %v4899_v20  ;;  %4407 = vmatprep.mubr.f32.mxu1 %v846_v33  ;;  %4926 = vtanh.f32 %v1616_v37  ;;  %v859_v20 = vld [vmem:[#allocation6 + $0xf8] sm:$0xff]  ;;  %v869_v37 = vld [vmem:[#allocation6 + $0x148] sm:$0xff] }
 0x18b   : > { %4482 = vmatprep.subr.mxu0 %v4901_v24  ;;  %v4903_v46 = vpop.eup %4902  ;;  %4928 = vtanh.f32 %v1615_v38  ;;  %v1785_v38 = vld [vmem:[#allocation6 + $0x250] sm:$0xff] }
 0x18c   : > { %4483 = vmatpush3.msra.mxu0 %v4901_v24  ;;  %v4905_v45 = vpop.eup %4904 }
 0x18d   : > { %4408 = vmatmul.mubr.f32.gmra.mxu1 %v847_v53  ;;  %4484 = vmatprep.subr.mxu0 %v4903_v46  ;;  %v4907_v48 = vpop.eup %4906  ;;  %v861_v53 = vld [vmem:[#allocation6 + $0x108] sm:$0xff] }
 0x18e   : > { %4485 = vmatpush3.msra.mxu0 %v4903_v46  ;;  %4410 = vmatprep.mubr.f32.mxu1 %v848_v29  ;;  %v4909_v28 = vpop.eup %4908  ;;  %v862_v29 = vld [vmem:[#allocation6 + $0x110] sm:$0xff] }
 0x18f   : > { %4486 = vmatprep.subr.mxu0 %v4905_v45  ;;  %v4911_v51 = vpop.eup %4910  ;;  %v1777_v46 = vld [vmem:[#allocation6 + $0x210] sm:$0xff] }
 0x190   : > { %4487 = vmatpush3.msra.mxu0 %v4905_v45  ;;  %v4913_v31 = vpop.eup %4912  ;;  %v864_v45 = vld [vmem:[#allocation6 + $0x120] sm:$0xff] }
 0x191   : > { %4411 = vmatmul.mubr.f32.gmra.mxu1 %v849_v54  ;;  %4488 = vmatprep.subr.mxu0 %v4907_v48  ;;  %v4915_v42 = vpop.eup %4914  ;;  %v1779_v54 = vld [vmem:[#allocation6 + $0x220] sm:$0xff] }
 0x192   : > { %4489 = vmatpush3.msra.mxu0 %v4907_v48  ;;  %4413 = vmatprep.mubr.f32.mxu1 %v850_v41  ;;  %v4917_v25 = vpop.eup %4916  ;;  %v1780_v41 = vld [vmem:[#allocation6 + $0x228] sm:$0xff]  ;;  %v866_v48 = vld [vmem:[#allocation6 + $0x130] sm:$0xff] }
 0x193   : > { %4490 = vmatprep.subr.mxu0 %v4909_v28  ;;  %v4919_v52 = vpop.eup %4918 }
 0x194   : > { %4491 = vmatpush3.msra.mxu0 %v4909_v28  ;;  %v4921_v21 = vpop.eup %4920  ;;  %v1782_v28 = vld [vmem:[#allocation6 + $0x238] sm:$0xff] }
 0x195   : > { %4414 = vmatmul.mubr.f32.gmra.mxu1 %v851_v30  ;;  %4492 = vmatprep.subr.mxu0 %v4911_v51  ;;  %v4923_v19 = vpop.eup %4922  ;;  %v1783_v30 = vld [vmem:[#allocation6 + $0x240] sm:$0xff] }
 0x196   : > { %4493 = vmatpush3.msra.mxu0 %v4911_v51  ;;  %4416 = vmatprep.mubr.f32.mxu1 %v852_v34  ;;  %v4925_v33 = vpop.eup %4924  ;;  %v1784_v34 = vld [vmem:[#allocation6 + $0x248] sm:$0xff]  ;;  %v870_v51 = vld [vmem:[#allocation6 + $0x150] sm:$0xff] }
 0x197   : > { %4494 = vmatprep.subr.mxu0 %v4913_v31  ;;  %v4927_v24 = vpop.eup %4926 }
 0x198   : > { %4495 = vmatpush3.msra.mxu0 %v4913_v31  ;;  %v4929_v18 = vpop.eup %4928  ;;  %v871_v31 = vld [vmem:[#allocation6 + $0x158] sm:$0xff] }
 0x199   : > { %4417 = vmatmul.mubr.f32.gmra.mxu1 %v853_v36  ;;  %4496 = vmatprep.subr.mxu0 %v4915_v42  ;;  %v872_v36 = vld [vmem:[#allocation6 + $0x160] sm:$0xff] }
 0x19a   : > { %4497 = vmatpush3.msra.mxu0 %v4915_v42  ;;  %4419 = vmatprep.mubr.f32.mxu1 %v854_v43  ;;  %v873_v43 = vld [vmem:[#allocation6 + $0x168] sm:$0xff]  ;;  %v874_v42 = vld [vmem:[#allocation6 + $0x170] sm:$0xff] }
 0x19b   : > { %4498 = vmatprep.subr.mxu0 %v4917_v25 }
 0x19c   : > { %4499 = vmatpush3.msra.mxu0 %v4917_v25  ;;  %v875_v25 = vld [vmem:[#allocation6 + $0x178] sm:$0xff] }
 0x19d   : > { %4420 = vmatmul.mubr.f32.gmra.mxu1 %v855_v44  ;;  %4500 = vmatprep.subr.mxu0 %v4919_v52  ;;  %v1786_v44 = vld [vmem:[#allocation6 + $0x258] sm:$0xff] }
 0x19e   : > { %4501 = vmatpush3.msra.mxu0 %v4919_v52  ;;  %4422 = vmatprep.mubr.f32.mxu1 %v856_v32  ;;  %v1787_v32 = vld [vmem:[#allocation6 + $0x260] sm:$0xff]  ;;  %v1788_v52 = vld [vmem:[#allocation6 + $0x268] sm:$0xff] }
 0x19f   : > { %4502 = vmatprep.subr.mxu0 %v4921_v21 }
 0x1a0   : > { %4503 = vmatpush3.msra.mxu0 %v4921_v21  ;;  %v1789_v21 = vld [vmem:[#allocation6 + $0x270] sm:$0xff] }
 0x1a1   : > { %4423 = vmatmul.mubr.f32.gmra.mxu1 %v857_v39  ;;  %4504 = vmatprep.subr.mxu0 %v4923_v19  ;;  %v1790_v39 = vld [vmem:[#allocation6 + $0x278] sm:$0xff] }
 0x1a2   : > { %4505 = vmatpush3.msra.mxu0 %v4923_v19  ;;  %4425 = vmatprep.mubr.f32.mxu1 %v858_v15  ;;  %v1791_v15 = vld [vmem:[#allocation6 + $0x280] sm:$0xff]  ;;  %v1792_v19 = vld [vmem:[#allocation6 + $0x288] sm:$0xff] }
 0x1a3   : > { %4506 = vmatprep.subr.mxu0 %v4925_v33 }
 0x1a4   : > { %4507 = vmatpush3.msra.mxu0 %v4925_v33  ;;  %v1793_v33 = vld [vmem:[#allocation6 + $0x290] sm:$0xff] }
 0x1a5   : > { %4426 = vmatmul.mubr.f32.gmra.mxu1 %v859_v20  ;;  %4508 = vmatprep.subr.mxu0 %v4927_v24  ;;  %v1794_v20 = vld [vmem:[#allocation6 + $0x298] sm:$0xff] }
 0x1a6   : > { %4509 = vmatpush3.msra.mxu0 %v4927_v24  ;;  %4428 = vmatprep.mubr.f32.mxu1 %v860_v26  ;;  %v1795_v26 = vld [vmem:[#allocation6 + $0x2a0] sm:$0xff]  ;;  %v1796_v24 = vld [vmem:[#allocation6 + $0x2a8] sm:$0xff] }
 0x1a7   : > { %4510 = vmatprep.subr.mxu0 %v4929_v18 }
 0x1a8   : > { %4511 = vmatpush3.msra.mxu0 %v4929_v18  ;;  %v1797_v18 = vld [vmem:[#allocation6 + $0x2b0] sm:$0xff] }
 0x1a9   : > { %4429 = vmatmul.mubr.f32.gmra.mxu1 %v861_v53  ;;  %4513 = vmatmul.mubr.f32.vlgmr.msra.gmra.mxu0 %v1776_v10  ;;  %v1798_v53 = vld [vmem:[#allocation6 + $0x2b8] sm:$0xff]  ;;  %v1799_v10 = vld [vmem:[#allocation6 + $0x2c0] sm:$0xff] }
 0x1aa   : > { %4431 = vmatprep.mubr.f32.mxu1 %v862_v29  ;;  %4515 = vmatprep.mubr.f32.mxu0 %v1777_v46  ;;  %v1800_v29 = vld [vmem:[#allocation6 + $0x2c8] sm:$0xff]  ;;  %v1801_v46 = vld [vmem:[#allocation6 + $0x2d0] sm:$0xff] }
 0x1ad   : > { %4432 = vmatmul.mubr.f32.gmra.mxu1 %v863_v47  ;;  %4516 = vmatmul.mubr.f32.gmra.mxu0 %v1778_v23  ;;  %v1802_v47 = vld [vmem:[#allocation6 + $0x2d8] sm:$0xff]  ;;  %v1803_v23 = vld [vmem:[#allocation6 + $0x2e0] sm:$0xff] }
 0x1ae   : > { %4434 = vmatprep.mubr.f32.mxu1 %v864_v45  ;;  %4518 = vmatprep.mubr.f32.mxu0 %v1779_v54  ;;  %v1804_v45 = vld [vmem:[#allocation6 + $0x2e8] sm:$0xff]  ;;  %v1805_v54 = vld [vmem:[#allocation6 + $0x2f0] sm:$0xff] }
 0x1b1   : > { %4435 = vmatmul.mubr.f32.gmra.mxu1 %v865_v12  ;;  %4519 = vmatmul.mubr.f32.gmra.mxu0 %v1780_v41  ;;  %v1806_v12 = vld [vmem:[#allocation6 + $0x2f8] sm:$0xff]  ;;  %v1807_v41 = vld [vmem:[#allocation6 + $0x300] sm:$0xff] }
 0x1b2   : > { %4437 = vmatprep.mubr.f32.mxu1 %v866_v48  ;;  %4521 = vmatprep.mubr.f32.mxu0 %v1781_v17  ;;  %v1808_v48 = vld [vmem:[#allocation6 + $0x308] sm:$0xff]  ;;  %v5350_v17 = vmov 0.0  }
 0x1b3   : > { %2224 = vmatprep.subr.mxu0 %v5350_v17  ;;  %4654 = vmatprep.subr.mxu1 %v5350_v17 }
 0x1b5   : > { %4438 = vmatmul.mubr.f32.gmra.mxu1 %v867_v35  ;;  %4522 = vmatmul.mubr.f32.gmra.mxu0 %v1782_v28  ;;  %v1809_v35 = vld [vmem:[#allocation6 + $0x310] sm:$0xff]  ;;  %v1810_v28 = vld [vmem:[#allocation6 + $0x318] sm:$0xff] }
 0x1b6   : > { %4440 = vmatprep.mubr.f32.mxu1 %v868_v49  ;;  %4524 = vmatprep.mubr.f32.mxu0 %v1783_v30  ;;  %v1811_v49 = vld [vmem:[#allocation6 + $0x320] sm:$0xff]  ;;  %v1812_v30 = vld [vmem:[#allocation6 + $0x328] sm:$0xff] }
 0x1b9   : > { %4441 = vmatmul.mubr.f32.gmra.mxu1 %v869_v37  ;;  %4525 = vmatmul.mubr.f32.gmra.mxu0 %v1784_v34  ;;  %v1813_v37 = vld [vmem:[#allocation6 + $0x330] sm:$0xff]  ;;  %v1814_v34 = vld [vmem:[#allocation6 + $0x338] sm:$0xff] }
 0x1ba   : > { %4443 = vmatprep.mubr.f32.mxu1 %v870_v51  ;;  %4527 = vmatprep.mubr.f32.mxu0 %v1785_v38  ;;  %v1815_v51 = vld [vmem:[#allocation6 + $0x340] sm:$0xff]  ;;  %v1816_v38 = vld [vmem:[#allocation6 + $0x348] sm:$0xff] }
 0x1bd   : > { %4444 = vmatmul.mubr.f32.gmra.mxu1 %v871_v31  ;;  %4528 = vmatmul.mubr.f32.gmra.mxu0 %v1786_v44  ;;  %v1817_v31 = vld [vmem:[#allocation6 + $0x350] sm:$0xff]  ;;  %v1822_v44 = vld [vmem:[#allocation6 + $0x378] sm:$0xff] }
 0x1be   : > { %4446 = vmatprep.mubr.f32.mxu1 %v872_v36  ;;  %4530 = vmatprep.mubr.f32.mxu0 %v1787_v32  ;;  %v1818_v36 = vld [vmem:[#allocation6 + $0x358] sm:$0xff]  ;;  %v1823_v32 = vld [vmem:[#allocation6 + $0x380] sm:$0xff] }
 0x1c1   : > { %4447 = vmatmul.mubr.f32.gmra.mxu1 %v873_v43  ;;  %4531 = vmatmul.mubr.f32.gmra.mxu0 %v1788_v52  ;;  %v1819_v43 = vld [vmem:[#allocation6 + $0x360] sm:$0xff]  ;;  %v1824_v52 = vld [vmem:[#allocation6 + $0x388] sm:$0xff] }
 0x1c2   : > { %4449 = vmatprep.mubr.f32.mxu1 %v874_v42  ;;  %4533 = vmatprep.mubr.f32.mxu0 %v1789_v21  ;;  %v1820_v42 = vld [vmem:[#allocation6 + $0x368] sm:$0xff]  ;;  %v1825_v21 = vld [vmem:[#allocation6 + $0x390] sm:$0xff] }
 0x1c5   : > { %4450 = vmatmul.mubr.f32.gmra.mxu1 %v875_v25  ;;  %4534 = vmatmul.mubr.f32.gmra.mxu0 %v1790_v39  ;;  %v1821_v25 = vld [vmem:[#allocation6 + $0x370] sm:$0xff]  ;;  %v1826_v39 = vld [vmem:[#allocation6 + $0x398] sm:$0xff] }
 0x1c6   : > { %4536 = vmatprep.mubr.f32.mxu0 %v1791_v15  ;;  %v1827_v15 = vld [vmem:[#allocation6 + $0x3a0] sm:$0xff] }
 0x1c9   : > { %4537 = vmatmul.mubr.f32.gmra.mxu0 %v1792_v19  ;;  %v1828_v19 = vld [vmem:[#allocation6 + $0x3a8] sm:$0xff] }
 0x1ca   : > { %4539 = vmatprep.mubr.f32.mxu0 %v1793_v33  ;;  %v1829_v33 = vld [vmem:[#allocation6 + $0x3b0] sm:$0xff] }
 0x1cd   : > { %4540 = vmatmul.mubr.f32.gmra.mxu0 %v1794_v20  ;;  %v1830_v20 = vld [vmem:[#allocation6 + $0x3b8] sm:$0xff] }
 0x1ce   : > { %4542 = vmatprep.mubr.f32.mxu0 %v1795_v26  ;;  %v1831_v26 = vld [vmem:[#allocation6 + $0x3c0] sm:$0xff] }
 0x1d1   : > { %4543 = vmatmul.mubr.f32.gmra.mxu0 %v1796_v24  ;;  %v1832_v24 = vld [vmem:[#allocation6 + $0x3c8] sm:$0xff] }
 0x1d2   : > { %4545 = vmatprep.mubr.f32.mxu0 %v1797_v18  ;;  %v1833_v18 = vld [vmem:[#allocation6 + $0x3d0] sm:$0xff] }
 0x1d5   : > { %4546 = vmatmul.mubr.f32.gmra.mxu0 %v1798_v53  ;;  %v1834_v53 = vld [vmem:[#allocation6 + $0x3d8] sm:$0xff] }
 0x1d6   : > { %4548 = vmatprep.mubr.f32.mxu0 %v1799_v10  ;;  %v1835_v10 = vld [vmem:[#allocation6 + $0x3e0] sm:$0xff] }
 0x1d9   : > { %4549 = vmatmul.mubr.f32.gmra.mxu0 %v1800_v29  ;;  %v1836_v29 = vld [vmem:[#allocation6 + $0x3e8] sm:$0xff] }
 0x1da   : > { %4551 = vmatprep.mubr.f32.mxu0 %v1801_v46  ;;  %v1837_v46 = vld [vmem:[#allocation6 + $0x3f0] sm:$0xff] }
 0x1dd   : > { %4552 = vmatmul.mubr.f32.gmra.mxu0 %v1802_v47  ;;  %v1838_v47 = vld [vmem:[#allocation6 + $0x3f8] sm:$0xff] }
 0x1de   : > { %4554 = vmatprep.mubr.f32.mxu0 %v1803_v23  ;;  %v1648_v23 = vld [vmem:[%s7300_s24 + $0x8] sm:$0xff] }
 0x1e1   : > { %4555 = vmatmul.mubr.f32.gmra.mxu0 %v1804_v45  ;;  %v1670_v45 = vld [vmem:[%s7300_s24 + $0xb8] sm:$0xff] }
 0x1e2   : > { %4557 = vmatprep.mubr.f32.mxu0 %v1805_v54  ;;  %2343 = vmatprep.mubr.f32.mxu1 %v1670_v45  ;;  %v2634_v45 = vld [vmem:[%s7294_s20 + $0xc8] sm:$0xff] }
 0x1e5   : > { %4558 = vmatmul.mubr.f32.gmra.mxu0 %v1806_v12 }
 0x1e6   : > { %4560 = vmatprep.mubr.f32.mxu0 %v1807_v41 }
 0x1e9   : > { %4561 = vmatmul.mubr.f32.gmra.mxu0 %v1808_v48  ;;  %v2640_v48 = vld [vmem:[%s7294_s20 + $0xf8] sm:$0xff] }
 0x1ea   : > { %4563 = vmatprep.mubr.f32.mxu0 %v1809_v35  ;;  %v5351_v35 = vmov 1  }
 0x1eb   : > { %4855 = vset.pattern.permute.xlu0 %v5351_v35  ;;  %4856 = vset.pattern.permute.xlu1 %v5351_v35  ;;  %v2616_v35 = vld [vmem:[%s7294_s20 + $0x38] sm:$0xff] }
 0x1ec   : > { %2830 = vperm.xlu0 %4855, %v2640_v48  }
 0x1ed   : > { %4564 = vmatmul.mubr.f32.gmra.mxu0 %v1810_v28 }
 0x1ee   : > { %4566 = vmatprep.mubr.f32.mxu0 %v1811_v49 }
 0x1f1   : > { %4567 = vmatmul.mubr.f32.gmra.mxu0 %v1812_v30  ;;  %v2623_v30 = vld [vmem:[%s7294_s20 + $0x70] sm:$0xff] }
 0x1f2   : > { %4569 = vmatprep.mubr.f32.mxu0 %v1813_v37  ;;  %v2624_v37 = vld [vmem:[%s7294_s20 + $0x78] sm:$0xff]  ;;  %2745 = vperm.xlu0 %4855, %v2623_v30   ;;  %v2633_v30 = vld [vmem:[%s7294_s20 + $0xc0] sm:$0xff] }
 0x1f3   : > { %2750 = vperm.xlu1 %4856, %v2624_v37  }
 0x1f5   : > { %4570 = vmatmul.mubr.f32.gmra.mxu0 %v1814_v34 }
 0x1f6   : > { %4572 = vmatprep.mubr.f32.mxu0 %v1815_v51 }
 0x1f9   : > { %4573 = vmatmul.mubr.f32.gmra.mxu0 %v1816_v38  ;;  %v2622_v38 = vld [vmem:[%s7294_s20 + $0x68] sm:$0xff] }
 0x1fa   : > { %4575 = vmatprep.mubr.f32.mxu0 %v1817_v31  ;;  %v2639_v31 = vld [vmem:[%s7294_s20 + $0xf0] sm:$0xff]  ;;  %2740 = vperm.xlu0 %4855, %v2622_v38  }
 0x1fb   : > { %2825 = vperm.xlu1 %4856, %v2639_v31   ;;  %v2615_v31 = vld [vmem:[%s7294_s20 + $0x30] sm:$0xff] }
 0x1fd   : > { %4576 = vmatmul.mubr.f32.gmra.mxu0 %v1818_v36 }
 0x1fe   : > { %4578 = vmatprep.mubr.f32.mxu0 %v1819_v43 }
 0x201   : > { %4579 = vmatmul.mubr.f32.gmra.mxu0 %v1820_v42  ;;  %v2621_v42 = vld [vmem:[%s7294_s20 + $0x60] sm:$0xff] }
 0x202   : > { %4581 = vmatprep.mubr.f32.mxu0 %v1821_v25  ;;  %v2638_v25 = vld [vmem:[%s7294_s20 + $0xe8] sm:$0xff]  ;;  %2735 = vperm.xlu0 %4855, %v2621_v42   ;;  %v2632_v42 = vld [vmem:[%s7294_s20 + $0xb8] sm:$0xff] }
 0x203   : > { %2820 = vperm.xlu1 %4856, %v2638_v25  }
 0x205   : > { %4582 = vmatmul.mubr.f32.gmra.mxu0 %v1822_v44 }
 0x206   : > { %4584 = vmatprep.mubr.f32.mxu0 %v1823_v32 }
 0x209   : > { %4585 = vmatmul.mubr.f32.gmra.mxu0 %v1824_v52  ;;  %v2620_v52 = vld [vmem:[%s7294_s20 + $0x58] sm:$0xff] }
 0x20a   : > { %4587 = vmatprep.mubr.f32.mxu0 %v1825_v21  ;;  %v2637_v21 = vld [vmem:[%s7294_s20 + $0xe0] sm:$0xff]  ;;  %2730 = vperm.xlu0 %4855, %v2620_v52  }
 0x20b   : > { %2815 = vperm.xlu1 %4856, %v2637_v21  }
 0x20d   : > { %4588 = vmatmul.mubr.f32.gmra.mxu0 %v1826_v39 }
 0x20e   : > { %4590 = vmatprep.mubr.f32.mxu0 %v1827_v15 }
 0x211   : > { %4591 = vmatmul.mubr.f32.gmra.mxu0 %v1828_v19  ;;  %v2619_v19 = vld [vmem:[%s7294_s20 + $0x50] sm:$0xff] }
 0x212   : > { %4593 = vmatprep.mubr.f32.mxu0 %v1829_v33  ;;  %v2636_v33 = vld [vmem:[%s7294_s20 + $0xd8] sm:$0xff]  ;;  %2725 = vperm.xlu0 %4855, %v2619_v19  }
 0x213   : > { %2810 = vperm.xlu1 %4856, %v2636_v33  }
 0x215   : > { %4594 = vmatmul.mubr.f32.gmra.mxu0 %v1830_v20 }
 0x216   : > { %4596 = vmatprep.mubr.f32.mxu0 %v1831_v26 }
 0x219   : > { %4597 = vmatmul.mubr.f32.gmra.mxu0 %v1832_v24  ;;  %v2618_v24 = vld [vmem:[%s7294_s20 + $0x48] sm:$0xff] }
 0x21a   : > { %4599 = vmatprep.mubr.f32.mxu0 %v1833_v18  ;;  %v2635_v18 = vld [vmem:[%s7294_s20 + $0xd0] sm:$0xff]  ;;  %2720 = vperm.xlu0 %4855, %v2618_v24  }
 0x21b   : > { %2805 = vperm.xlu1 %4856, %v2635_v18  }
 0x21d   : > { %4600 = vmatmul.mubr.f32.gmra.mxu0 %v1834_v53 }
 0x21e   : > { %4602 = vmatprep.mubr.f32.mxu0 %v1835_v10 }
 0x21f   : > { %2800 = vperm.xlu1 %4856, %v2634_v45  }
 0x221   : > { %4603 = vmatmul.mubr.f32.gmra.mxu0 %v1836_v29 }
 0x222   : > { %4605 = vmatprep.mubr.f32.mxu0 %v1837_v46 }
 0x223   : > { %2795 = vperm.xlu1 %4856, %v2633_v30  }
 0x225   : > { %4606 = vmatmul.mubr.f32.gmra.mxu0 %v1838_v47 }
 0x226   : > { %2288 = vmatprep.mubr.f32.mxu0 %v1648_v23  ;;  %v2617_v23 = vld [vmem:[%s7294_s20 + $0x40] sm:$0xff] }
 0x227   : > { %2715 = vperm.xlu0 %4855, %v2617_v23   ;;  %2790 = vperm.xlu1 %4856, %v2632_v42  }
 0x22b   : > { %2710 = vperm.xlu0 %4855, %v2616_v35  }
 0x22f   : > { %2705 = vperm.xlu0 %4855, %v2615_v31   ;;  %v7308_v31 = vld [vmem:[#allocation21_spill] sm:$0xff] }
 0x249   : > { %v5952_v54 = vpop.f32.mrf.mxu1 }
 0x24b   : > { %v5954_v12 = vpop.f32.mrf.mxu1 }
 0x24d   : > { %v5956_v41 = vpop.f32.mrf.mxu1 }
 0x24f   : > { %v5961_v28 = vpop.f32.mrf.mxu1 }
 0x251   : > { %v5963_v49 = vpop.f32.mrf.mxu1 }
 0x253   : > { %v5971_v34 = vpop.f32.mrf.mxu1 }
 0x255   : > { %v4415_v51 = vpop.f32.mrf.mxu1 }
 0x257   : > { %v5979_v36 = vpop.f32.mrf.mxu1 }
 0x258   : > { %v1165_v21 = vadd.f32 %v5979_v36, %v5819_v0  ;;  %v1155_v36 = vadd.f32 %v5971_v34, %v5823_v2  ;;  %v1145_v34 = vadd.f32 %v5961_v28, %v5827_v4  ;;  %v1135_v28 = vadd.f32 %v5954_v12, %v5831_v6 }
 0x259   : > { %v4418_v43 = vpop.f32.mrf.mxu1 }
 0x25b   : > { %v1174_v44 = vpop.f32.mrf.mxu1 }
 0x25d   : > { %v4421_v32 = vpop.f32.mrf.mxu1 }
 0x25f   : > { %v1184_v39 = vpop.f32.mrf.mxu1 }
 0x261   : > { %v4424_v15 = vpop.f32.mrf.mxu1 }
 0x262   : > { %v1200_v29 = vadd.f32 %v4424_v15, %v5805_v57  ;;  %v1190_v57 = vadd.f32 %v4421_v32, %v5809_v59  ;;  %v1180_v59 = vadd.f32 %v4418_v43, %v5813_v61  ;;  %v1170_v61 = vadd.f32 %v4415_v51, %v5817_v63 }
 0x263   : > { %v1194_v20 = vpop.f32.mrf.mxu1  ;;  %v1160_v63 = vadd.f32 %v5963_v49, %v5821_v1  ;;  %v1150_v49 = vadd.f32 %v5956_v41, %v5825_v3  ;;  %v1140_v3 = vadd.f32 %v5952_v54, %v5829_v5 }
 0x265   : > { %v4427_v26 = vpop.f32.mrf.mxu1 }
 0x266   : > { %v1210_v53 = vadd.f32 %v4427_v26, %v5801_v55  ;;  %v1195_v55 = vadd.f32 %v1194_v20, %v5807_v58  ;;  %v1185_v58 = vadd.f32 %v1184_v39, %v5811_v60  ;;  %v1175_v60 = vadd.f32 %v1174_v44, %v5815_v62 }
 0x267   : > { %v1204_v10 = vpop.f32.mrf.mxu1 }
 0x268   : > { %4930 = vtanh.f32 %v1210_v53  ;;  %v1205_v46 = vadd.f32 %v1204_v10, %v5803_v56 }
 0x269   : > { %v6008_v47 = vpop.f32.mrf.mxu1  ;;  %v6046_v52 = vpop.f32.mrf.mxu0 }
 0x26a   : > { %4932 = vtanh.f32 %v1205_v46  ;;  %7301 = vst [vmem:[#allocation25_spill] sm:$0xff] %v6046_v52 }
 0x26b   : > { %v6017_v48 = vpop.f32.mrf.mxu1  ;;  %4934 = vtanh.f32 %v1200_v29  ;;  %v6060_v0 = vpop.f32.mrf.mxu0 }
 0x26c   : > { %4936 = vtanh.f32 %v1195_v55  ;;  %7302 = vst [vmem:[#allocation26_spill] sm:$0xff] %v6060_v0 }
 0x26d   : > { %v6020_v56 = vpop.f32.mrf.mxu1  ;;  %4938 = vtanh.f32 %v1190_v57  ;;  %v6072_v2 = vpop.f32.mrf.mxu0 }
 0x26e   : > { %4940 = vtanh.f32 %v1185_v58  ;;  %7303 = vst [vmem:[#allocation27_spill] sm:$0xff] %v6072_v2 }
 0x26f   : > { %v6029_v37 = vpop.f32.mrf.mxu1  ;;  %4942 = vtanh.f32 %v1180_v59  ;;  %v6082_v4 = vpop.f32.mrf.mxu0 }
 0x270   : > { %4944 = vtanh.f32 %v1175_v60  ;;  %7304 = vst [vmem:[#allocation28_spill] sm:$0xff] %v6082_v4 }
 0x271   : > { %v6032_v38 = vpop.f32.mrf.mxu1  ;;  %4946 = vtanh.f32 %v1170_v61  ;;  %v6090_v10 = vpop.f32.mrf.mxu0  ;;  %v7309_v61 = vld [vmem:[#allocation22_spill] sm:$0xff] }
 0x272   : > { %4948 = vtanh.f32 %v1165_v21  ;;  %7305 = vst [vmem:[#allocation29_spill] sm:$0xff] %v6090_v10 }
 0x273   : > { %v6041_v25 = vpop.f32.mrf.mxu1  ;;  %4950 = vtanh.f32 %v1160_v63  ;;  %v7310_v63 = vld [vmem:[#allocation23_spill] sm:$0xff] }
 0x274   : > { %4952 = vtanh.f32 %v1155_v36 }
 0x275   : > { %v4931_v43 = vpop.eup %4930  ;;  %v6044_v32 = vpop.f32.mrf.mxu1  ;;  %4954 = vtanh.f32 %v1150_v49 }
 0x276   : > { %2225 = vmatpush1.msra.mxu0 %v4931_v43  ;;  %4686 = vmatpush1.msra.mxu1 %v4931_v43  ;;  %4956 = vtanh.f32 %v1145_v34  ;;  %v1250_v43 = vadd.f32 %v6044_v32, %v7309_v61  ;;  %v7311_v32 = vld [vmem:[#allocation24_spill] sm:$0xff] }
 0x277   : > { %v4933_v62 = vpop.eup %4932  ;;  %v6050_v44 = vpop.f32.mrf.mxu1  ;;  %2226 = vmatprep.subr.mxu0 %v5350_v17  ;;  %4655 = vmatprep.subr.mxu1 %v5350_v17  ;;  %4958 = vtanh.f32 %v1140_v3  ;;  %v1240_v36 = vadd.f32 %v6032_v38, %v7311_v32  ;;  %v1230_v38 = vadd.f32 %v6020_v56, %v5887_v40  ;;  %v1220_v40 = vadd.f32 %v6008_v47, %v5915_v50  ;;  %v1653_v61 = vld [vmem:[%s7300_s24 + $0x30] sm:$0xff] }
 0x278   : > { %2227 = vmatpush1.msra.mxu0 %v4933_v62  ;;  %4687 = vmatpush1.msra.mxu1 %v4933_v62  ;;  %v4935_v51 = vpop.eup %4934  ;;  %4960 = vtanh.f32 %v1135_v28 }
 0x279   : > { %v6056_v39 = vpop.f32.mrf.mxu1  ;;  %2228 = vmatprep.subr.mxu0 %v5350_v17  ;;  %4656 = vmatprep.subr.mxu1 %v5350_v17  ;;  %v4937_v15 = vpop.eup %4936 }
 0x27a   : > { %2229 = vmatpush1.msra.mxu0 %v4935_v51  ;;  %4688 = vmatpush1.msra.mxu1 %v4935_v51  ;;  %v4939_v19 = vpop.eup %4938  ;;  %v1245_v51 = vadd.f32 %v6050_v44, %v7310_v63  ;;  %v1678_v63 = vld [vmem:[%s7300_s24 + $0xf8] sm:$0xff] }
 0x27b   : > { %v6064_v1 = vpop.f32.mrf.mxu1  ;;  %2230 = vmatprep.subr.mxu0 %v5350_v17  ;;  %4657 = vmatprep.subr.mxu1 %v5350_v17  ;;  %v4941_v20 = vpop.eup %4940 }
 0x27c   : > { %2231 = vmatpush1.msra.mxu0 %v4937_v15  ;;  %4689 = vmatpush1.msra.mxu1 %v4937_v15  ;;  %v4943_v41 = vpop.eup %4942  ;;  %v1255_v42 = vadd.f32 %v6064_v1, %v7308_v31  ;;  %v1235_v1 = vadd.f32 %v6041_v25, %v5874_v27  ;;  %v1225_v25 = vadd.f32 %v6029_v37, %v5900_v22  ;;  %v2612_v31 = vld [vmem:[%s7294_s20 + $0x18] sm:$0xff] }
 0x27d   : > { %v4445_v33 = vpop.f32.mrf.mxu1  ;;  %2232 = vmatprep.subr.mxu0 %v5350_v17  ;;  %4658 = vmatprep.subr.mxu1 %v5350_v17  ;;  %v4945_v18 = vpop.eup %4944  ;;  %v1215_v37 = vadd.f32 %v6017_v48, %v5925_v13 }
 0x27e   : > { %2233 = vmatpush1.msra.mxu0 %v4939_v19  ;;  %4690 = vmatpush1.msra.mxu1 %v4939_v19  ;;  %v4947_v5 = vpop.eup %4946 }
 0x27f   : > { %v1264_v26 = vpop.f32.mrf.mxu1  ;;  %2234 = vmatprep.subr.mxu0 %v5350_v17  ;;  %4659 = vmatprep.subr.mxu1 %v5350_v17  ;;  %v4949_v12 = vpop.eup %4948 }
 0x280   : > { %2235 = vmatpush1.msra.mxu0 %v4941_v20  ;;  %4691 = vmatpush1.msra.mxu1 %v4941_v20  ;;  %v4951_v45 = vpop.eup %4950 }
 0x281   : > { %v4448_v24 = vpop.f32.mrf.mxu1  ;;  %2236 = vmatprep.subr.mxu0 %v5350_v17  ;;  %4660 = vmatprep.subr.mxu1 %v5350_v17  ;;  %v4953_v57 = vpop.eup %4952 }
 0x282   : > { %2237 = vmatpush1.msra.mxu0 %v4943_v41  ;;  %4692 = vmatpush1.msra.mxu1 %v4943_v41  ;;  %v1280_v46 = vadd.f32 %v4448_v24, %v5837_v9  ;;  %v4955_v9 = vpop.eup %4954 }
 0x283   : > { %v1274_v53 = vpop.f32.mrf.mxu1  ;;  %2238 = vmatprep.subr.mxu0 %v5350_v17  ;;  %4661 = vmatprep.subr.mxu1 %v5350_v17  ;;  %v4957_v30 = vpop.eup %4956 }
 0x284   : > { %2239 = vmatpush1.msra.mxu0 %v4945_v18  ;;  %4693 = vmatpush1.msra.mxu1 %v4945_v18  ;;  %v1275_v55 = vadd.f32 %v1274_v53, %v5841_v11  ;;  %v1265_v11 = vadd.f32 %v1264_v26, %v5851_v16  ;;  %v4959_v59 = vpop.eup %4958  ;;  %v1647_v53 = vld [vmem:[%s7300_s24] sm:$0xff] }
 0x285   : > { %v4451_v54 = vpop.f32.mrf.mxu1  ;;  %2240 = vmatprep.subr.mxu0 %v5350_v17  ;;  %4662 = vmatprep.subr.mxu1 %v5350_v17  ;;  %v4961_v60 = vpop.eup %4960 }
 0x286   : > { %v1290_v6 = vadd.f32 %v4451_v54, %v5833_v7  ;;  %2241 = vmatpush1.msra.mxu0 %v4947_v5  ;;  %4694 = vmatpush1.msra.mxu1 %v4947_v5  ;;  %v6099_v7 = vpop.f32.mrf.mxu0  ;;  %v1669_v5 = vld [vmem:[%s7300_s24 + $0xb0] sm:$0xff] }
 0x287   : > { %v1284_v29 = vpop.f32.mrf.mxu1  ;;  %2242 = vmatprep.subr.mxu0 %v5350_v17  ;;  %4663 = vmatprep.subr.mxu1 %v5350_v17  ;;  %7306 = vst [vmem:[#allocation30_spill] sm:$0xff] %v6099_v7 }
 0x288   : > { %4962 = vtanh.f32 %v1290_v6  ;;  %v1285_v23 = vadd.f32 %v1284_v29, %v5835_v8  ;;  %2243 = vmatpush1.msra.mxu0 %v4949_v12  ;;  %4695 = vmatpush1.msra.mxu1 %v4949_v12  ;;  %v1270_v8 = vadd.f32 %v4445_v33, %v5847_v14  ;;  %v6107_v35 = vpop.f32.mrf.mxu0  ;;  %v7307_v14 = vld [vmem:[#allocation20_spill] sm:$0xff]  ;;  %v1650_v6 = vld [vmem:[%s7300_s24 + $0x18] sm:$0xff]  ;;  %v1672_v12 = vld [vmem:[%s7300_s24 + $0xc8] sm:$0xff] }
 0x289   : > { %2244 = vmatprep.subr.mxu0 %v5350_v17  ;;  %4664 = vmatprep.subr.mxu1 %v5350_v17  ;;  %v1260_v58 = vadd.f32 %v6056_v39, %v7307_v14  ;;  %v2614_v29 = vld [vmem:[%s7294_s20 + $0x28] sm:$0xff]  ;;  %v1673_v14 = vld [vmem:[%s7300_s24 + $0xd0] sm:$0xff] }
 0x28a   : > { %4964 = vtanh.f32 %v1285_v23  ;;  %2245 = vmatpush1.msra.mxu0 %v4951_v45  ;;  %4696 = vmatpush1.msra.mxu1 %v4951_v45  ;;  %v6116_v16 = vpop.f32.mrf.mxu0  ;;  %v1649_v23 = vld [vmem:[%s7300_s24 + $0x10] sm:$0xff]  ;;  %v1671_v45 = vld [vmem:[%s7300_s24 + $0xc0] sm:$0xff] }
 0x28b   : > { %2246 = vmatprep.subr.mxu0 %v5350_v17  ;;  %4665 = vmatprep.subr.mxu1 %v5350_v17  ;;  %4966 = vtanh.f32 %v1280_v46  ;;  %v2631_v46 = vld [vmem:[%s7294_s20 + $0xb0] sm:$0xff] }
 0x28c   : > { %2247 = vmatpush1.msra.mxu0 %v4953_v57  ;;  %4697 = vmatpush1.msra.mxu1 %v4953_v57  ;;  %4968 = vtanh.f32 %v1275_v55  ;;  %v6126_v62 = vpop.f32.mrf.mxu0  ;;  %v1652_v55 = vld [vmem:[%s7300_s24 + $0x28] sm:$0xff]  ;;  %v1674_v57 = vld [vmem:[%s7300_s24 + $0xd8] sm:$0xff] }
 0x28d   : > { %2248 = vmatprep.subr.mxu0 %v5350_v17  ;;  %4666 = vmatprep.subr.mxu1 %v5350_v17  ;;  %4970 = vtanh.f32 %v1270_v8  ;;  %v2613_v8 = vld [vmem:[%s7294_s20 + $0x20] sm:$0xff] }
 0x28e   : > { %2249 = vmatpush1.msra.mxu0 %v4955_v9  ;;  %4698 = vmatpush1.msra.mxu1 %v4955_v9  ;;  %4972 = vtanh.f32 %v1265_v11  ;;  %v6136_v44 = vpop.f32.mrf.mxu0  ;;  %v2630_v9 = vld [vmem:[%s7294_s20 + $0xa8] sm:$0xff] }
 0x28f   : > { %2250 = vmatprep.subr.mxu0 %v5350_v17  ;;  %4667 = vmatprep.subr.mxu1 %v5350_v17  ;;  %4974 = vtanh.f32 %v1260_v58  ;;  %v1654_v58 = vld [vmem:[%s7300_s24 + $0x38] sm:$0xff] }
 0x290   : > { %2251 = vmatpush1.msra.mxu0 %v4957_v30  ;;  %4699 = vmatpush1.msra.mxu1 %v4957_v30  ;;  %4976 = vtanh.f32 %v1255_v42  ;;  %v6146_v27 = vpop.f32.mrf.mxu0  ;;  %v1651_v30 = vld [vmem:[%s7300_s24 + $0x20] sm:$0xff] }
 0x291   : > { %2252 = vmatprep.subr.mxu0 %v5350_v17  ;;  %4668 = vmatprep.subr.mxu1 %v5350_v17  ;;  %4978 = vtanh.f32 %v1250_v43  ;;  %v2629_v42 = vld [vmem:[%s7294_s20 + $0xa0] sm:$0xff] }
 0x292   : > { %2253 = vmatpush1.msra.mxu0 %v4959_v59  ;;  %4700 = vmatpush1.msra.mxu1 %v4959_v59  ;;  %4980 = vtanh.f32 %v1245_v51  ;;  %v6156_v22 = vpop.f32.mrf.mxu0  ;;  %v1676_v59 = vld [vmem:[%s7300_s24 + $0xe8] sm:$0xff]  ;;  %v1675_v43 = vld [vmem:[%s7300_s24 + $0xe0] sm:$0xff]  ;;  %v2611_v51 = vld [vmem:[%s7294_s20 + $0x10] sm:$0xff] }
 0x293   : > { %2254 = vmatprep.subr.mxu0 %v5350_v17  ;;  %4669 = vmatprep.subr.mxu1 %v5350_v17  ;;  %4982 = vtanh.f32 %v1240_v36  ;;  %v1655_v36 = vld [vmem:[%s7300_s24 + $0x40] sm:$0xff] }
 0x294   : > { %2255 = vmatpush1.msra.mxu0 %v4961_v60  ;;  %4701 = vmatpush1.msra.mxu1 %v4961_v60  ;;  %4984 = vtanh.f32 %v1235_v1  ;;  %v6164_v47 = vpop.f32.mrf.mxu0  ;;  %v1658_v1 = vld [vmem:[%s7300_s24 + $0x58] sm:$0xff] }
 0x295   : > { %v4963_v21 = vpop.eup %4962  ;;  %2256 = vmatprep.subr.mxu0 %v5350_v17  ;;  %4670 = vmatprep.subr.mxu1 %v5350_v17  ;;  %4986 = vtanh.f32 %v1230_v38  ;;  %v2610_v38 = vld [vmem:[%s7294_s20 + $0x8] sm:$0xff] }
 0x296   : > { %2257 = vmatpush2.msra.mxu0 %v4963_v21  ;;  %4702 = vmatpush2.msra.mxu1 %v4963_v21  ;;  %4988 = vtanh.f32 %v1225_v25  ;;  %v6170_v20 = vpop.f32.mrf.mxu0  ;;  %v1656_v21 = vld [vmem:[%s7300_s24 + $0x48] sm:$0xff] }
 0x297   : > { %v4965_v39 = vpop.eup %4964  ;;  %2258 = vmatprep.subr.mxu0 %v5350_v17  ;;  %4671 = vmatprep.subr.mxu1 %v5350_v17  ;;  %4990 = vtanh.f32 %v1220_v40  ;;  %v1679_v40 = vld [vmem:[%s7300_s24 + $0x100] sm:$0xff] }
 0x298   : > { %2259 = vmatpush2.msra.mxu0 %v4965_v39  ;;  %4703 = vmatpush2.msra.mxu1 %v4965_v39  ;;  %v4967_v15 = vpop.eup %4966  ;;  %4992 = vtanh.f32 %v1215_v37  ;;  %v6176_v41 = vpop.f32.mrf.mxu0  ;;  %v2628_v39 = vld [vmem:[%s7294_s20 + $0x98] sm:$0xff] }
 0x299   : > { %2260 = vmatprep.subr.mxu0 %v5350_v17  ;;  %4672 = vmatprep.subr.mxu1 %v5350_v17  ;;  %v4969_v49 = vpop.eup %4968  ;;  %v1682_v37 = vld [vmem:[%s7300_s24 + $0x118] sm:$0xff] }
 0x29a   : > { %2261 = vmatpush2.msra.mxu0 %v4967_v15  ;;  %4704 = vmatpush2.msra.mxu1 %v4967_v15  ;;  %v4971_v19 = vpop.eup %4970  ;;  %v6182_v18 = vpop.f32.mrf.mxu0  ;;  %v1677_v15 = vld [vmem:[%s7300_s24 + $0xf0] sm:$0xff] }
 0x29b   : > { %2262 = vmatprep.subr.mxu0 %v5350_v17  ;;  %4673 = vmatprep.subr.mxu1 %v5350_v17  ;;  %v4973_v33 = vpop.eup %4972 }
 0x29c   : > { %2263 = vmatpush2.msra.mxu0 %v4969_v49  ;;  %4705 = vmatpush2.msra.mxu1 %v4969_v49  ;;  %v4975_v56 = vpop.eup %4974  ;;  %v1680_v49 = vld [vmem:[%s7300_s24 + $0x108] sm:$0xff] }
 0x29d   : > { %2264 = vmatprep.subr.mxu0 %v5350_v17  ;;  %4674 = vmatprep.subr.mxu1 %v5350_v17  ;;  %v4977_v34 = vpop.eup %4976 }
 0x29e   : > { %2265 = vmatpush2.msra.mxu0 %v4971_v19  ;;  %4706 = vmatpush2.msra.mxu1 %v4971_v19  ;;  %v4979_v50 = vpop.eup %4978  ;;  %v2627_v19 = vld [vmem:[%s7294_s20 + $0x90] sm:$0xff] }
 0x29f   : > { %2266 = vmatprep.subr.mxu0 %v5350_v17  ;;  %4675 = vmatprep.subr.mxu1 %v5350_v17  ;;  %v4981_v13 = vpop.eup %4980 }
 0x2a0   : > { %2267 = vmatpush2.msra.mxu0 %v4973_v33  ;;  %4707 = vmatpush2.msra.mxu1 %v4973_v33  ;;  %v4983_v48 = vpop.eup %4982  ;;  %v1657_v33 = vld [vmem:[%s7300_s24 + $0x50] sm:$0xff] }
 0x2a1   : > { %2268 = vmatprep.subr.mxu0 %v5350_v17  ;;  %4676 = vmatprep.subr.mxu1 %v5350_v17  ;;  %v4985_v26 = vpop.eup %4984 }
 0x2a2   : > { %2269 = vmatpush2.msra.mxu0 %v4975_v56  ;;  %4708 = vmatpush2.msra.mxu1 %v4975_v56  ;;  %v4987_v3 = vpop.eup %4986  ;;  %v1660_v56 = vld [vmem:[%s7300_s24 + $0x68] sm:$0xff] }
 0x2a3   : > { %2270 = vmatprep.subr.mxu0 %v5350_v17  ;;  %4677 = vmatprep.subr.mxu1 %v5350_v17  ;;  %v4989_v24 = vpop.eup %4988 }
 0x2a4   : > { %2271 = vmatpush2.msra.mxu0 %v4977_v34  ;;  %4709 = vmatpush2.msra.mxu1 %v4977_v34  ;;  %v4991_v28 = vpop.eup %4990  ;;  %v2609_v34 = vld [vmem:[%s7294_s20] sm:$0xff] }
 0x2a5   : > { %2272 = vmatprep.subr.mxu0 %v5350_v17  ;;  %4678 = vmatprep.subr.mxu1 %v5350_v17  ;;  %v4993_v54 = vpop.eup %4992 }
 0x2a6   : > { %2273 = vmatpush2.msra.mxu0 %v4979_v50  ;;  %4710 = vmatpush2.msra.mxu1 %v4979_v50  ;;  %v2626_v50 = vld [vmem:[%s7294_s20 + $0x88] sm:$0xff] }
 0x2a7   : > { %2274 = vmatprep.subr.mxu0 %v5350_v17  ;;  %4679 = vmatprep.subr.mxu1 %v5350_v17 }
 0x2a8   : > { %2275 = vmatpush2.msra.mxu0 %v4981_v13  ;;  %4711 = vmatpush2.msra.mxu1 %v4981_v13 }
 0x2a9   : > { %2276 = vmatprep.subr.mxu0 %v5350_v17  ;;  %4680 = vmatprep.subr.mxu1 %v5350_v17 }
 0x2aa   : > { %2277 = vmatpush2.msra.mxu0 %v4983_v48  ;;  %4712 = vmatpush2.msra.mxu1 %v4983_v48  ;;  %v1659_v48 = vld [vmem:[%s7300_s24 + $0x60] sm:$0xff] }
 0x2ab   : > { %2278 = vmatprep.subr.mxu0 %v5350_v17  ;;  %4681 = vmatprep.subr.mxu1 %v5350_v17 }
 0x2ac   : > { %2279 = vmatpush2.msra.mxu0 %v4985_v26  ;;  %4713 = vmatpush2.msra.mxu1 %v4985_v26  ;;  %v1681_v26 = vld [vmem:[%s7300_s24 + $0x110] sm:$0xff] }
 0x2ad   : > { %2280 = vmatprep.subr.mxu0 %v5350_v17  ;;  %4682 = vmatprep.subr.mxu1 %v5350_v17 }
 0x2ae   : > { %2281 = vmatpush2.msra.mxu0 %v4987_v3  ;;  %4714 = vmatpush2.msra.mxu1 %v4987_v3  ;;  %v1662_v3 = vld [vmem:[%s7300_s24 + $0x78] sm:$0xff] }
 0x2af   : > { %2282 = vmatprep.subr.mxu0 %v5350_v17  ;;  %4683 = vmatprep.subr.mxu1 %v5350_v17 }
 0x2b0   : > { %2283 = vmatpush2.msra.mxu0 %v4989_v24  ;;  %4715 = vmatpush2.msra.mxu1 %v4989_v24  ;;  %v1684_v24 = vld [vmem:[%s7300_s24 + $0x128] sm:$0xff] }
 0x2b1   : > { %2284 = vmatprep.subr.mxu0 %v5350_v17  ;;  %4684 = vmatprep.subr.mxu1 %v5350_v17 }
 0x2b2   : > { %2285 = vmatpush2.msra.mxu0 %v4991_v28  ;;  %4716 = vmatpush2.msra.mxu1 %v4991_v28  ;;  %v2625_v28 = vld [vmem:[%s7294_s20 + $0x80] sm:$0xff] }
 0x2b3   : > { %2286 = vmatprep.subr.mxu0 %v5350_v17  ;;  %4685 = vmatprep.subr.mxu1 %v5350_v17  ;;  %v6204_v17 = vpop.f32.mrf.mxu0 }
 0x2b4   : > { %2287 = vmatpush2.msra.mxu0 %v4993_v54  ;;  %4717 = vmatpush2.msra.mxu1 %v4993_v54  ;;  %7312 = vst [vmem:[#allocation20_spill] sm:$0xff] %v6204_v17  ;;  %v1661_v54 = vld [vmem:[%s7300_s24 + $0x70] sm:$0xff] }
 0x2b5   : > { %2289 = vmatmul.mubr.f32.vlgmr.msra.gmra.mxu0 %v1647_v53  ;;  %2344 = vmatmul.mubr.f32.vlgmr.msra.gmra.mxu1 %v1669_v5  ;;  %v6224_v11 = vpop.f32.mrf.mxu0  ;;  %v2656_v53 = vld [vmem:[%s7294_s20 + $0x178] sm:$0xff] }
 0x2b6   : > { %2293 = vmatprep.mubr.f32.mxu0 %v1650_v6  ;;  %2348 = vmatprep.mubr.f32.mxu1 %v1672_v12  ;;  %7313 = vst [vmem:[#allocation21_spill] sm:$0xff] %v6224_v11  ;;  %v1683_v6 = vld [vmem:[%s7300_s24 + $0x120] sm:$0xff]  ;;  %v1664_v12 = vld [vmem:[%s7300_s24 + $0x88] sm:$0xff] }
 0x2b7   : > { %2700 = vperm.xlu0 %4855, %v2614_v29   ;;  %2785 = vperm.xlu1 %4856, %v2631_v46   ;;  %v6244_v60 = vpop.f32.mrf.mxu0  ;;  %v1686_v29 = vld [vmem:[%s7300_s24 + $0x138] sm:$0xff]  ;;  %v2655_v46 = vld [vmem:[%s7294_s20 + $0x170] sm:$0xff] }
 0x2b8   : > { %7314 = vst [vmem:[#allocation22_spill] sm:$0xff] %v6244_v60 }
 0x2b9   : > { %2294 = vmatmul.mubr.f32.gmra.mxu0 %v1649_v23  ;;  %2349 = vmatmul.mubr.f32.gmra.mxu1 %v1671_v45  ;;  %v6264_v32 = vpop.f32.mrf.mxu0  ;;  %v2672_v23 = vld [vmem:[%s7294_s20 + $0x1f8] sm:$0xff] }
 0x2ba   : > { %2298 = vmatprep.mubr.f32.mxu0 %v1652_v55  ;;  %2353 = vmatprep.mubr.f32.mxu1 %v1674_v57  ;;  %7315 = vst [vmem:[#allocation23_spill] sm:$0xff] %v6264_v32  ;;  %v1663_v55 = vld [vmem:[%s7300_s24 + $0x80] sm:$0xff]  ;;  %v1685_v57 = vld [vmem:[%s7300_s24 + $0x130] sm:$0xff] }
 0x2bb   : > { %2695 = vperm.xlu0 %4855, %v2613_v8   ;;  %2780 = vperm.xlu1 %4856, %v2630_v9   ;;  %v6284_v25 = vpop.f32.mrf.mxu0  ;;  %v1666_v8 = vld [vmem:[%s7300_s24 + $0x98] sm:$0xff]  ;;  %v1688_v9 = vld [vmem:[%s7300_s24 + $0x148] sm:$0xff] }
 0x2bc   : > { %7316 = vst [vmem:[#allocation24_spill] sm:$0xff] %v6284_v25 }
 0x2bd   : > { %2299 = vmatmul.mubr.f32.gmra.mxu0 %v1651_v30  ;;  %2354 = vmatmul.mubr.f32.gmra.mxu1 %v1673_v14  ;;  %v6304_v13 = vpop.f32.mrf.mxu0  ;;  %v2654_v30 = vld [vmem:[%s7294_s20 + $0x168] sm:$0xff]  ;;  %v2671_v14 = vld [vmem:[%s7294_s20 + $0x1f0] sm:$0xff] }
 0x2be   : > { %2303 = vmatprep.mubr.f32.mxu0 %v1654_v58  ;;  %2358 = vmatprep.mubr.f32.mxu1 %v1676_v59  ;;  %7317 = vst [vmem:[#allocation31_spill] sm:$0xff] %v6304_v13  ;;  %v1665_v59 = vld [vmem:[%s7300_s24 + $0x90] sm:$0xff] }
 0x2bf   : > { %2690 = vperm.xlu0 %4855, %v2612_v31   ;;  %2775 = vperm.xlu1 %4856, %v2629_v42   ;;  %v6324_v5 = vpop.f32.mrf.mxu0  ;;  %v1687_v31 = vld [vmem:[%s7300_s24 + $0x140] sm:$0xff]  ;;  %v1668_v42 = vld [vmem:[%s7300_s24 + $0xa8] sm:$0xff] }
 0x2c1   : > { %2304 = vmatmul.mubr.f32.gmra.mxu0 %v1653_v61  ;;  %2359 = vmatmul.mubr.f32.gmra.mxu1 %v1675_v43  ;;  %v6344_v45 = vpop.f32.mrf.mxu0  ;;  %v1690_v61 = vld [vmem:[%s7300_s24 + $0x158] sm:$0xff]  ;;  %v2653_v43 = vld [vmem:[%s7294_s20 + $0x160] sm:$0xff] }
 0x2c2   : > { %2308 = vmatprep.mubr.f32.mxu0 %v1656_v21  ;;  %2363 = vmatprep.mubr.f32.mxu1 %v1678_v63  ;;  %v2670_v21 = vld [vmem:[%s7294_s20 + $0x1e8] sm:$0xff] }
 0x2c3   : > { %2685 = vperm.xlu0 %4855, %v2611_v51   ;;  %2770 = vperm.xlu1 %4856, %v2628_v39   ;;  %v6364_v58 = vpop.f32.mrf.mxu0  ;;  %v1667_v51 = vld [vmem:[%s7300_s24 + $0xa0] sm:$0xff]  ;;  %v1689_v39 = vld [vmem:[%s7300_s24 + $0x150] sm:$0xff] }
 0x2c5   : > { %2309 = vmatmul.mubr.f32.gmra.mxu0 %v1655_v36  ;;  %2364 = vmatmul.mubr.f32.gmra.mxu1 %v1677_v15  ;;  %v6384_v63 = vpop.f32.mrf.mxu0  ;;  %v1692_v36 = vld [vmem:[%s7300_s24 + $0x168] sm:$0xff]  ;;  %v2652_v15 = vld [vmem:[%s7294_s20 + $0x158] sm:$0xff] }
 0x2c6   : > { %2313 = vmatprep.mubr.f32.mxu0 %v1658_v1  ;;  %2368 = vmatprep.mubr.f32.mxu1 %v1680_v49  ;;  %v2669_v1 = vld [vmem:[%s7294_s20 + $0x1e0] sm:$0xff] }
 0x2c7   : > { %2680 = vperm.xlu0 %4855, %v2610_v38   ;;  %2765 = vperm.xlu1 %4856, %v2627_v19   ;;  %v6401_v49 = vpop.f32.mrf.mxu0  ;;  %v1691_v38 = vld [vmem:[%s7300_s24 + $0x160] sm:$0xff]  ;;  %v1694_v19 = vld [vmem:[%s7300_s24 + $0x178] sm:$0xff] }
 0x2c9   : > { %2314 = vmatmul.mubr.f32.gmra.mxu0 %v1657_v33  ;;  %2369 = vmatmul.mubr.f32.gmra.mxu1 %v1679_v40  ;;  %v2651_v33 = vld [vmem:[%s7294_s20 + $0x150] sm:$0xff]  ;;  %v2668_v40 = vld [vmem:[%s7294_s20 + $0x1d8] sm:$0xff] }
 0x2ca   : > { %2318 = vmatprep.mubr.f32.mxu0 %v1660_v56  ;;  %2373 = vmatprep.mubr.f32.mxu1 %v1682_v37  ;;  %v6415_v56 = vpop.f32.mrf.mxu0  ;;  %v1693_v37 = vld [vmem:[%s7300_s24 + $0x170] sm:$0xff] }
 0x2cb   : > { %2675 = vperm.xlu0 %4855, %v2609_v34   ;;  %2760 = vperm.xlu1 %4856, %v2626_v50   ;;  %v1696_v34 = vld [vmem:[%s7300_s24 + $0x188] sm:$0xff] }
 0x2cc   : > { %v2650_v50 = vld [vmem:[%s7294_s20 + $0x148] sm:$0xff] }
 0x2cd   : > { %2319 = vmatmul.mubr.f32.gmra.mxu0 %v1659_v48  ;;  %2374 = vmatmul.mubr.f32.gmra.mxu1 %v1681_v26  ;;  %v2667_v48 = vld [vmem:[%s7294_s20 + $0x1d0] sm:$0xff]  ;;  %v6429_v26 = vpop.f32.mrf.mxu0 }
 0x2ce   : > { %2323 = vmatprep.mubr.f32.mxu0 %v1662_v3  ;;  %2378 = vmatprep.mubr.f32.mxu1 %v1684_v24  ;;  %v1695_v3 = vld [vmem:[%s7300_s24 + $0x180] sm:$0xff]  ;;  %v1698_v24 = vld [vmem:[%s7300_s24 + $0x198] sm:$0xff] }
 0x2cf   : > { %2755 = vperm.xlu1 %4856, %v2625_v28   ;;  %2910 = vperm.xlu0 %4855, %v2656_v53   ;;  %v2649_v28 = vld [vmem:[%s7294_s20 + $0x140] sm:$0xff]  ;;  %v2666_v53 = vld [vmem:[%s7294_s20 + $0x1c8] sm:$0xff] }
 0x2d1   : > { %2324 = vmatmul.mubr.f32.gmra.mxu0 %v1661_v54  ;;  %2379 = vmatmul.mubr.f32.gmra.mxu1 %v1683_v6  ;;  %v6443_v54 = vpop.f32.mrf.mxu0  ;;  %v1697_v6 = vld [vmem:[%s7300_s24 + $0x190] sm:$0xff] }
 0x2d2   : > { %2328 = vmatprep.mubr.f32.mxu0 %v1664_v12  ;;  %2383 = vmatprep.mubr.f32.mxu1 %v1686_v29  ;;  %v1700_v12 = vld [vmem:[%s7300_s24 + $0x1a8] sm:$0xff]  ;;  %v2648_v29 = vld [vmem:[%s7294_s20 + $0x138] sm:$0xff] }
 0x2d3   : > { %2905 = vperm.xlu0 %4855, %v2655_v46   ;;  %2990 = vperm.xlu1 %4856, %v2672_v23   ;;  %v2665_v46 = vld [vmem:[%s7294_s20 + $0x1c0] sm:$0xff]  ;;  %v6457_v23 = vpop.f32.mrf.mxu0 }
 0x2d5   : > { %2329 = vmatmul.mubr.f32.gmra.mxu0 %v1663_v55  ;;  %2384 = vmatmul.mubr.f32.gmra.mxu1 %v1685_v57  ;;  %v1699_v55 = vld [vmem:[%s7300_s24 + $0x1a0] sm:$0xff]  ;;  %v1702_v57 = vld [vmem:[%s7300_s24 + $0x1b8] sm:$0xff] }
 0x2d6   : > { %2333 = vmatprep.mubr.f32.mxu0 %v1666_v8  ;;  %2388 = vmatprep.mubr.f32.mxu1 %v1688_v9  ;;  %v2647_v8 = vld [vmem:[%s7294_s20 + $0x130] sm:$0xff]  ;;  %v2664_v9 = vld [vmem:[%s7294_s20 + $0x1b8] sm:$0xff] }
 0x2d7   : > { %2900 = vperm.xlu0 %4855, %v2654_v30   ;;  %2985 = vperm.xlu1 %4856, %v2671_v14   ;;  %v6471_v30 = vpop.f32.mrf.mxu0  ;;  %v1701_v14 = vld [vmem:[%s7300_s24 + $0x1b0] sm:$0xff] }
 0x2d9   : > { %2334 = vmatmul.mubr.f32.gmra.mxu0 %v1665_v59  ;;  %2389 = vmatmul.mubr.f32.gmra.mxu1 %v1687_v31  ;;  %v1704_v59 = vld [vmem:[%s7300_s24 + $0x1c8] sm:$0xff] }
 0x2da   : > { %2338 = vmatprep.mubr.f32.mxu0 %v1668_v42  ;;  %2393 = vmatprep.mubr.f32.mxu1 %v1690_v61  ;;  %v2646_v31 = vld [vmem:[%s7294_s20 + $0x128] sm:$0xff]  ;;  %v2663_v42 = vld [vmem:[%s7294_s20 + $0x1b0] sm:$0xff]  ;;  %v6485_v61 = vpop.f32.mrf.mxu0 }
 0x2db   : > { %2895 = vperm.xlu0 %4855, %v2653_v43   ;;  %2980 = vperm.xlu1 %4856, %v2670_v21   ;;  %7318 = vst [vmem:[#allocation32_spill] sm:$0xff] %v6485_v61  ;;  %v1703_v43 = vld [vmem:[%s7300_s24 + $0x1c0] sm:$0xff]  ;;  %v1706_v21 = vld [vmem:[%s7300_s24 + $0x1d8] sm:$0xff]  ;;  %v1761_v61 = vld [vmem:[%s7300_s24 + $0x390] sm:$0xff] }
 0x2dd   : > { %2339 = vmatmul.mubr.f32.gmra.mxu0 %v1667_v51  ;;  %2394 = vmatmul.mubr.f32.gmra.mxu1 %v1689_v39  ;;  %v2645_v51 = vld [vmem:[%s7294_s20 + $0x120] sm:$0xff]  ;;  %v2662_v39 = vld [vmem:[%s7294_s20 + $0x1a8] sm:$0xff] }
 0x2de   : > { %2398 = vmatprep.mubr.f32.mxu1 %v1692_v36  ;;  %v6499_v36 = vpop.f32.mrf.mxu0 }
 0x2df   : > { %2890 = vperm.xlu0 %4855, %v2652_v15   ;;  %2975 = vperm.xlu1 %4856, %v2669_v1   ;;  %7319 = vst [vmem:[#allocation33_spill] sm:$0xff] %v6499_v36  ;;  %v1705_v15 = vld [vmem:[%s7300_s24 + $0x1d0] sm:$0xff]  ;;  %v1708_v1 = vld [vmem:[%s7300_s24 + $0x1e8] sm:$0xff] }
 0x2e0   : > { %v1757_v36 = vld [vmem:[%s7300_s24 + $0x370] sm:$0xff] }
 0x2e1   : > { %2399 = vmatmul.mubr.f32.gmra.mxu1 %v1691_v38  ;;  %v2644_v38 = vld [vmem:[%s7294_s20 + $0x118] sm:$0xff] }
 0x2e2   : > { %2403 = vmatprep.mubr.f32.mxu1 %v1694_v19  ;;  %v2661_v19 = vld [vmem:[%s7294_s20 + $0x1a0] sm:$0xff] }
 0x2e3   : > { %2885 = vperm.xlu0 %4855, %v2651_v33   ;;  %2970 = vperm.xlu1 %4856, %v2668_v40   ;;  %v6513_v33 = vpop.f32.mrf.mxu0  ;;  %v1707_v40 = vld [vmem:[%s7300_s24 + $0x1e0] sm:$0xff] }
 0x2e4   : > { %7320 = vst [vmem:[#allocation34_spill] sm:$0xff] %v6513_v33 }
 0x2e5   : > { %2404 = vmatmul.mubr.f32.gmra.mxu1 %v1693_v37  ;;  %v1710_v37 = vld [vmem:[%s7300_s24 + $0x1f8] sm:$0xff] }
 0x2e6   : > { %2408 = vmatprep.mubr.f32.mxu1 %v1696_v34  ;;  %v2643_v34 = vld [vmem:[%s7294_s20 + $0x110] sm:$0xff] }
 0x2e7   : > { %2880 = vperm.xlu0 %4855, %v2650_v50   ;;  %2965 = vperm.xlu1 %4856, %v2667_v48   ;;  %v2660_v50 = vld [vmem:[%s7294_s20 + $0x198] sm:$0xff]  ;;  %v6527_v48 = vpop.f32.mrf.mxu0 }
 0x2e8   : > { %7321 = vst [vmem:[#allocation35_spill] sm:$0xff] %v6527_v48  ;;  %v1765_v48 = vld [vmem:[%s7300_s24 + $0x3b0] sm:$0xff] }
 0x2e9   : > { %2409 = vmatmul.mubr.f32.gmra.mxu1 %v1695_v3  ;;  %v1709_v3 = vld [vmem:[%s7300_s24 + $0x1f0] sm:$0xff] }
 0x2ea   : > { %2413 = vmatprep.mubr.f32.mxu1 %v1698_v24  ;;  %v1712_v24 = vld [vmem:[%s7300_s24 + $0x208] sm:$0xff] }
 0x2eb   : > { %2875 = vperm.xlu0 %4855, %v2649_v28   ;;  %2960 = vperm.xlu1 %4856, %v2666_v53   ;;  %v2642_v28 = vld [vmem:[%s7294_s20 + $0x108] sm:$0xff]  ;;  %v2659_v53 = vld [vmem:[%s7294_s20 + $0x190] sm:$0xff] }
 0x2ed   : > { %2414 = vmatmul.mubr.f32.gmra.mxu1 %v1697_v6  ;;  %v6541_v6 = vpop.f32.mrf.mxu0 }
 0x2ee   : > { %2418 = vmatprep.mubr.f32.mxu1 %v1700_v12  ;;  %7322 = vst [vmem:[#allocation36_spill] sm:$0xff] %v6541_v6  ;;  %v1711_v12 = vld [vmem:[%s7300_s24 + $0x200] sm:$0xff] }
 0x2ef   : > { %2870 = vperm.xlu0 %4855, %v2648_v29   ;;  %2955 = vperm.xlu1 %4856, %v2665_v46   ;;  %v1714_v29 = vld [vmem:[%s7300_s24 + $0x218] sm:$0xff]  ;;  %v2641_v46 = vld [vmem:[%s7294_s20 + $0x100] sm:$0xff] }
 0x2f1   : > { %2419 = vmatmul.mubr.f32.gmra.mxu1 %v1699_v55  ;;  %v2658_v55 = vld [vmem:[%s7294_s20 + $0x188] sm:$0xff] }
 0x2f2   : > { %2423 = vmatprep.mubr.f32.mxu1 %v1702_v57  ;;  %v6555_v57 = vpop.f32.mrf.mxu0 }
 0x2f3   : > { %2865 = vperm.xlu0 %4855, %v2647_v8   ;;  %2950 = vperm.xlu1 %4856, %v2664_v9   ;;  %7323 = vst [vmem:[#allocation37_spill] sm:$0xff] %v6555_v57  ;;  %v1713_v8 = vld [vmem:[%s7300_s24 + $0x210] sm:$0xff]  ;;  %v1716_v9 = vld [vmem:[%s7300_s24 + $0x228] sm:$0xff] }
 0x2f5   : > { %2424 = vmatmul.mubr.f32.gmra.mxu1 %v1701_v14  ;;  %v2657_v14 = vld [vmem:[%s7294_s20 + $0x180] sm:$0xff] }
 0x2f6   : > { %2428 = vmatprep.mubr.f32.mxu1 %v1704_v59  ;;  %v6566_v59 = vpop.f32.mrf.mxu0 }
 0x2f7   : > { %2860 = vperm.xlu0 %4855, %v2646_v31   ;;  %2945 = vperm.xlu1 %4856, %v2663_v42   ;;  %7324 = vst [vmem:[#allocation38_spill] sm:$0xff] %v6566_v59  ;;  %v1715_v31 = vld [vmem:[%s7300_s24 + $0x220] sm:$0xff]  ;;  %v1718_v42 = vld [vmem:[%s7300_s24 + $0x238] sm:$0xff] }
 0x2f9   : > { %2429 = vmatmul.mubr.f32.gmra.mxu1 %v1703_v43  ;;  %v6574_v43 = vpop.f32.mrf.mxu0 }
 0x2fa   : > { %2433 = vmatprep.mubr.f32.mxu1 %v1706_v21  ;;  %7325 = vst [vmem:[#allocation39_spill] sm:$0xff] %v6574_v43  ;;  %v1717_v21 = vld [vmem:[%s7300_s24 + $0x230] sm:$0xff] }
 0x2fb   : > { %2855 = vperm.xlu0 %4855, %v2645_v51   ;;  %2940 = vperm.xlu1 %4856, %v2662_v39   ;;  %v1720_v51 = vld [vmem:[%s7300_s24 + $0x248] sm:$0xff]  ;;  %v6582_v39 = vpop.f32.mrf.mxu0 }
 0x2fc   : > { %7326 = vst [vmem:[#allocation40_spill] sm:$0xff] %v6582_v39  ;;  %v6817_v39 = vpop.permute.xlu0 %2830 }
 0x2fd   : > { %2434 = vmatmul.mubr.f32.gmra.mxu1 %v1705_v15  ;;  %v1719_v15 = vld [vmem:[%s7300_s24 + $0x240] sm:$0xff] }
 0x2fe   : > { %2438 = vmatprep.mubr.f32.mxu1 %v1708_v1  ;;  %v1722_v1 = vld [vmem:[%s7300_s24 + $0x258] sm:$0xff] }
 0x2ff   : > { %2850 = vperm.xlu0 %4855, %v2644_v38   ;;  %2935 = vperm.xlu1 %4856, %v2661_v19   ;;  %v6590_v38 = vpop.f32.mrf.mxu0  ;;  %v1721_v19 = vld [vmem:[%s7300_s24 + $0x250] sm:$0xff] }
 0x300   : > { %7327 = vst [vmem:[#allocation41_spill] sm:$0xff] %v6590_v38 }
 0x301   : > { %2439 = vmatmul.mubr.f32.gmra.mxu1 %v1707_v40  ;;  %v1724_v40 = vld [vmem:[%s7300_s24 + $0x268] sm:$0xff] }
 0x302   : > { %2443 = vmatprep.mubr.f32.mxu1 %v1710_v37  ;;  %v6598_v37 = vpop.f32.mrf.mxu0 }
 0x303   : > { %2845 = vperm.xlu0 %4855, %v2643_v34   ;;  %2930 = vperm.xlu1 %4856, %v2660_v50   ;;  %7328 = vst [vmem:[#allocation42_spill] sm:$0xff] %v6598_v37  ;;  %v1723_v34 = vld [vmem:[%s7300_s24 + $0x260] sm:$0xff]  ;;  %v1726_v50 = vld [vmem:[%s7300_s24 + $0x278] sm:$0xff]  ;;  %v6829_v37 = vpop.permute.xlu0 %2745 }
 0x305   : > { %2444 = vmatmul.mubr.f32.gmra.mxu1 %v1709_v3  ;;  %v6606_v3 = vpop.f32.mrf.mxu0 }
 0x306   : > { %2448 = vmatprep.mubr.f32.mxu1 %v1712_v24  ;;  %7329 = vst [vmem:[#allocation43_spill] sm:$0xff] %v6606_v3  ;;  %v1725_v24 = vld [vmem:[%s7300_s24 + $0x270] sm:$0xff] }
 0x307   : > { %2840 = vperm.xlu0 %4855, %v2642_v28   ;;  %2925 = vperm.xlu1 %4856, %v2659_v53   ;;  %v1728_v28 = vld [vmem:[%s7300_s24 + $0x288] sm:$0xff]  ;;  %v6614_v53 = vpop.f32.mrf.mxu0 }
 0x308   : > { %7330 = vst [vmem:[#allocation44_spill] sm:$0xff] %v6614_v53 }
 0x309   : > { %2449 = vmatmul.mubr.f32.gmra.mxu1 %v1711_v12  ;;  %v1727_v12 = vld [vmem:[%s7300_s24 + $0x280] sm:$0xff] }
 0x30a   : > { %2453 = vmatprep.mubr.f32.mxu1 %v1714_v29  ;;  %v1730_v29 = vld [vmem:[%s7300_s24 + $0x298] sm:$0xff] }
 0x30b   : > { %2835 = vperm.xlu0 %4855, %v2641_v46   ;;  %2920 = vperm.xlu1 %4856, %v2658_v55   ;;  %v6622_v46 = vpop.f32.mrf.mxu0  ;;  %v1729_v55 = vld [vmem:[%s7300_s24 + $0x290] sm:$0xff] }
 0x30c   : > { %7331 = vst [vmem:[#allocation45_spill] sm:$0xff] %v6622_v46 }
 0x30d   : > { %2454 = vmatmul.mubr.f32.gmra.mxu1 %v1713_v8  ;;  %v1732_v8 = vld [vmem:[%s7300_s24 + $0x2a8] sm:$0xff] }
 0x30e   : > { %2458 = vmatprep.mubr.f32.mxu1 %v1716_v9  ;;  %v6630_v9 = vpop.f32.mrf.mxu0 }
 0x30f   : > { %2915 = vperm.xlu1 %4856, %v2657_v14   ;;  %7332 = vst [vmem:[#allocation46_spill] sm:$0xff] %v6630_v9  ;;  %v1731_v14 = vld [vmem:[%s7300_s24 + $0x2a0] sm:$0xff] }
 0x311   : > { %2459 = vmatmul.mubr.f32.gmra.mxu1 %v1715_v31  ;;  %v1734_v31 = vld [vmem:[%s7300_s24 + $0x2b8] sm:$0xff] }
 0x312   : > { %2463 = vmatprep.mubr.f32.mxu1 %v1718_v42  ;;  %v6638_v42 = vpop.f32.mrf.mxu0 }
 0x313   : > { %7333 = vst [vmem:[#allocation47_spill] sm:$0xff] %v6638_v42 }
 0x315   : > { %2464 = vmatmul.mubr.f32.gmra.mxu1 %v1717_v21  ;;  %v1733_v21 = vld [vmem:[%s7300_s24 + $0x2b0] sm:$0xff] }
 0x316   : > { %2468 = vmatprep.mubr.f32.mxu1 %v1720_v51  ;;  %v1736_v51 = vld [vmem:[%s7300_s24 + $0x2c8] sm:$0xff] }
 0x319   : > { %2469 = vmatmul.mubr.f32.gmra.mxu1 %v1719_v15  ;;  %v6646_v15 = vpop.f32.mrf.mxu0 }
 0x31a   : > { %2473 = vmatprep.mubr.f32.mxu1 %v1722_v1  ;;  %7334 = vst [vmem:[#allocation48_spill] sm:$0xff] %v6646_v15  ;;  %v1735_v1 = vld [vmem:[%s7300_s24 + $0x2c0] sm:$0xff] }
 0x31b   : > { %v1763_v15 = vld [vmem:[%s7300_s24 + $0x3a0] sm:$0xff] }
 0x31d   : > { %2474 = vmatmul.mubr.f32.gmra.mxu1 %v1721_v19  ;;  %v1738_v19 = vld [vmem:[%s7300_s24 + $0x2d8] sm:$0xff] }
 0x31e   : > { %2478 = vmatprep.mubr.f32.mxu1 %v1724_v40  ;;  %v6654_v40 = vpop.f32.mrf.mxu0 }
 0x31f   : > { %7335 = vst [vmem:[#allocation49_spill] sm:$0xff] %v6654_v40  ;;  %v1759_v40 = vld [vmem:[%s7300_s24 + $0x380] sm:$0xff] }
 0x321   : > { %2479 = vmatmul.mubr.f32.gmra.mxu1 %v1723_v34  ;;  %v1737_v34 = vld [vmem:[%s7300_s24 + $0x2d0] sm:$0xff] }
 0x322   : > { %2483 = vmatprep.mubr.f32.mxu1 %v1726_v50  ;;  %v1740_v50 = vld [vmem:[%s7300_s24 + $0x2e8] sm:$0xff] }
 0x325   : > { %2484 = vmatmul.mubr.f32.gmra.mxu1 %v1725_v24  ;;  %v6662_v24 = vpop.f32.mrf.mxu0 }
 0x326   : > { %2488 = vmatprep.mubr.f32.mxu1 %v1728_v28  ;;  %7336 = vst [vmem:[#allocation50_spill] sm:$0xff] %v6662_v24  ;;  %v1739_v28 = vld [vmem:[%s7300_s24 + $0x2e0] sm:$0xff]  ;;  %v1770_v24 = vld [vmem:[%s7300_s24 + $0x3d8] sm:$0xff] }
 0x329   : > { %2489 = vmatmul.mubr.f32.gmra.mxu1 %v1727_v12  ;;  %v1742_v12 = vld [vmem:[%s7300_s24 + $0x2f8] sm:$0xff] }
 0x32a   : > { %2493 = vmatprep.mubr.f32.mxu1 %v1730_v29  ;;  %v6670_v29 = vpop.f32.mrf.mxu0 }
 0x32b   : > { %7337 = vst [vmem:[#allocation51_spill] sm:$0xff] %v6670_v29 }
 0x32d   : > { %2494 = vmatmul.mubr.f32.gmra.mxu1 %v1729_v55  ;;  %v1741_v55 = vld [vmem:[%s7300_s24 + $0x2f0] sm:$0xff] }
 0x32e   : > { %2498 = vmatprep.mubr.f32.mxu1 %v1732_v8  ;;  %v1744_v8 = vld [vmem:[%s7300_s24 + $0x308] sm:$0xff] }
 0x331   : > { %2499 = vmatmul.mubr.f32.gmra.mxu1 %v1731_v14  ;;  %v6678_v14 = vpop.f32.mrf.mxu0 }
 0x332   : > { %2503 = vmatprep.mubr.f32.mxu1 %v1734_v31  ;;  %7338 = vst [vmem:[#allocation52_spill] sm:$0xff] %v6678_v14  ;;  %v1743_v31 = vld [vmem:[%s7300_s24 + $0x300] sm:$0xff] }
 0x335   : > { %2504 = vmatmul.mubr.f32.gmra.mxu1 %v1733_v21  ;;  %v1746_v21 = vld [vmem:[%s7300_s24 + $0x318] sm:$0xff] }
 0x336   : > { %2508 = vmatprep.mubr.f32.mxu1 %v1736_v51  ;;  %v6686_v51 = vpop.f32.mrf.mxu0 }
 0x337   : > { %7339 = vst [vmem:[#allocation53_spill] sm:$0xff] %v6686_v51 }
 0x339   : > { %2509 = vmatmul.mubr.f32.gmra.mxu1 %v1735_v1  ;;  %v1745_v1 = vld [vmem:[%s7300_s24 + $0x310] sm:$0xff] }
 0x33a   : > { %2513 = vmatprep.mubr.f32.mxu1 %v1738_v19  ;;  %v1748_v19 = vld [vmem:[%s7300_s24 + $0x328] sm:$0xff] }
 0x33d   : > { %2514 = vmatmul.mubr.f32.gmra.mxu1 %v1737_v34  ;;  %v6694_v34 = vpop.f32.mrf.mxu0 }
 0x33e   : > { %2518 = vmatprep.mubr.f32.mxu1 %v1740_v50  ;;  %7340 = vst [vmem:[#allocation54_spill] sm:$0xff] %v6694_v34  ;;  %v1747_v50 = vld [vmem:[%s7300_s24 + $0x320] sm:$0xff] }
 0x341   : > { %2519 = vmatmul.mubr.f32.gmra.mxu1 %v1739_v28  ;;  %v1750_v28 = vld [vmem:[%s7300_s24 + $0x338] sm:$0xff] }
 0x342   : > { %2523 = vmatprep.mubr.f32.mxu1 %v1742_v12  ;;  %v6702_v12 = vpop.f32.mrf.mxu0 }
 0x343   : > { %7341 = vst [vmem:[#allocation55_spill] sm:$0xff] %v6702_v12 }
 0x345   : > { %2524 = vmatmul.mubr.f32.gmra.mxu1 %v1741_v55  ;;  %v1749_v55 = vld [vmem:[%s7300_s24 + $0x330] sm:$0xff] }
 0x346   : > { %2528 = vmatprep.mubr.f32.mxu1 %v1744_v8  ;;  %v1752_v8 = vld [vmem:[%s7300_s24 + $0x348] sm:$0xff] }
 0x349   : > { %2529 = vmatmul.mubr.f32.gmra.mxu1 %v1743_v31  ;;  %v6710_v31 = vpop.f32.mrf.mxu0 }
 0x34a   : > { %2533 = vmatprep.mubr.f32.mxu1 %v1746_v21  ;;  %7342 = vst [vmem:[#allocation56_spill] sm:$0xff] %v6710_v31  ;;  %v1751_v21 = vld [vmem:[%s7300_s24 + $0x340] sm:$0xff] }
 0x34d   : > { %2534 = vmatmul.mubr.f32.gmra.mxu1 %v1745_v1  ;;  %v1754_v1 = vld [vmem:[%s7300_s24 + $0x358] sm:$0xff] }
 0x34e   : > { %2538 = vmatprep.mubr.f32.mxu1 %v1748_v19  ;;  %v6718_v19 = vpop.f32.mrf.mxu0 }
 0x34f   : > { %7343 = vst [vmem:[#allocation57_spill] sm:$0xff] %v6718_v19 }
 0x351   : > { %2539 = vmatmul.mubr.f32.gmra.mxu1 %v1747_v50  ;;  %v1753_v50 = vld [vmem:[%s7300_s24 + $0x350] sm:$0xff] }
 0x352   : > { %2543 = vmatprep.mubr.f32.mxu1 %v1750_v28  ;;  %v1756_v28 = vld [vmem:[%s7300_s24 + $0x368] sm:$0xff] }
 0x355   : > { %2544 = vmatmul.mubr.f32.gmra.mxu1 %v1749_v55  ;;  %v6726_v55 = vpop.f32.mrf.mxu0 }
 0x356   : > { %2548 = vmatprep.mubr.f32.mxu1 %v1752_v8  ;;  %7344 = vst [vmem:[#allocation58_spill] sm:$0xff] %v6726_v55  ;;  %v1755_v8 = vld [vmem:[%s7300_s24 + $0x360] sm:$0xff] }
 0x359   : > { %2549 = vmatmul.mubr.f32.gmra.mxu1 %v1751_v21  ;;  %v1758_v21 = vld [vmem:[%s7300_s24 + $0x378] sm:$0xff] }
 0x35a   : > { %2553 = vmatprep.mubr.f32.mxu1 %v1754_v1  ;;  %v6734_v1 = vpop.f32.mrf.mxu0 }
 0x35b   : > { %7345 = vst [vmem:[#allocation59_spill] sm:$0xff] %v6734_v1 }
 0x35d   : > { %2554 = vmatmul.mubr.f32.gmra.mxu1 %v1753_v50  ;;  %v1760_v50 = vld [vmem:[%s7300_s24 + $0x388] sm:$0xff] }
 0x35e   : > { %2558 = vmatprep.mubr.f32.mxu1 %v1756_v28  ;;  %v6742_v28 = vpop.f32.mrf.mxu0 }
 0x35f   : > { %7346 = vst [vmem:[#allocation60_spill] sm:$0xff] %v6742_v28 }
 0x361   : > { %2559 = vmatmul.mubr.f32.gmra.mxu1 %v1755_v8  ;;  %v1762_v8 = vld [vmem:[%s7300_s24 + $0x398] sm:$0xff] }
 0x362   : > { %2563 = vmatprep.mubr.f32.mxu1 %v1758_v21  ;;  %v6750_v21 = vpop.f32.mrf.mxu0 }
 0x363   : > { %7347 = vst [vmem:[#allocation61_spill] sm:$0xff] %v6750_v21 }
 0x365   : > { %2564 = vmatmul.mubr.f32.gmra.mxu1 %v1757_v36  ;;  %v1764_v36 = vld [vmem:[%s7300_s24 + $0x3a8] sm:$0xff] }
 0x366   : > { %2568 = vmatprep.mubr.f32.mxu1 %v1760_v50  ;;  %v6758_v50 = vpop.f32.mrf.mxu0 }
 0x367   : > { %7348 = vst [vmem:[#allocation62_spill] sm:$0xff] %v6758_v50 }
 0x369   : > { %2569 = vmatmul.mubr.f32.gmra.mxu1 %v1759_v40  ;;  %v1766_v40 = vld [vmem:[%s7300_s24 + $0x3b8] sm:$0xff] }
 0x36a   : > { %2573 = vmatprep.mubr.f32.mxu1 %v1762_v8  ;;  %v6766_v8 = vpop.f32.mrf.mxu0 }
 0x36b   : > { %7349 = vst [vmem:[#allocation63_spill] sm:$0xff] %v6766_v8 }
 0x36d   : > { %2574 = vmatmul.mubr.f32.gmra.mxu1 %v1761_v61  ;;  %v1768_v61 = vld [vmem:[%s7300_s24 + $0x3c8] sm:$0xff] }
 0x36e   : > { %2578 = vmatprep.mubr.f32.mxu1 %v1764_v36 }
 0x371   : > { %2579 = vmatmul.mubr.f32.gmra.mxu1 %v1763_v15  ;;  %v1767_v15 = vld [vmem:[%s7300_s24 + $0x3c0] sm:$0xff] }
 0x372   : > { %2583 = vmatprep.mubr.f32.mxu1 %v1766_v40 }
 0x375   : > { %v6774_v36 = vpop.f32.mrf.mxu0  ;;  %v6776_v29 = vpop.f32.mrf.mxu1  ;;  %2584 = vmatmul.mubr.f32.gmra.mxu1 %v1765_v48  ;;  %v1769_v48 = vld [vmem:[%s7300_s24 + $0x3d0] sm:$0xff] }
 0x376   : > { %7350 = vst [vmem:[#allocation64_spill] sm:$0xff] %v6774_v36  ;;  %2588 = vmatprep.mubr.f32.mxu1 %v1768_v61 }
 0x377   : > { %v2292_v33 = vpop.f32.mrf.mxu0  ;;  %v2347_v40 = vpop.f32.mrf.mxu1 }
 0x378   : > { %v1772_v33 = vld [vmem:[%s7300_s24 + $0x3e8] sm:$0xff] }
 0x379   : > { %v6784_v57 = vpop.f32.mrf.mxu0  ;;  %v6786_v51 = vpop.f32.mrf.mxu1  ;;  %2589 = vmatmul.mubr.f32.gmra.mxu1 %v1767_v15 }
 0x37a   : > { %7351 = vst [vmem:[#allocation65_spill] sm:$0xff] %v6784_v57  ;;  %2593 = vmatprep.mubr.f32.mxu1 %v1770_v24  ;;  %v1771_v24 = vld [vmem:[%s7300_s24 + $0x3e0] sm:$0xff] }
 0x37b   : > { %v2297_v61 = vpop.f32.mrf.mxu0  ;;  %v2352_v6 = vpop.f32.mrf.mxu1 }
 0x37c   : > { %v1774_v6 = vld [vmem:[%s7300_s24 + $0x3f8] sm:$0xff] }
 0x37d   : > { %v6794_v40 = vpop.f32.mrf.mxu0  ;;  %v6796_v14 = vpop.f32.mrf.mxu1  ;;  %2594 = vmatmul.mubr.f32.gmra.mxu1 %v1769_v48  ;;  %v1773_v48 = vld [vmem:[%s7300_s24 + $0x3f0] sm:$0xff] }
 0x37e   : > { %7352 = vst [vmem:[#allocation66_spill] sm:$0xff] %v6794_v40  ;;  %2598 = vmatprep.mubr.f32.mxu1 %v1772_v33 }
 0x37f   : > { %v2302_v15 = vpop.f32.mrf.mxu0  ;;  %v2357_v43 = vpop.f32.mrf.mxu1 }
 0x380   : > { %v6815_v43 = vpop.permute.xlu1 %2750 }
 0x381   : > { %v6804_v61 = vpop.f32.mrf.mxu0  ;;  %v6806_v12 = vpop.f32.mrf.mxu1  ;;  %2599 = vmatmul.mubr.f32.gmra.mxu1 %v1771_v24 }
 0x382   : > { %7353 = vst [vmem:[#allocation67_spill] sm:$0xff] %v6804_v61  ;;  %2603 = vmatprep.mubr.f32.mxu1 %v1774_v6 }
 0x383   : > { %v2307_v33 = vpop.f32.mrf.mxu0  ;;  %v2362_v59 = vpop.f32.mrf.mxu1 }
 0x384   : > { %v6823_v1 = vpop.permute.xlu1 %2825 }
 0x385   : > { %v6811_v34 = vpop.f32.mrf.mxu0  ;;  %v6813_v15 = vpop.f32.mrf.mxu1  ;;  %2604 = vmatmul.mubr.f32.gmra.mxu1 %v1773_v48 }
 0x386   : > { %7354 = vst [vmem:[#allocation68_spill] sm:$0xff] %v6811_v34 }
 0x387   : > { %v2312_v38 = vpop.f32.mrf.mxu0  ;;  %v2367_v19 = vpop.f32.mrf.mxu1 }
 0x388   : > { %v6835_v46 = vpop.permute.xlu1 %2820 }
 0x389   : > { %v6819_v31 = vpop.f32.mrf.mxu0  ;;  %v6821_v24 = vpop.f32.mrf.mxu1 }
 0x38a   : > { %7355 = vst [vmem:[#allocation69_spill] sm:$0xff] %v6819_v31  ;;  %7356 = vst [vmem:[#allocation70_spill] sm:$0xff] %v6821_v24 }
 0x38b   : > { %v2317_v6 = vpop.f32.mrf.mxu0  ;;  %v2372_v3 = vpop.f32.mrf.mxu1 }
 0x38c   : > { %v6837_v6 = vpop.permute.xlu0 %2740  ;;  %v6843_v8 = vpop.permute.xlu1 %2815 }
 0x38d   : > { %v6825_v59 = vpop.f32.mrf.mxu0  ;;  %v6827_v33 = vpop.f32.mrf.mxu1 }
 0x38e   : > { %7357 = vst [vmem:[#allocation71_spill] sm:$0xff] %v6825_v59  ;;  %7358 = vst [vmem:[#allocation72_spill] sm:$0xff] %v6827_v33 }
 0x38f   : > { %v2322_v48 = vpop.f32.mrf.mxu0  ;;  %v2377_v55 = vpop.f32.mrf.mxu1 }
 0x390   : > { %v6849_v9 = vpop.permute.xlu0 %2735  ;;  %v6855_v24 = vpop.permute.xlu1 %2810 }
 0x391   : > { %v6831_v38 = vpop.f32.mrf.mxu0  ;;  %v6833_v19 = vpop.f32.mrf.mxu1 }
 0x392   : > { %7359 = vst [vmem:[#allocation73_spill] sm:$0xff] %v6833_v19 }
 0x393   : > { %v2327_v21 = vpop.f32.mrf.mxu0  ;;  %v2382_v53 = vpop.f32.mrf.mxu1 }
 0x394   : > { %v6861_v17 = vpop.permute.xlu1 %2805 }
 0x395   : > { %v6839_v3 = vpop.f32.mrf.mxu0  ;;  %v6841_v50 = vpop.f32.mrf.mxu1 }
 0x396   : > { %7360 = vst [vmem:[#allocation74_spill] sm:$0xff] %v6841_v50 }
 0x397   : > { %v2332_v28 = vpop.f32.mrf.mxu0  ;;  %v2387_v42 = vpop.f32.mrf.mxu1 }
 0x398   : > { %v6857_v28 = vpop.permute.xlu0 %2730  ;;  %v6869_v4 = vpop.permute.xlu1 %2800 }
 0x399   : > { %v6845_v48 = vpop.f32.mrf.mxu0  ;;  %v6847_v55 = vpop.f32.mrf.mxu1 }
 0x39a   : > { %7361 = vst [vmem:[#allocation75_spill] sm:$0xff] %v6847_v55 }
 0x39b   : > { %v2337_v36 = vpop.f32.mrf.mxu0  ;;  %v2392_v0 = vpop.f32.mrf.mxu1 }
 0x39c   : > { %v6865_v40 = vpop.permute.xlu0 %2725  ;;  %v6873_v2 = vpop.permute.xlu1 %2795 }
 0x39d   : > { %v6851_v21 = vpop.f32.mrf.mxu0  ;;  %v6853_v53 = vpop.f32.mrf.mxu1 }
 0x39e   : > { %7362 = vst [vmem:[#allocation76_spill] sm:$0xff] %v6853_v53 }
 0x39f   : > { %v2397_v11 = vpop.f32.mrf.mxu1  ;;  %v2342_v52 = vpop.f32.mrf.mxu0 }
 0x3a0   : > { %v6871_v32 = vpop.permute.xlu0 %2720  ;;  %v6877_v34 = vpop.permute.xlu1 %2790 }
 0x3a1   : > { %v6859_v42 = vpop.f32.mrf.mxu1  ;;  %7364 = vst [vmem:[#allocation78_spill] sm:$0xff] %v6877_v34 }
 0x3a3   : > { %v2402_v57 = vpop.f32.mrf.mxu1 }
 0x3a4   : > { %v6875_v57 = vpop.permute.xlu0 %2715  ;;  %v6881_v10 = vpop.permute.xlu1 %2785 }
 0x3a5   : > { %v6863_v33 = vpop.f32.mrf.mxu1  ;;  %7363 = vst [vmem:[#allocation77_spill] sm:$0xff] %v6875_v57  ;;  %7366 = vst [vmem:[#allocation80_spill] sm:$0xff] %v6881_v10 }
 0x3a7   : > { %v2407_v0 = vpop.f32.mrf.mxu1 }
 0x3a8   : > { %v6879_v0 = vpop.permute.xlu0 %2710  ;;  %v6885_v53 = vpop.permute.xlu1 %2780 }
 0x3a9   : > { %v6867_v36 = vpop.f32.mrf.mxu1  ;;  %7365 = vst [vmem:[#allocation79_spill] sm:$0xff] %v6879_v0  ;;  %7368 = vst [vmem:[#allocation82_spill] sm:$0xff] %v6885_v53 }
 0x3ab   : > { %v2412_v19 = vpop.f32.mrf.mxu1 }
 0x3ac   : > { %v6883_v31 = vpop.permute.xlu0 %2705 }
 0x3ad   : > { %v2415_v52 = vpop.f32.mrf.mxu1  ;;  %7367 = vst [vmem:[#allocation81_spill] sm:$0xff] %v6883_v31 }
 0x3af   : > { %v2417_v11 = vpop.f32.mrf.mxu1 }
 0x3b0   : > { %v6889_v59 = vpop.permute.xlu0 %2700 }
 0x3b1   : > { %v2420_v61 = vpop.f32.mrf.mxu1 }
 0x3b3   : > { %v2422_v60 = vpop.f32.mrf.mxu1 }
 0x3b4   : > { %v2366_v60 = vadd.f32 %v6176_v41, %v6813_v15 }
 0x3b5   : > { %v2425_v50 = vpop.f32.mrf.mxu1 }
 0x3b6   : > { %v3008_v53 = vadd.f32 %v6815_v43, %v2366_v60  ;;  %v7382_v60 = vld [vmem:[#allocation75_spill] sm:$0xff] }
 0x3b7   : > { %v2427_v7 = vpop.f32.mrf.mxu1 }
 0x3b9   : > { %v2430_v55 = vpop.f32.mrf.mxu1 }
 0x3ba   : > { %v2431_v41 = vadd.f32 %v2430_v55, %v6443_v54  ;;  %v3122_v54 = vld [vmem:[#allocation8 + $0x8] sm:$0xff] }
 0x3bb   : > { %v2432_v13 = vpop.f32.mrf.mxu1  ;;  %3205 = vmatprep.mubr.f32.mxu0 %v3122_v54 }
 0x3bc   : > { %v2361_v13 = vadd.f32 %v6806_v12, %v6182_v18  ;;  %v2351_v18 = vadd.f32 %v6786_v51, %v6170_v20  ;;  %v6909_v12 = vpop.permute.xlu0 %2695  ;;  %v3021_v51 = vadd.f32 %v6843_v8, %v2431_v41 }
 0x3bd   : > { %v2435_v19 = vpop.f32.mrf.mxu1 }
 0x3be   : > { %v2436_v10 = vadd.f32 %v6429_v26, %v2435_v19  ;;  %v3007_v26 = vadd.f32 %v6829_v37, %v2361_v13  ;;  %v2421_v37 = vadd.f32 %v2420_v61, %v6415_v56  ;;  %v7381_v19 = vld [vmem:[#allocation31_spill] sm:$0xff]  ;;  %v7383_v13 = vld [vmem:[#allocation80_spill] sm:$0xff] }
 0x3bf   : > { %v2437_v11 = vpop.f32.mrf.mxu1 }
 0x3c0   : > { %v2356_v11 = vadd.f32 %v6164_v47, %v6796_v14  ;;  %v2426_v47 = vadd.f32 %v6401_v49, %v2425_v50  ;;  %v3022_v14 = vadd.f32 %v6835_v46, %v2436_v10  ;;  %v2341_v10 = vadd.f32 %v6851_v21, %v6156_v22  ;;  %v6930_v50 = vpop.permute.xlu0 %2690 }
 0x3c1   : > { %v2440_v25 = vpop.f32.mrf.mxu1  ;;  %v2411_v22 = vadd.f32 %v6867_v36, %v6384_v63  ;;  %v3019_v8 = vadd.f32 %v6861_v17, %v2421_v37  ;;  %v2326_v63 = vadd.f32 %v6107_v35, %v6831_v38  ;;  %v7375_v35 = vld [vmem:[#allocation76_spill] sm:$0xff]  ;;  %v7389_v37 = vld [vmem:[#allocation82_spill] sm:$0xff] }
 0x3c2   : > { %v2441_v7 = vadd.f32 %v2440_v25, %v6471_v30  ;;  %v6904_v30 = vpop.permute.xlu1 %2775  ;;  %v3020_v46 = vadd.f32 %v6855_v24, %v2426_v47  ;;  %v3003_v61 = vadd.f32 %v6865_v40, %v2341_v10  ;;  %v7376_v38 = vld [vmem:[#allocation24_spill] sm:$0xff]  ;;  %v7390_v10 = vld [vmem:[#allocation67_spill] sm:$0xff] }
 0x3c3   : > { %v2442_v57 = vpop.f32.mrf.mxu1  ;;  %v3017_v40 = vadd.f32 %v6873_v2, %v2411_v22  ;;  %v7379_v2 = vld [vmem:[#allocation29_spill] sm:$0xff] }
 0x3c4   : > { %v3023_v15 = vadd.f32 %v6823_v1, %v2441_v7  ;;  %v2336_v1 = vadd.f32 %v6126_v62, %v6845_v48  ;;  %v2406_v62 = vadd.f32 %v6324_v5, %v6863_v33  ;;  %v7372_v48 = vld [vmem:[#allocation71_spill] sm:$0xff]  ;;  %v7373_v33 = vld [vmem:[#allocation77_spill] sm:$0xff]  ;;  %v2686_v21 = vpop.permute.xlu0 %2685  ;;  %v2391_v7 = vadd.f32 %v7382_v60, %v7381_v19 }
 0x3c5   : > { %v2445_v0 = vpop.f32.mrf.mxu1  ;;  %v2321_v5 = vadd.f32 %v7372_v48, %v6116_v16 }
 0x3c6   : > { %v2446_v31 = vadd.f32 %v6457_v23, %v2445_v0  ;;  %v6926_v56 = vpop.permute.xlu1 %2770  ;;  %v3002_v17 = vadd.f32 %v6871_v32, %v2336_v1  ;;  %v2396_v32 = vadd.f32 %v7376_v38, %v7375_v35  ;;  %v7398_v38 = vld [vmem:[#allocation65_spill] sm:$0xff] }
 0x3c7   : > { %v2447_v34 = vpop.f32.mrf.mxu1 }
 0x3c8   : > { %v3024_v25 = vadd.f32 %v6817_v39, %v2446_v31  ;;  %v2346_v39 = vadd.f32 %v6146_v27, %v6776_v29  ;;  %v3006_v34 = vadd.f32 %v6837_v6, %v2356_v11  ;;  %v3005_v31 = vadd.f32 %v6849_v9, %v2351_v18 }
 0x3c9   : > { %v6907_v23 = vpop.f32.mrf.mxu1  ;;  %v2416_v27 = vadd.f32 %v6364_v58, %v2415_v52  ;;  %v2331_v58 = vadd.f32 %v6839_v3, %v6136_v44  ;;  %v2401_v44 = vadd.f32 %v6859_v42, %v6344_v45  ;;  %v7378_v42 = vld [vmem:[#allocation69_spill] sm:$0xff]  ;;  %v7380_v52 = vld [vmem:[#allocation79_spill] sm:$0xff] }
 0x3ca   : > { %7369 = vst [vmem:[#allocation83_spill] sm:$0xff] %v6907_v23  ;;  %4994 = vtanh.f32 %v3024_v25  ;;  %v3004_v29 = vadd.f32 %v6857_v28, %v2346_v39  ;;  %v2766_v3 = vpop.permute.xlu1 %2765  ;;  %v2316_v36 = vadd.f32 %v7379_v2, %v7378_v42  ;;  %v3000_v57 = vadd.f32 %v7380_v52, %v2326_v63  ;;  %v7385_v25 = vld [vmem:[#allocation68_spill] sm:$0xff]  ;;  %v7387_v39 = vld [vmem:[#allocation74_spill] sm:$0xff]  ;;  %v7400_v42 = vld [vmem:[#allocation21_spill] sm:$0xff] }
 0x3cb   : > { %4996 = vtanh.f32 %v3008_v53  ;;  %v2452_v20 = vpop.f32.mrf.mxu1  ;;  %v3018_v24 = vadd.f32 %v6869_v4, %v2416_v27  ;;  %v3001_v4 = vadd.f32 %v7373_v33, %v2331_v58  ;;  %v7377_v53 = vld [vmem:[#allocation78_spill] sm:$0xff]  ;;  %v3015_v11 = vadd.f32 %v7383_v13, %v2401_v44  ;;  %v7391_v27 = vld [vmem:[#allocation27_spill] sm:$0xff]  ;;  %v7397_v33 = vld [vmem:[#allocation20_spill] sm:$0xff] }
 0x3cc   : > { %4998 = vtanh.f32 %v3023_v15  ;;  %v3016_v28 = vadd.f32 %v7377_v53, %v2406_v62  ;;  %v7384_v15 = vld [vmem:[#allocation30_spill] sm:$0xff]  ;;  %v2998_v1 = vadd.f32 %v6889_v59, %v2316_v36  ;;  %v7392_v58 = vld [vmem:[#allocation23_spill] sm:$0xff] }
 0x3cd   : > { %5000 = vtanh.f32 %v3007_v26  ;;  %v6921_v49 = vpop.f32.mrf.mxu1  ;;  %v2311_v18 = vadd.f32 %v7385_v25, %v7384_v15  ;;  %v7386_v26 = vld [vmem:[#allocation81_spill] sm:$0xff]  ;;  %v7401_v2 = vld [vmem:[#allocation70_spill] sm:$0xff] }
 0x3ce   : > { %7370 = vst [vmem:[#allocation84_spill] sm:$0xff] %v6921_v49  ;;  %5002 = vtanh.f32 %v3022_v14  ;;  %v2999_v47 = vadd.f32 %v7386_v26, %v2321_v5  ;;  %v7396_v5 = vld [vmem:[#allocation72_spill] sm:$0xff]  ;;  %v2371_v36 = vadd.f32 %v7401_v2, %v7400_v42  ;;  %v7414_v23 = vld [vmem:[#allocation62_spill] sm:$0xff] }
 0x3cf   : > { %5004 = vtanh.f32 %v3006_v34  ;;  %v2457_v9 = vpop.f32.mrf.mxu1  ;;  %v7388_v34 = vld [vmem:[#allocation22_spill] sm:$0xff]  ;;  %v7415_v49 = vld [vmem:[#allocation44_spill] sm:$0xff] }
 0x3d0   : > { %5006 = vtanh.f32 %v3021_v51  ;;  %v2386_v20 = vadd.f32 %v7388_v34, %v7387_v39  ;;  %v3014_v51 = vadd.f32 %v7389_v37, %v2396_v32  ;;  %v7399_v32 = vld [vmem:[#allocation25_spill] sm:$0xff] }
 0x3d1   : > { %5008 = vtanh.f32 %v3005_v31  ;;  %v6938_v43 = vpop.f32.mrf.mxu1  ;;  %v2296_v53 = vadd.f32 %v7399_v32, %v7398_v38  ;;  %v3124_v38 = vld [vmem:[#allocation8 + $0x18] sm:$0xff] }
 0x3d2   : > { %7371 = vst [vmem:[#allocation85_spill] sm:$0xff] %v6938_v43  ;;  %5010 = vtanh.f32 %v3020_v46  ;;  %v2306_v46 = vadd.f32 %v7391_v27, %v7390_v10  ;;  %v3012_v35 = vadd.f32 %v6926_v56, %v2386_v20  ;;  %v7402_v56 = vld [vmem:[#allocation26_spill] sm:$0xff] }
 0x3d3   : > { %5012 = vtanh.f32 %v3004_v29  ;;  %v2462_v6 = vpop.f32.mrf.mxu1  ;;  %v2761_v29 = vpop.permute.xlu1 %2760 }
 0x3d4   : > { %5014 = vtanh.f32 %v3019_v8  ;;  %v2681_v8 = vpop.permute.xlu0 %2680  ;;  %v7395_v6 = vld [vmem:[#allocation66_spill] sm:$0xff] }
 0x3d5   : > { %5016 = vtanh.f32 %v3003_v61  ;;  %v6952_v55 = vpop.f32.mrf.mxu1  ;;  %v7393_v61 = vld [vmem:[#allocation73_spill] sm:$0xff] }
 0x3d6   : > { %7374 = vst [vmem:[#allocation71_spill] sm:$0xff] %v6952_v55  ;;  %5018 = vtanh.f32 %v3018_v24  ;;  %v2381_v62 = vadd.f32 %v7393_v61, %v7392_v58  ;;  %v3013_v24 = vadd.f32 %v6904_v30, %v2391_v7 }
 0x3d7   : > { %v4995_v45 = vpop.eup %4994  ;;  %5020 = vtanh.f32 %v3002_v17  ;;  %v2467_v16 = vpop.f32.mrf.mxu1  ;;  %v7394_v17 = vld [vmem:[#allocation28_spill] sm:$0xff] }
 0x3d8   : > { %v4997_v0 = vpop.eup %4996  ;;  %5022 = vtanh.f32 %v3017_v40  ;;  %4244 = vmatprep.subr.mxu0 %v4995_v45  ;;  %v2301_v44 = vadd.f32 %v7395_v6, %v7394_v17  ;;  %v2997_v40 = vadd.f32 %v6909_v12, %v2311_v18  ;;  %v3011_v52 = vadd.f32 %v2766_v3, %v2381_v62  ;;  %v7403_v16 = vld [vmem:[#allocation64_spill] sm:$0xff]  ;;  %v2756_v60 = vpop.permute.xlu1 %2755 }
 0x3d9   : > { %v4999_v41 = vpop.eup %4998  ;;  %5024 = vtanh.f32 %v3001_v4  ;;  %v6966_v14 = vpop.f32.mrf.mxu1  ;;  %4245 = vmatpush3.msra.mxu0 %v4997_v0  ;;  %v2376_v4 = vadd.f32 %v7397_v33, %v7396_v5  ;;  %v2291_v0 = vadd.f32 %v7403_v16, %v7402_v56  ;;  %v2994_v3 = vadd.f32 %v2681_v8, %v2296_v53  ;;  %v3126_v33 = vld [vmem:[#allocation8 + $0x28] sm:$0xff]  ;;  %v7009_v53 = vld [vmem:[%s7294_s20] sm:$0xff] }
 0x3da   : > { %v5001_v54 = vpop.eup %5000  ;;  %5026 = vtanh.f32 %v3016_v28  ;;  %4246 = vmatprep.subr.mxu0 %v4999_v41  ;;  %v2996_v28 = vadd.f32 %v6930_v50, %v2306_v46  ;;  %v2995_v19 = vadd.f32 %v2686_v21, %v2301_v44  ;;  %v2676_v13 = vpop.permute.xlu0 %2675  ;;  %v3009_v18 = vadd.f32 %v2756_v60, %v2371_v36  ;;  %7404 = vst [vmem:[#allocation77_spill] sm:$0xff] %v7009_v53 }
 0x3db   : > { %v5003_v31 = vpop.eup %5002  ;;  %5028 = vtanh.f32 %v3000_v57  ;;  %v2472_v9 = vpop.f32.mrf.mxu1  ;;  %4247 = vmatpush3.msra.mxu0 %v5001_v54  ;;  %v2993_v26 = vadd.f32 %v2676_v13, %v2291_v0 }
 0x3dc   : > { %v5005_v22 = vpop.eup %5004  ;;  %5030 = vtanh.f32 %v3015_v11  ;;  %4248 = vmatprep.subr.mxu0 %v5003_v31  ;;  %v3010_v11 = vadd.f32 %v2761_v29, %v2376_v4  ;;  %v2991_v16 = vpop.permute.xlu1 %2990 }
 0x3dd   : > { %v5007_v63 = vpop.eup %5006  ;;  %5032 = vtanh.f32 %v2999_v47  ;;  %v6980_v59 = vpop.f32.mrf.mxu1  ;;  %4249 = vmatpush3.msra.mxu0 %v5005_v22 }
 0x3de   : > { %v5009_v48 = vpop.eup %5008  ;;  %5034 = vtanh.f32 %v3014_v51  ;;  %4250 = vmatprep.subr.mxu0 %v5007_v63  ;;  %v2911_v56 = vpop.permute.xlu0 %2910 }
 0x3df   : > { %v5011_v30 = vpop.eup %5010  ;;  %5036 = vtanh.f32 %v2998_v1  ;;  %v2477_v12 = vpop.f32.mrf.mxu1  ;;  %4251 = vmatpush3.msra.mxu0 %v5009_v48  ;;  %v3121_v48 = vld [vmem:[#allocation8] sm:$0xff] }
 0x3e0   : > { %v5013_v45 = vpop.eup %5012  ;;  %5038 = vtanh.f32 %v3013_v24  ;;  %4252 = vmatprep.subr.mxu0 %v5011_v30  ;;  %v3125_v30 = vld [vmem:[#allocation8 + $0x20] sm:$0xff]  ;;  %v2986_v13 = vpop.permute.xlu1 %2985 }
 0x3e1   : > { %v5015_v57 = vpop.eup %5014  ;;  %5040 = vtanh.f32 %v2997_v40  ;;  %v6992_v7 = vpop.f32.mrf.mxu1  ;;  %4253 = vmatpush3.msra.mxu0 %v5013_v45  ;;  %v5352_v45 = vmov 2  }
 0x3e2   : > { %v5017_v50 = vpop.eup %5016  ;;  %5042 = vtanh.f32 %v3012_v35  ;;  %4254 = vmatprep.subr.mxu0 %v5015_v57  ;;  %4857 = vset.pattern.permute.xlu1 %v5352_v45 }
 0x3e3   : > { %v5019_v41 = vpop.eup %5018  ;;  %5044 = vtanh.f32 %v2996_v28  ;;  %v2482_v15 = vpop.f32.mrf.mxu1  ;;  %4255 = vmatpush3.msra.mxu0 %v5017_v50  ;;  %v7014_v28 = vld [vmem:[%s7294_s20 + $0x8] sm:$0xff]  ;;  %3133 = vperm.xlu1 %4857, %v7009_v53  }
 0x3e4   : > { %v5021_v25 = vpop.eup %5020  ;;  %5046 = vtanh.f32 %v3011_v52  ;;  %4256 = vmatprep.subr.mxu0 %v5019_v41  ;;  %7405 = vst [vmem:[#allocation76_spill] sm:$0xff] %v7014_v28  ;;  %4858 = vset.pattern.permute.xlu0 %v5352_v45  ;;  %v2906_v50 = vpop.permute.xlu0 %2905 }
 0x3e5   : > { %v5023_v21 = vpop.eup %5022  ;;  %5048 = vtanh.f32 %v2995_v19  ;;  %v6994_v47 = vpop.f32.mrf.mxu1  ;;  %4257 = vmatpush3.msra.mxu0 %v5021_v25  ;;  %3138 = vperm.xlu0 %4858, %v7014_v28  }
 0x3e6   : > { %v5025_v54 = vpop.eup %5024  ;;  %5050 = vtanh.f32 %v3010_v11  ;;  %4258 = vmatprep.subr.mxu0 %v5023_v21  ;;  %v2981_v25 = vpop.permute.xlu1 %2980 }
 0x3e7   : > { %v5027_v39 = vpop.eup %5026  ;;  %5052 = vtanh.f32 %v2994_v3  ;;  %v2487_v34 = vpop.f32.mrf.mxu1  ;;  %4259 = vmatpush3.msra.mxu0 %v5025_v54 }
 0x3e8   : > { %v5029_v20 = vpop.eup %5028  ;;  %5054 = vtanh.f32 %v3009_v18  ;;  %4260 = vmatprep.subr.mxu0 %v5027_v39  ;;  %v2901_v15 = vpop.permute.xlu0 %2900 }
 0x3e9   : > { %v5031_v37 = vpop.eup %5030  ;;  %5056 = vtanh.f32 %v2993_v26  ;;  %v6996_v51 = vpop.f32.mrf.mxu1  ;;  %4261 = vmatpush3.msra.mxu0 %v5029_v20 }
 0x3ea   : > { %v5033_v31 = vpop.eup %5032  ;;  %4262 = vmatprep.subr.mxu0 %v5031_v37  ;;  %v2976_v39 = vpop.permute.xlu1 %2975 }
 0x3eb   : > { %v5035_v10 = vpop.eup %5034  ;;  %v2492_v27 = vpop.f32.mrf.mxu1  ;;  %4263 = vmatpush3.msra.mxu0 %v5033_v31 }
 0x3ec   : > { %v5037_v46 = vpop.eup %5036  ;;  %4264 = vmatprep.subr.mxu0 %v5035_v10  ;;  %v7030_v54 = vpop.permute.xlu0 %2895 }
 0x3ed   : > { %v5039_v29 = vpop.eup %5038  ;;  %v6998_v1 = vpop.f32.mrf.mxu1  ;;  %4265 = vmatpush3.msra.mxu0 %v5037_v46 }
 0x3ee   : > { %v5041_v9 = vpop.eup %5040  ;;  %4266 = vmatprep.subr.mxu0 %v5039_v29  ;;  %v2971_v10 = vpop.permute.xlu1 %2970 }
 0x3ef   : > { %v5043_v22 = vpop.eup %5042  ;;  %v2497_v8 = vpop.f32.mrf.mxu1  ;;  %4267 = vmatpush3.msra.mxu0 %v5041_v9 }
 0x3f0   : > { %v5045_v58 = vpop.eup %5044  ;;  %4268 = vmatprep.subr.mxu0 %v5043_v22  ;;  %v7034_v31 = vpop.permute.xlu0 %2890 }
 0x3f1   : > { %v5047_v61 = vpop.eup %5046  ;;  %v7000_v62 = vpop.f32.mrf.mxu1  ;;  %4269 = vmatpush3.msra.mxu0 %v5045_v58 }
 0x3f2   : > { %v5049_v24 = vpop.eup %5048  ;;  %4270 = vmatprep.subr.mxu0 %v5047_v61  ;;  %v2966_v22 = vpop.permute.xlu1 %2965 }
 0x3f3   : > { %v5051_v63 = vpop.eup %5050  ;;  %v2502_v17 = vpop.f32.mrf.mxu1  ;;  %4271 = vmatpush3.msra.mxu0 %v5049_v24 }
 0x3f4   : > { %v5053_v6 = vpop.eup %5052  ;;  %4272 = vmatprep.subr.mxu0 %v5051_v63  ;;  %v7040_v9 = vpop.permute.xlu0 %2885 }
 0x3f5   : > { %v5055_v44 = vpop.eup %5054  ;;  %v7002_v40 = vpop.f32.mrf.mxu1  ;;  %4273 = vmatpush3.msra.mxu0 %v5053_v6 }
 0x3f6   : > { %v5057_v5 = vpop.eup %5056  ;;  %4274 = vmatprep.subr.mxu0 %v5055_v44  ;;  %v7044_v63 = vpop.permute.xlu1 %2960 }
 0x3f7   : > { %v2507_v4 = vpop.f32.mrf.mxu1  ;;  %4275 = vmatpush3.msra.mxu0 %v5057_v5 }
 0x3f8   : > { %3206 = vmatmul.mubr.f32.vlgmr.msra.gmra.mxu0 %v3121_v48  ;;  %v7042_v24 = vpop.permute.xlu0 %2880 }
 0x3f9   : > { %v7004_v35 = vpop.f32.mrf.mxu1  ;;  %3210 = vmatprep.mubr.f32.mxu0 %v3126_v33 }
 0x3fa   : > { %v7048_v5 = vpop.permute.xlu1 %2955 }
 0x3fb   : > { %v2512_v32 = vpop.f32.mrf.mxu1 }
 0x3fc   : > { %3211 = vmatmul.mubr.f32.gmra.mxu0 %v3125_v30  ;;  %v7046_v48 = vpop.permute.xlu0 %2875 }
 0x3fd   : > { %v7016_v12 = vpop.f32.mrf.mxu1  ;;  %3280 = vmatprep.mubr.f32.mxu0 %v3124_v38 }
 0x3fe   : > { %v7052_v32 = vpop.permute.xlu1 %2950 }
 0x3ff   : > { %v2517_v42 = vpop.f32.mrf.mxu1 }
 0x400   : > { %v7050_v38 = vpop.permute.xlu0 %2870 }
 0x401   : > { %v2520_v2 = vpop.f32.mrf.mxu1 }
 0x403   : > { %v2522_v36 = vpop.f32.mrf.mxu1 }
 0x405   : > { %v2525_v52 = vpop.f32.mrf.mxu1 }
 0x407   : > { %v2527_v57 = vpop.f32.mrf.mxu1 }
 0x408   : > { %v7054_v57 = vpop.permute.xlu0 %2865 }
 0x409   : > { %v7020_v0 = vpop.f32.mrf.mxu1 }
 0x40a   : > { %7406 = vst [vmem:[#allocation24_spill] sm:$0xff] %v7020_v0 }
 0x40b   : > { %v2532_v19 = vpop.f32.mrf.mxu1 }
 0x40c   : > { %v7056_v19 = vpop.permute.xlu1 %2945 }
 0x40d   : > { %v7022_v60 = vpop.f32.mrf.mxu1 }
 0x40e   : > { %7407 = vst [vmem:[#allocation78_spill] sm:$0xff] %v7022_v60 }
 0x40f   : > { %v2537_v11 = vpop.f32.mrf.mxu1 }
 0x411   : > { %v7024_v41 = vpop.f32.mrf.mxu1 }
 0x412   : > { %7408 = vst [vmem:[#allocation69_spill] sm:$0xff] %v7024_v41 }
 0x413   : > { %v2542_v3 = vpop.f32.mrf.mxu1 }
 0x415   : > { %v7026_v18 = vpop.f32.mrf.mxu1 }
 0x417   : > { %v2547_v21 = vpop.f32.mrf.mxu1 }
 0x418   : > { %v7409_v21 = vld [vmem:[#allocation46_spill] sm:$0xff] }
 0x419   : > { %v7028_v26 = vpop.f32.mrf.mxu1 }
 0x41b   : > { %v2552_v34 = vpop.f32.mrf.mxu1 }
 0x41c   : > { %v2526_v34 = vadd.f32 %v7409_v21, %v2525_v52  ;;  %v7416_v52 = vld [vmem:[#allocation61_spill] sm:$0xff] }
 0x41d   : > { %v7032_v20 = vpop.f32.mrf.mxu1 }
 0x41e   : > { %v3040_v60 = vadd.f32 %v2911_v56, %v2526_v34 }
 0x41f   : > { %v2557_v37 = vpop.f32.mrf.mxu1 }
 0x421   : > { %v7036_v27 = vpop.f32.mrf.mxu1 }
 0x423   : > { %v2562_v46 = vpop.f32.mrf.mxu1 }
 0x424   : > { %v7059_v46 = vpop.permute.xlu0 %2860 }
 0x425   : > { %v7038_v29 = vpop.f32.mrf.mxu1  ;;  %7410 = vst [vmem:[#allocation29_spill] sm:$0xff] %v7059_v46  ;;  %v7417_v46 = vld [vmem:[#allocation45_spill] sm:$0xff] }
 0x427   : > { %v2567_v8 = vpop.f32.mrf.mxu1 }
 0x428   : > { %v7411_v8 = vld [vmem:[#allocation63_spill] sm:$0xff]  ;;  %v7072_v55 = vpop.permute.xlu0 %2855 }
 0x429   : > { %v2570_v58 = vpop.f32.mrf.mxu1 }
 0x42b   : > { %v2572_v61 = vpop.f32.mrf.mxu1 }
 0x42d   : > { %v2575_v17 = vpop.f32.mrf.mxu1 }
 0x42f   : > { %v2577_v6 = vpop.f32.mrf.mxu1 }
 0x430   : > { %v7062_v6 = vpop.permute.xlu1 %2940 }
 0x431   : > { %v2580_v44 = vpop.f32.mrf.mxu1 }
 0x433   : > { %v2582_v33 = vpop.f32.mrf.mxu1 }
 0x434   : > { %v7412_v33 = vld [vmem:[#allocation47_spill] sm:$0xff] }
 0x435   : > { %v2585_v4 = vpop.f32.mrf.mxu1 }
 0x437   : > { %v2587_v30 = vpop.f32.mrf.mxu1 }
 0x438   : > { %v2521_v30 = vadd.f32 %v2520_v2, %v7412_v33  ;;  %v7418_v2 = vld [vmem:[#allocation58_spill] sm:$0xff] }
 0x439   : > { %v2590_v45 = vpop.f32.mrf.mxu1  ;;  %v2586_v33 = vadd.f32 %v7418_v2, %v2585_v4 }
 0x43a   : > { %v2591_v21 = vadd.f32 %v2590_v45, %v7416_v52  ;;  %v7425_v45 = vld [vmem:[#allocation41_spill] sm:$0xff]  ;;  %v7431_v52 = vld [vmem:[#allocation36_spill] sm:$0xff] }
 0x43b   : > { %v2592_v42 = vpop.f32.mrf.mxu1 }
 0x43c   : > { %v7413_v42 = vld [vmem:[#allocation60_spill] sm:$0xff] }
 0x43d   : > { %v2595_v36 = vpop.f32.mrf.mxu1 }
 0x43e   : > { %v2596_v28 = vadd.f32 %v7413_v42, %v2595_v36  ;;  %v7430_v42 = vld [vmem:[#allocation52_spill] sm:$0xff] }
 0x43f   : > { %v2597_v11 = vpop.f32.mrf.mxu1 }
 0x440   : > { %v2516_v11 = vadd.f32 %v7415_v49, %v7016_v12  ;;  %v3054_v36 = vadd.f32 %v2981_v25, %v2596_v28  ;;  %v7419_v49 = vld [vmem:[#allocation42_spill] sm:$0xff]  ;;  %v7420_v12 = vld [vmem:[#allocation59_spill] sm:$0xff]  ;;  %v7423_v25 = vld [vmem:[#allocation40_spill] sm:$0xff] }
 0x441   : > { %v2600_v3 = vpop.f32.mrf.mxu1  ;;  %v2581_v56 = vadd.f32 %v2580_v44, %v7420_v12  ;;  %v2496_v4 = vadd.f32 %v7423_v25, %v6998_v1 }
 0x442   : > { %v2601_v61 = vadd.f32 %v2600_v3, %v7411_v8  ;;  %v2511_v3 = vadd.f32 %v7004_v35, %v7417_v46  ;;  %v3039_v8 = vadd.f32 %v2906_v50, %v2521_v30 }
 0x443   : > { %v2602_v37 = vpop.f32.mrf.mxu1  ;;  %v3051_v44 = vadd.f32 %v2966_v22, %v2581_v56  ;;  %v7428_v22 = vld [vmem:[#allocation55_spill] sm:$0xff] }
 0x444   : > { %v3055_v37 = vadd.f32 %v2986_v13, %v2601_v61  ;;  %v3037_v50 = vadd.f32 %v7030_v54, %v2511_v3  ;;  %v7422_v13 = vld [vmem:[#allocation56_spill] sm:$0xff]  ;;  %v2491_v54 = vadd.f32 %v6996_v51, %v7425_v45  ;;  %v2561_v61 = vadd.f32 %v7036_v27, %v7428_v22  ;;  %v7438_v56 = vld [vmem:[#allocation51_spill] sm:$0xff] }
 0x445   : > { %v2605_v53 = vpop.f32.mrf.mxu1  ;;  %v2576_v28 = vadd.f32 %v7422_v13, %v2575_v17  ;;  %v2476_v27 = vadd.f32 %v7431_v52, %v6980_v59  ;;  %v7445_v45 = vld [vmem:[#allocation32_spill] sm:$0xff] }
 0x446   : > { %v2606_v0 = vadd.f32 %v7414_v23, %v2605_v53  ;;  %v7075_v23 = vpop.permute.xlu1 %2935  ;;  %v2506_v53 = vadd.f32 %v7419_v49, %v7002_v40  ;;  %v3047_v3 = vadd.f32 %v7056_v19, %v2561_v61  ;;  %v7435_v19 = vld [vmem:[#allocation71_spill] sm:$0xff]  ;;  %v7436_v49 = vld [vmem:[#allocation34_spill] sm:$0xff] }
 0x447   : > { %v2607_v43 = vpop.f32.mrf.mxu1  ;;  %v3050_v1 = vadd.f32 %v7044_v63, %v2576_v28 }
 0x448   : > { %v3056_v41 = vadd.f32 %v2991_v16, %v2606_v0  ;;  %v3038_v43 = vadd.f32 %v2901_v15, %v2516_v11  ;;  %v3053_v16 = vadd.f32 %v2976_v39, %v2591_v21  ;;  %v7421_v0 = vld [vmem:[#allocation43_spill] sm:$0xff]  ;;  %v3036_v40 = vadd.f32 %v7034_v31, %v2506_v53  ;;  %v7424_v15 = vld [vmem:[#allocation57_spill] sm:$0xff]  ;;  %v7427_v31 = vld [vmem:[#allocation38_spill] sm:$0xff] }
 0x449   : > { %v2501_v35 = vadd.f32 %v7000_v62, %v7421_v0  ;;  %v2571_v39 = vadd.f32 %v2570_v58, %v7424_v15  ;;  %v2486_v46 = vadd.f32 %v7427_v31, %v6994_v47  ;;  %v3034_v58 = vadd.f32 %v7042_v24, %v2496_v4  ;;  %v7442_v4 = vld [vmem:[#allocation78_spill] sm:$0xff] }
 0x44a   : > { %5058 = vtanh.f32 %v3056_v41  ;;  %v3052_v41 = vadd.f32 %v2971_v10, %v2586_v33  ;;  %v2931_v62 = vpop.permute.xlu1 %2930  ;;  %v7426_v10 = vld [vmem:[#allocation54_spill] sm:$0xff]  ;;  %v2556_v11 = vadd.f32 %v7430_v42, %v7032_v20  ;;  %v2466_v53 = vadd.f32 %v7436_v49, %v7435_v19  ;;  %v3128_v49 = vld [vmem:[#allocation8 + $0x38] sm:$0xff] }
 0x44b   : > { %5060 = vtanh.f32 %v3040_v60  ;;  %v7087_v60 = vpop.permute.xlu0 %2850  ;;  %v3035_v17 = vadd.f32 %v7040_v9, %v2501_v35  ;;  %v2566_v34 = vadd.f32 %v7426_v10, %v7038_v29  ;;  %v3049_v51 = vadd.f32 %v7048_v5, %v2571_v39  ;;  %v7429_v9 = vld [vmem:[#allocation39_spill] sm:$0xff] }
 0x44c   : > { %5062 = vtanh.f32 %v3055_v37  ;;  %v2481_v30 = vadd.f32 %v6992_v7, %v7429_v9  ;;  %v3033_v29 = vadd.f32 %v7046_v48, %v2491_v54  ;;  %v3032_v5 = vadd.f32 %v7050_v38, %v2486_v46  ;;  %v7432_v7 = vld [vmem:[#allocation53_spill] sm:$0xff]  ;;  %v7434_v38 = vld [vmem:[#allocation50_spill] sm:$0xff] }
 0x44d   : > { %5064 = vtanh.f32 %v3039_v8  ;;  %v3048_v47 = vadd.f32 %v7052_v32, %v2566_v34  ;;  %v2551_v48 = vadd.f32 %v7028_v26, %v7432_v7  ;;  %v7433_v8 = vld [vmem:[#allocation37_spill] sm:$0xff]  ;;  %v2546_v33 = vadd.f32 %v7434_v38, %v7026_v18  ;;  %v7447_v34 = vld [vmem:[#allocation24_spill] sm:$0xff] }
 0x44e   : > { %5066 = vtanh.f32 %v3054_v36  ;;  %v2926_v21 = vpop.permute.xlu1 %2925  ;;  %v2471_v32 = vadd.f32 %v6966_v14, %v7433_v8  ;;  %v3031_v2 = vadd.f32 %v7054_v57, %v2481_v30  ;;  %v3046_v36 = vadd.f32 %v7062_v6, %v2556_v11  ;;  %v7440_v6 = vld [vmem:[#allocation35_spill] sm:$0xff] }
 0x44f   : > { %5068 = vtanh.f32 %v3038_v43  ;;  %v2846_v63 = vpop.permute.xlu0 %2845  ;;  %v7437_v43 = vld [vmem:[#allocation29_spill] sm:$0xff]  ;;  %v3045_v35 = vadd.f32 %v7075_v23, %v2551_v48  ;;  %v3044_v39 = vadd.f32 %v2931_v62, %v2546_v33  ;;  %v7444_v23 = vld [vmem:[#allocation84_spill] sm:$0xff]  ;;  %v7449_v62 = vld [vmem:[#allocation83_spill] sm:$0xff] }
 0x450   : > { %5070 = vtanh.f32 %v3053_v16  ;;  %v3030_v12 = vadd.f32 %v7437_v43, %v2476_v27  ;;  %v7439_v16 = vld [vmem:[#allocation69_spill] sm:$0xff]  ;;  %v3029_v28 = vadd.f32 %v7072_v55, %v2471_v32  ;;  %v2456_v54 = vadd.f32 %v7445_v45, %v7444_v23 }
 0x451   : > { %5072 = vtanh.f32 %v3037_v50  ;;  %v2541_v0 = vadd.f32 %v7439_v16, %v7438_v56  ;;  %v7441_v50 = vld [vmem:[#allocation85_spill] sm:$0xff]  ;;  %v516_v56 = vld [vmem:[%s410_s5] sm:$0xff] }
 0x452   : > { %5074 = vtanh.f32 %v3052_v41  ;;  %v2461_v13 = vadd.f32 %v7441_v50, %v7440_v6  ;;  %v2921_v41 = vpop.permute.xlu1 %2920  ;;  %v7446_v55 = vld [vmem:[#allocation49_spill] sm:$0xff] }
 0x453   : > { %5076 = vtanh.f32 %v3036_v40  ;;  %v2841_v57 = vpop.permute.xlu0 %2840  ;;  %v7443_v40 = vld [vmem:[#allocation48_spill] sm:$0xff]  ;;  %v3043_v31 = vadd.f32 %v2926_v21, %v2541_v0 }
 0x454   : > { %5078 = vtanh.f32 %v3051_v44  ;;  %v2536_v15 = vadd.f32 %v7443_v40, %v7442_v4  ;;  %v3027_v61 = vadd.f32 %v2846_v63, %v2461_v13 }
 0x455   : > { %5080 = vtanh.f32 %v3035_v17  ;;  %v3028_v17 = vadd.f32 %v7087_v60, %v2466_v53  ;;  %v3127_v53 = vld [vmem:[#allocation8 + $0x30] sm:$0xff] }
 0x456   : > { %5082 = vtanh.f32 %v3050_v1  ;;  %v2531_v1 = vadd.f32 %v7447_v34, %v7446_v55  ;;  %v3042_v30 = vadd.f32 %v2921_v41, %v2536_v15  ;;  %v2916_v42 = vpop.permute.xlu1 %2915 }
 0x457   : > { %v5059_v24 = vpop.eup %5058  ;;  %5084 = vtanh.f32 %v3034_v58  ;;  %v7448_v58 = vld [vmem:[#allocation33_spill] sm:$0xff]  ;;  %v2836_v9 = vpop.permute.xlu0 %2835 }
 0x458   : > { %v5061_v37 = vpop.eup %5060  ;;  %5086 = vtanh.f32 %v3049_v51  ;;  %4282 = vmatprep.subr.mxu0 %v5059_v24  ;;  %v2451_v22 = vadd.f32 %v7449_v62, %v7448_v58 }
 0x459   : > { %v5063_v20 = vpop.eup %5062  ;;  %5088 = vtanh.f32 %v3033_v29  ;;  %4283 = vmatpush3.msra.mxu0 %v5061_v37  ;;  %v3026_v29 = vadd.f32 %v2841_v57, %v2456_v54 }
 0x45a   : > { %v5065_v59 = vpop.eup %5064  ;;  %5090 = vtanh.f32 %v3048_v47  ;;  %4284 = vmatprep.subr.mxu0 %v5063_v20  ;;  %v3041_v47 = vadd.f32 %v2916_v42, %v2531_v1  ;;  %v3025_v52 = vadd.f32 %v2836_v9, %v2451_v22 }
 0x45b   : > { %v5067_v26 = vpop.eup %5066  ;;  %5092 = vtanh.f32 %v3032_v5  ;;  %4285 = vmatpush3.msra.mxu0 %v5065_v59 }
 0x45c   : > { %v5069_v14 = vpop.eup %5068  ;;  %5094 = vtanh.f32 %v3047_v3  ;;  %4286 = vmatprep.subr.mxu0 %v5067_v26  ;;  %v3123_v26 = vld [vmem:[#allocation8 + $0x10] sm:$0xff] }
 0x45d   : > { %v5071_v18 = vpop.eup %5070  ;;  %5096 = vtanh.f32 %v3031_v2  ;;  %4287 = vmatpush3.msra.mxu0 %v5069_v14 }
 0x45e   : > { %v5073_v25 = vpop.eup %5072  ;;  %5098 = vtanh.f32 %v3046_v36  ;;  %4288 = vmatprep.subr.mxu0 %v5071_v18 }
 0x45f   : > { %v5075_v44 = vpop.eup %5074  ;;  %5100 = vtanh.f32 %v3030_v12  ;;  %4289 = vmatpush3.msra.mxu0 %v5073_v25 }
 0x460   : > { %v5077_v10 = vpop.eup %5076  ;;  %5102 = vtanh.f32 %v3045_v35  ;;  %4290 = vmatprep.subr.mxu0 %v5075_v44  ;;  %v3134_v35 = vpop.permute.xlu1 %3133 }
 0x461   : > { %v5079_v46 = vpop.eup %5078  ;;  %5104 = vtanh.f32 %v3029_v28  ;;  %4291 = vmatpush3.msra.mxu0 %v5077_v10  ;;  %v3139_v28 = vpop.permute.xlu0 %3138 }
 0x462   : > { %v5081_v51 = vpop.eup %5080  ;;  %5106 = vtanh.f32 %v3044_v39  ;;  %4292 = vmatprep.subr.mxu0 %v5079_v46 }
 0x463   : > { %v5083_v60 = vpop.eup %5082  ;;  %5108 = vtanh.f32 %v3028_v17  ;;  %4293 = vmatpush3.msra.mxu0 %v5081_v51 }
 0x464   : > { %v5085_v11 = vpop.eup %5084  ;;  %5110 = vtanh.f32 %v3043_v31  ;;  %4294 = vmatprep.subr.mxu0 %v5083_v60 }
 0x465   : > { %v5087_v24 = vpop.eup %5086  ;;  %5112 = vtanh.f32 %v3027_v61  ;;  %4295 = vmatpush3.msra.mxu0 %v5085_v11 }
 0x466   : > { %v5089_v63 = vpop.eup %5088  ;;  %5114 = vtanh.f32 %v3042_v30  ;;  %4296 = vmatprep.subr.mxu0 %v5087_v24 }
 0x467   : > { %v5091_v27 = vpop.eup %5090  ;;  %5116 = vtanh.f32 %v3026_v29  ;;  %4297 = vmatpush3.msra.mxu0 %v5089_v63 }
 0x468   : > { %v5093_v21 = vpop.eup %5092  ;;  %5118 = vtanh.f32 %v3041_v47  ;;  %4298 = vmatprep.subr.mxu0 %v5091_v27 }
 0x469   : > { %v5095_v5 = vpop.eup %5094  ;;  %5120 = vtanh.f32 %v3025_v52  ;;  %4299 = vmatpush3.msra.mxu0 %v5093_v21 }
 0x46a   : > { %v5097_v37 = vpop.eup %5096  ;;  %4300 = vmatprep.subr.mxu0 %v5095_v5 }
 0x46b   : > { %v5099_v7 = vpop.eup %5098  ;;  %4301 = vmatpush3.msra.mxu0 %v5097_v37 }
 0x46c   : > { %v5101_v48 = vpop.eup %5100  ;;  %4302 = vmatprep.subr.mxu0 %v5099_v7 }
 0x46d   : > { %v5103_v3 = vpop.eup %5102  ;;  %4303 = vmatpush3.msra.mxu0 %v5101_v48 }
 0x46e   : > { %v5105_v20 = vpop.eup %5104  ;;  %4304 = vmatprep.subr.mxu0 %v5103_v3 }
 0x46f   : > { %v5107_v8 = vpop.eup %5106  ;;  %4305 = vmatpush3.msra.mxu0 %v5105_v20 }
 0x470   : > { %v5109_v32 = vpop.eup %5108  ;;  %4306 = vmatprep.subr.mxu0 %v5107_v8 }
 0x471   : > { %v5111_v2 = vpop.eup %5110  ;;  %4307 = vmatpush3.msra.mxu0 %v5109_v32 }
 0x472   : > { %v5113_v59 = vpop.eup %5112  ;;  %4308 = vmatprep.subr.mxu0 %v5111_v2 }
 0x473   : > { %v5115_v38 = vpop.eup %5114  ;;  %4309 = vmatpush3.msra.mxu0 %v5113_v59 }
 0x474   : > { %v5117_v33 = vpop.eup %5116  ;;  %4310 = vmatprep.subr.mxu0 %v5115_v38 }
 0x475   : > { %v5119_v36 = vpop.eup %5118  ;;  %4311 = vmatpush3.msra.mxu0 %v5117_v33 }
 0x476   : > { %v5121_v19 = vpop.eup %5120  ;;  %4312 = vmatprep.subr.mxu0 %v5119_v36 }
 0x477   : > { %4313 = vmatpush3.msra.mxu0 %v5121_v19 }
 0x478   : > { %3281 = vmatmul.mubr.f32.vlgmr.msra.gmra.mxu0 %v3123_v26 }
 0x479   : > { %3285 = vmatprep.mubr.f32.mxu0 %v3128_v49 }
 0x47c   : > { %3286 = vmatmul.mubr.f32.gmra.mxu0 %v3127_v53 }
 0x47d   : > { %4612 = vmatprep.mubr.msk.f32.mxu0 %vm1341_vm2, %v516_v56  ;;  %v3428_v56 = vld [vmem:[#allocation6 + $0x400] sm:$0xff] }
 0x4b8   : > { %v4276_v43 = vpop.f32.mrf.mxu0 }
 0x4ba   : > { %v4277_v12 = vpop.f32.mrf.mxu0 }
 0x4bb   : > { %v4278_v16 = vadd.f32 %v4277_v12, %v4276_v43 }
 0x4bc   : > { %v4279_v14 = vpop.f32.mrf.mxu0 }
 0x4bd   : > { %v3208_v13 = vadd.f32 %v4278_v16, %v3134_v35  ;;  %v3435_v16 = vld [vmem:[%s7294_s20 + $0x18] sm:$0xff]  ;;  %v7450_v35 = vld [vmem:[#allocation76_spill] sm:$0xff] }
 0x4be   : > { %v4280_v57 = vpop.f32.mrf.mxu0 }
 0x4bf   : > { %v4281_v6 = vadd.f32 %v4280_v57, %v4279_v14  ;;  %v517_v57 = vld [vmem:[%s410_s5 + $0x8] sm:$0xff] }
 0x4c1   : > { %v3213_v40 = vadd.f32 %v4281_v6, %v3139_v28  ;;  %v7451_v6 = vld [vmem:[#allocation77_spill] sm:$0xff] }
 0x538   : > { %v4314_v0 = vpop.f32.mrf.mxu0 }
 0x53a   : > { %v4315_v18 = vpop.f32.mrf.mxu0 }
 0x53b   : > { %v4316_v50 = vadd.f32 %v4315_v18, %v4314_v0  ;;  %v5353_v0 = vmov 3   ;;  %v3434_v18 = vld [vmem:[%s7294_s20 + $0x10] sm:$0xff] }
 0x53c   : > { %v4317_v41 = vpop.f32.mrf.mxu0  ;;  %4859 = vset.pattern.permute.xlu1 %v5353_v0  ;;  %4860 = vset.pattern.permute.xlu0 %v5353_v0 }
 0x53d   : > { %v3283_v25 = vadd.f32 %v4316_v50, %v3208_v13  ;;  %3453 = vperm.xlu1 %4859, %v3435_v16   ;;  %3443 = vperm.xlu0 %4860, %v7450_v35  }
 0x53e   : > { %v4318_v4 = vpop.f32.mrf.mxu0 }
 0x53f   : > { %v4319_v15 = vadd.f32 %v4318_v4, %v4317_v41  ;;  %5122 = vtanh.f32 %v3283_v25 }
 0x541   : > { %v3288_v39 = vadd.f32 %v4319_v15, %v3213_v40  ;;  %3448 = vperm.xlu1 %4859, %v3434_v18  }
 0x543   : > { %5124 = vtanh.f32 %v3288_v39  ;;  %v5134_v39 = vld [vmem:[%s5584_s8 + $0x8] sm:$0xff] }
 0x545   : > { %3438 = vperm.xlu1 %4859, %v7451_v6  }
 0x54c   : > { %v5123_v44 = vpop.eup %5122 }
 0x550   : > { %v5125_v23 = vpop.eup %5124 }
 0x551   : > { %v3293_v45 = vmax.f32 %v5123_v44, %v5125_v23 }
 0x553   : > { %v3294_v54 = vrot.slane %v3293_v45, 4 }
 0x555   : > { %v3295_v17 = vmax.f32 %v3293_v45, %v3294_v54  ;;  %v3429_v54 = vld [vmem:[#allocation6 + $0x408] sm:$0xff] }
 0x557   : > { %v3296_v10 = vrot.slane %v3295_v17, 2 }
 0x559   : > { %v3297_v55 = vmax.f32 %v3295_v17, %v3296_v10  ;;  %v3430_v17 = vld [vmem:[#allocation6 + $0x410] sm:$0xff]  ;;  %v3431_v10 = vld [vmem:[#allocation6 + $0x418] sm:$0xff] }
 0x55b   : > { %v3298_v34 = vrot.slane %v3297_v55, 1 }
 0x55d   : > { %v3299_v1 = vmax.f32 %v3297_v55, %v3298_v34  ;;  %v3558_v55 = vld [vmem:[#allocation6 + $0x420] sm:$0xff]  ;;  %v5354_v34 = vmov 4  }
 0x55e   : > { %4861 = vset.pattern.permute.xlu1 %v5354_v34  ;;  %4862 = vset.pattern.permute.xlu0 %v5354_v34 }
 0x55f   : > { %v3300_v31 = vsub.f32 %v5123_v44, %v3299_v1  ;;  %v3301_v46 = vsub.f32 %v5125_v23, %v3299_v1  ;;  %v5135_v23 = vld [vmem:[%s5584_s8] sm:$0xff]  ;;  %3565 = vperm.xlu1 %4861, %v7450_v35   ;;  %3561 = vperm.xlu0 %4862, %v7451_v6   ;;  %s4075_s8 = sshll.u32 %s5326_s12, 2  ;;  %s5214_s12 = scalar_lea.vmem %s7173_s23, 256 }
 0x560   : > { %s3849_s17 = sadd.s32 %s5322_s11, %s4075_s8  ;;  %s7182_s11 = scalar_lea.sflag [#allocation5], %s400_s7 }
 0x561   : > { %v3302_v58 = vmul.f32 1.442695, %v3300_v31  ;;  %v3304_v62 = vmul.f32 1.442695, %v3301_v46  ;;  %s4076_s0 = sshll.u32 %s3849_s17, 7  ;;  %p5215_p7 = scmp.ne.s32.totalorder %s7173_s23, %s5214_s12 }
 0x562   : > { %s7178_s18 = scalar_lea.hbm %s7453_s22, %s4076_s0  ;;  %p5222_p13 = scmp.lt.s32.totalorder %s5220_s28, %s5214_s12 }
 0x563   : > { %5126 = vpow2.f32 %v3302_v58  ;;  %p5216_p3 = pnand %p5215_p7, %p7454_p2 }
 0x564   : > { %5128 = vpow2.f32 %v3304_v62  ;;  %p5223_p9 = por %p5222_p13, %p5221_p12 }
 0x565   : > { %p5217_p8 = pneg %p5216_p3 }
 0x567   : > { %p5224_p10 = pnand %p5223_p9, %p5217_p8 }
 0x570   : > { %v5127_v22 = vpop.eup %5126 }
 0x571   : > { %v5129_v61 = vpop.eup %5128 }
 0x572   : > { %v3306_v51 = vadd.f32 %v5129_v61, %v5127_v22 }
 0x574   : > { %v3307_v9 = vrot.slane %v3306_v51, 4 }
 0x576   : > { %v3308_v30 = vadd.f32 %v3307_v9, %v3306_v51 }
 0x578   : > { %v3309_v60 = vrot.slane %v3308_v30, 2 }
 0x57a   : > { %v3310_v29 = vadd.f32 %v3309_v60, %v3308_v30 }
 0x57c   : > { %v3311_v42 = vrot.slane %v3310_v29, 1 }
 0x57e   : > { %v3312_v11 = vadd.f32 %v3311_v42, %v3310_v29 }
 0x580   : > { %5130 = vrcp.f32 %v3312_v11 }
 0x58d   : > { %v5131_v47 = vpop.eup %5130 }
 0x58e   : > { %v3314_v24 = vmul.f32 %v5131_v47, %v5127_v22  ;;  %v3315_v52 = vmul.f32 %v5131_v47, %v5129_v61 }
 0x590   : > { %v3316_v63 = vmin.f32 %v3314_v24, %v3315_v52  ;;  %v3323_v27 = vmax.f32 %v3314_v24, %v3315_v52 }
 0x592   : > { %v3317_v21 = vrot.slane %v3316_v63, 4  ;;  %v3324_v5 = vrot.slane %v3323_v27, 4 }
 0x594   : > { %v3318_v37 = vmin.f32 %v3316_v63, %v3317_v21  ;;  %v3325_v7 = vmax.f32 %v3323_v27, %v3324_v5  ;;  %v3651_v63 = vld [vmem:[#allocation6 + $0x430] sm:$0xff]  ;;  %v5355_v27 = vmov 5  }
 0x595   : > { %4863 = vset.pattern.permute.xlu1 %v5355_v27 }
 0x596   : > { %v3319_v48 = vrot.slane %v3318_v37, 2  ;;  %v3326_v3 = vrot.slane %v3325_v7, 2  ;;  %3658 = vperm.xlu1 %4863, %v7450_v35  }
 0x598   : > { %v3320_v20 = vmin.f32 %v3318_v37, %v3319_v48  ;;  %v3327_v8 = vmax.f32 %v3325_v7, %v3326_v3 }
 0x59a   : > { %v3321_v32 = vrot.slane %v3320_v20, 1  ;;  %v3328_v2 = vrot.slane %v3327_v8, 1  ;;  %3654 = vperm.xlu1 %4863, %v7451_v6  }
 0x59c   : > { %v3322_v59 = vmin.f32 %v3320_v20, %v3321_v32  ;;  %v3329_v38 = vmax.f32 %v3327_v8, %v3328_v2  ;;  %v3652_v32 = vld [vmem:[#allocation6 + $0x438] sm:$0xff]  ;;  %v3744_v2 = vld [vmem:[#allocation6 + $0x440] sm:$0xff] }
 0x59e   : > { %v3332_v33 = vsub.f32 %v3329_v38, %v3322_v59  ;;  %v3331_v19 = vsub.f32 %v3315_v52, %v3322_v59  ;;  %v3330_v53 = vsub.f32 %v3314_v24, %v3322_v59  ;;  %v3559_v52 = vld [vmem:[#allocation6 + $0x428] sm:$0xff]  ;;  %v5356_v59 = vmov 6  }
 0x59f   : > { %4864 = vset.pattern.permute.xlu0 %v5356_v59  ;;  %4865 = vset.pattern.permute.xlu1 %v5356_v59 }
 0x5a0   : > { %v3333_v36 = vadd.f32 1e-06, %v3332_v33  ;;  %3747 = vperm.xlu0 %4864, %v7451_v6   ;;  %3751 = vperm.xlu1 %4865, %v7450_v35  }
 0x5a2   : > { %5132 = vrcp.f32 %v3333_v36 }
 0x5af   : > { %v5133_v26 = vpop.eup %5132 }
 0x5b0   : > { %v3335_v49 = vmul.f32 1.000001, %v5133_v26 }
 0x5b2   : > { %v3337_v43 = vmul.f32 %v3335_v49, %v3331_v19  ;;  %v3336_v12 = vmul.f32 %v3335_v49, %v3330_v53 }
 0x5b4   : > { %4608 = vmatprep.subr.mxu0 %v3337_v43  ;;  %v3338_v14 = vadd.f32 %v3337_v43, %v3336_v12 }
 0x5b5   : > { %4609 = vmatpush3.msra.mxu0 %v3337_v43 }
 0x5b6   : > { %4610 = vmatprep.subr.mxu0 %v3336_v12  ;;  %v3339_v50 = vrot.slane %v3338_v14, 4 }
 0x5b7   : > { %4611 = vmatpush3.msra.mxu0 %v3336_v12  ;;  %v3745_v12 = vld [vmem:[#allocation6 + $0x448] sm:$0xff] }
 0x5b8   : > { %4613 = vmatmul.mubr.msk.f32.vlgmr.msra.gmra.mxu0 %vm1341_vm2, %v517_v57  ;;  %v3340_v13 = vadd.f32 %v3339_v50, %v3338_v14  ;;  %v3454_v1 = vpop.permute.xlu1 %3453  ;;  %v3444_v62 = vpop.permute.xlu0 %3443 }
 0x5b9   : > { %4623 = vmatprep.mubr.msk.f32.mxu0 %vm3456_vm3, %v3428_v56 }
 0x5ba   : > { %v3341_v28 = vrot.slane %v3340_v13, 2 }
 0x5bc   : > { %v3342_v41 = vadd.f32 %v3341_v28, %v3340_v13  ;;  %v3449_v31 = vpop.permute.xlu1 %3448 }
 0x5be   : > { %v3343_v25 = vrot.slane %v3342_v41, 1 }
 0x5c0   : > { %v3344_v4 = vadd.f32 %v3343_v25, %v3342_v41  ;;  %v3439_v51 = vpop.permute.xlu1 %3438 }
 0x5c2   : > { %v3346_v44 = vmul.f32 %v5134_v39, %v3344_v4  ;;  %v3345_v45 = vmul.f32 %v5135_v23, %v3344_v4 }
 0x5da   : > { %v3566_v21 = vpop.permute.xlu1 %3565  ;;  %v3562_v37 = vpop.permute.xlu0 %3561 }
 0x611   : > { %v3659_v38 = vpop.permute.xlu1 %3658 }
 0x615   : > { %v3655_v26 = vpop.permute.xlu1 %3654 }
 0x61b   : > { %v3752_v14 = vpop.permute.xlu1 %3751  ;;  %v3748_v56 = vpop.permute.xlu0 %3747 }
 0x678   : > { %v4614_v40 = vpop.f32.mrf.mxu0 }
 0x679   : > { %4615 = vmatprep.subr.mxu0 %v4614_v40 }
 0x67a   : > { %v3419_v15 = vpop.f32.mrf.mxu0  ;;  %4616 = vmatpush3.msra.mxu0 %v4614_v40 }
 0x67b   : > { %4617 = vmatprep.subr.mxu0 %v3419_v15 }
 0x67c   : > { %4618 = vmatpush3.msra.mxu0 %v3419_v15 }
 0x67d   : > { %4619 = vmatprep.subr.mxu0 %v3346_v44 }
 0x67e   : > { %4620 = vmatpush3.msra.mxu0 %v3346_v44 }
 0x67f   : > { %4621 = vmatprep.subr.mxu0 %v3345_v45 }
 0x680   : > { %4622 = vmatpush3.msra.mxu0 %v3345_v45 }
 0x681   : > { %4624 = vmatmul.mubr.msk.f32.vlgmr.msra.gmra.mxu0 %vm3456_vm3, %v3429_v54 }
 0x682   : > { %4626 = vmatprep.mubr.msk.f32.mxu0 %vm3456_vm3, %v3430_v17 }
 0x685   : > { %4627 = vmatmul.mubr.msk.f32.gmra.mxu0 %vm3456_vm3, %v3431_v10 }
 0x686   : > { %4637 = vmatprep.mubr.msk.f32.mxu0 %vm3456_vm3, %v3558_v55 }
 0x741   : > { %v4625_v46 = vpop.f32.mrf.mxu0 }
 0x742   : > { %v3541_v30 = vadd.f32 %v4625_v46, %v3444_v62 }
 0x743   : > { %v3535_v58 = vpop.f32.mrf.mxu0 }
 0x744   : > { %v3536_v42 = vadd.f32 %v3535_v58, %v3439_v51  ;;  %v3555_v47 = vmax.f32 %v3541_v30, 0.0 }
 0x745   : > { %v4628_v22 = vpop.f32.mrf.mxu0 }
 0x746   : > { %v3551_v61 = vadd.f32 %v4628_v22, %v3454_v1  ;;  %v3554_v24 = vmax.f32 %v3536_v42, 0.0 }
 0x747   : > { %v3545_v9 = vpop.f32.mrf.mxu0 }
 0x748   : > { %v3557_v60 = vmax.f32 %v3551_v61, 0.0  ;;  %v3546_v29 = vadd.f32 %v3545_v9, %v3449_v31 }
 0x74a   : > { %v3556_v11 = vmax.f32 %v3546_v29, 0.0  ;;  %4629 = vmatprep.subr.mxu0 %v3557_v60 }
 0x74b   : > { %4630 = vmatpush3.msra.mxu0 %v3557_v60 }
 0x74c   : > { %4631 = vmatprep.subr.mxu0 %v3556_v11 }
 0x74d   : > { %4632 = vmatpush3.msra.mxu0 %v3556_v11 }
 0x74e   : > { %4633 = vmatprep.subr.mxu0 %v3555_v47 }
 0x74f   : > { %4634 = vmatpush3.msra.mxu0 %v3555_v47 }
 0x750   : > { %4635 = vmatprep.subr.mxu0 %v3554_v24 }
 0x751   : > { %4636 = vmatpush3.msra.mxu0 %v3554_v24 }
 0x752   : > { %4638 = vmatmul.mubr.msk.f32.vlgmr.msra.gmra.mxu0 %vm3456_vm3, %v3559_v52 }
 0x753   : > { %4644 = vmatprep.mubr.msk.f32.mxu0 %vm1341_vm2, %v3651_v63 }
 0x812   : > { %v4639_v5 = vpop.f32.mrf.mxu0 }
 0x813   : > { %v3646_v7 = vadd.f32 %v4639_v5, %v3566_v21 }
 0x814   : > { %v3640_v48 = vpop.f32.mrf.mxu0 }
 0x815   : > { %v3650_v3 = vmax.f32 %v3646_v7, 0.0  ;;  %v3641_v20 = vadd.f32 %v3640_v48, %v3562_v37 }
 0x817   : > { %v3649_v8 = vmax.f32 %v3641_v20, 0.0  ;;  %4640 = vmatprep.subr.mxu0 %v3650_v3 }
 0x818   : > { %4641 = vmatpush3.msra.mxu0 %v3650_v3 }
 0x819   : > { %4642 = vmatprep.subr.mxu0 %v3649_v8 }
 0x81a   : > { %4643 = vmatpush3.msra.mxu0 %v3649_v8 }
 0x81b   : > { %4645 = vmatmul.mubr.msk.f32.vlgmr.msra.gmra.mxu0 %vm1341_vm2, %v3652_v32 }
 0x81c   : > { %4651 = vmatprep.mubr.msk.f32.mxu0 %vm1341_vm2, %v3744_v2 }
 0x8db   : > { %v4646_v33 = vpop.f32.mrf.mxu0 }
 0x8dc   : > { %v3739_v36 = vadd.f32 %v4646_v33, %v3659_v38 }
 0x8dd   : > { %v3733_v19 = vpop.f32.mrf.mxu0 }
 0x8de   : > { %v3743_v49 = vmax.f32 %v3739_v36, 0.0  ;;  %v3734_v53 = vadd.f32 %v3733_v19, %v3655_v26 }
 0x8e0   : > { %v3742_v43 = vmax.f32 %v3734_v53, 0.0  ;;  %4647 = vmatprep.subr.mxu0 %v3743_v49 }
 0x8e1   : > { %4648 = vmatpush3.msra.mxu0 %v3743_v49 }
 0x8e2   : > { %4649 = vmatprep.subr.mxu0 %v3742_v43 }
 0x8e3   : > { %4650 = vmatpush3.msra.mxu0 %v3742_v43 }
 0x8e4   : > { %4652 = vmatmul.mubr.msk.f32.vlgmr.msra.gmra.mxu0 %vm1341_vm2, %v3745_v12 }
 0x9a4   : > { %v4653_v57 = vpop.f32.mrf.mxu0 }
 0x9a5   : > { %v3832_v16 = vadd.f32 %v4653_v57, %v3752_v14 }
 0x9a6   : > { %v3826_v0 = vpop.f32.mrf.mxu0 }
 0x9a7   : > { %3836 = vst [vmem:[%s467_s4 + $0x8] sm:$0xff] %v3832_v16  ;;  %v3827_v35 = vadd.f32 %v3826_v0, %v3748_v56 }
 0x9a9   : > { %3835 = vst [vmem:[%s467_s4] sm:$0xff] %v3827_v35 }
 0x9aa   : > { %5227 = shalt.err (!%p5224_p10)
}
 0x9ab   : > { %s5228_s7 = scalar_lea.hbm %s7178_s18, 256  ;;  %s5232_s8 = scalar_lea.hbm %s7453_s22, 1024 }
 0x9ac   : > { %p5229_p5 = scmp.ne.s32.totalorder %s7178_s18, %s5228_s7  ;;  %p5233_p6 = scmp.lt.s32.totalorder %s7178_s18, %s7453_s22 }
 0x9ad   : > { %p5234_p0 = scmp.lt.s32.totalorder %s5232_s8, %s5228_s7 }
 0x9ae   : > { %p5230_p1 = pnand %p5229_p5, %p7454_p2 }
 0x9af   : > { %p5235_p4 = por %p5234_p0, %p5233_p6 }
 0x9b0   : > { %p5231_p11 = pneg %p5230_p1 }
 0x9b2   : > { %p5236_p7 = pnand %p5235_p4, %p5231_p11 }
 0x9b4   : > { %5239 = shalt.err (!%p5236_p7)
}
 0x9b5   : > { %s5358_s0 = smov 128   ;;  %s5359_s27 = smov 256  }
 0x9b6   : > { %s5360_s16 = smov 8  }
 0x9b7   : > { %4728 = dma.vmem_to_hbm [thread:$0]  (%p7454_p2), %s7173_s23, 256, %s7178_s18, %s7182_s11, %s5358_s0, %s5359_s27, %s5360_s16  }
 0x9b8 PF: > { %s7455_s12 = sld [smem:[#allocation13_spill]]  ;;  %p4745_p3 = scmp.ge.s32.totalorder %s5338_s15, 2 }
 0x9b9   : > { %s7456_s26 = sld [smem:[#allocation19_spill]] }
 0x9be   : > { %s3867_s21 = sand.u32 1, %s7455_s12  }
 0x9bf   : > { %p7457_p8 = scmp.ne.s32.totalorder %s7456_s26, 0  ;;  %s3868_s28 = scalar_lea.sflag [#allocation5], %s3867_s21 }
 0x9c1   : > { %p4738_p12 = pnand %p4745_p3, %p7457_p8 }
 0x9c3   : > { %p4739_p13 = pneg %p4738_p12 }
 0x9c5   : > { %5293 = dma.done.wait (%p4739_p13), %s3868_s28, 256  }
 0x9c6   : > { %5295 = vsyncadd (%p4739_p13), %s3868_s28, 4294967040  ;;  %s25_s15 = sadd.s32 1, %s5338_s15   ;;  %s7458_s25 = sld [smem:[#allocation16_spill]] }
 0x9c7   : > { %p22_p9 = scmp.ge.s32.totalorder %s25_s15, 6   ;;  %s7459_s23 = sld [smem:[#allocation17_spill]] }
 0x9c8   : > { %s7460_s18 = sld [smem:[#allocation14_spill]]  ;;  %s7462_s27 = smov %s5314_s9 }
 0x9c9   : > { %s7461_s7 = sld [smem:[#allocation15_spill]]  ;;  %s7463_s28 = smov %s5306_s29 }
 0x9ca   : > { %s7464_s29 = smov %s5310_s30  ;;  %s7466_s9 = smov %s5318_s10 }
 0x9cb   : > { %s7468_s11 = smov %s5330_s13  ;;  %s7469_s12 = smov %s5334_s14 }
 0x9cc   : > { %s7465_s30 = smov %s7458_s25  ;;  %24 = sbr.rel (!%p22_p9) target bundleno = 16 (0x10), region = 157 }
 0x9cd   : > { %s7467_s10 = smov %s7459_s23 }
 0x9ce   : > { %s7470_s13 = smov %s7460_s18 }
 0x9cf   : > { %s7471_s14 = smov %s7461_s7 }
 0x9d1   :  { %3873 = vsyncpa [#allocation4], 1 }
 0x9d2   :  { %3875 = vsyncpa [#allocation4 + $0x1], 1 }
 0x9d3   :  { %3876 = vsyncpa [#allocation7], 1 }
 0x9d4   :  { %3877 = vsyncpa [#allocation5], 1 }
 0x9d5   :  { %3879 = vsyncpa [#allocation5 + $0x1], 1 }

</bundles_post_ra>
